<compile_context>
chip_gen: v6e
topology: v6e:2x2x1
jax: 0.10.0
libtpu: 0.0.40
codegen_flags: <defaults>
</compile_context>

<pallas_src>
import jax
import jax.numpy as jnp
from jax.experimental import pallas as pl
from jax.experimental.pallas import tpu as pltpu


def _sigmoid(x):
    # sigmoid(x) = 0.5 * (tanh(x/2) + 1): single EUP transcendental per gate,
    # no divide on the VALU.
    return 0.5 * (jnp.tanh(0.5 * x) + 1.0)


# ----------------------------------------------------------------------------
# Pallas kernel factory: one LSTM layer, fused input projection + recurrence.
# grid = (num_batch_blocks, num_time_blocks); time axis is sequential
# ("arbitrary"), batch axis is "parallel".  h/c state persists in VMEM scratch
# across the time axis.
# ----------------------------------------------------------------------------
def _make_lstm_kernel(t_blk, seq_len, masked):
    def kernel(x_ref, w_ih_ref, w_hh_ref, b_ref, h0_ref, c0_ref,
               out_ref, hn_ref, cn_ref,
               gx_scr, h_scr, c_scr):
        t = pl.program_id(1)
        H = h_scr.shape[-1]

        @pl.when(t == 0)
        def _init():
            h_scr[...] = h0_ref[...]
            c_scr[...] = c0_ref[...]

        w_ih = w_ih_ref[...]           # (I, 4H) bf16, VMEM resident
        w_hh = w_hh_ref[...]           # (H, 4H) bf16, VMEM resident
        bias = b_ref[...]              # (1, 4H) f32  (b_ih + b_hh)

        # ---- Fused input projection for the whole time block, hoisted above
        # the serial recurrence.  These matmuls are independent of h/c, so the
        # MXU pipelines them back to back.  (For b_blk % 8 == 0 they could be
        # folded into a single (t_blk*b_blk, I) x (I, 4H) GEMM via a reshape;
        # the per-step form avoids relayouts and lowers for any block shape.)
        for i in range(t_blk):
            gx_scr[i] = jnp.dot(
                x_ref[i].astype(jnp.bfloat16), w_ih,
                preferred_element_type=jnp.float32) + bias

        def step(i, h, c):
            gates = gx_scr[i] + jnp.dot(
                h.astype(jnp.bfloat16), w_hh,
                preferred_element_type=jnp.float32)
            # NOTE: for H % 128 != 0 these are unaligned lane slices (XLU
            # shuffles); pad H to a multiple of 128 for production shapes.
            i_g = _sigmoid(gates[:, 0 * H:1 * H])
            f_g = _sigmoid(gates[:, 1 * H:2 * H])
            g_g = jnp.tanh(gates[:, 2 * H:3 * H])
            o_g = _sigmoid(gates[:, 3 * H:4 * H])
            c_new = f_g * c + i_g * g_g          # cell state stays f32
            h_new = o_g * jnp.tanh(c_new)
            return h_new, c_new

        if not masked:
            # Fast path: every timestep of the block is valid; keep h/c in
            # registers across the unrolled block.
            h = h_scr[...]
            c = c_scr[...]
            for i in range(t_blk):
                h, c = step(i, h, c)
                out_ref[i] = h.astype(out_ref.dtype)
            h_scr[...] = h
            c_scr[...] = c
        else:
            # Tail-masked path: seq_len is not a multiple of t_blk; skip the
            # padded timesteps so h_n/c_n are the true final states.
            for i in range(t_blk):
                @pl.when(t * t_blk + i < seq_len)
                def _valid_step(i=i):
                    h_new, c_new = step(i, h_scr[...], c_scr[...])
                    h_scr[...] = h_new
                    c_scr[...] = c_new
                    out_ref[i] = h_new.astype(out_ref.dtype)

        @pl.when(t == pl.num_programs(1) - 1)
        def _finalize():
            hn_ref[...] = h_scr[...].astype(hn_ref.dtype)
            cn_ref[...] = c_scr[...].astype(cn_ref.dtype)

    return kernel


# ----------------------------------------------------------------------------
# VMEM budgeting helpers (generation-aware).
# ----------------------------------------------------------------------------
def _padded_bytes(shape, dtype):
    """Rough VMEM footprint of a block, padding the last two dims to (8,128)."""
    dims = list(shape)
    if len(dims) >= 1:
        dims[-1] = -(-dims[-1] // 128) * 128
    if len(dims) >= 2:
        dims[-2] = -(-dims[-2] // 8) * 8
    n = 1
    for d in dims:
        n *= d
    return n * jnp.dtype(dtype).itemsize


def _vmem_capacity_bytes():
    """Per-core VMEM capacity: 128 MiB on v5e/v6e, 64 MiB on v7x."""
    try:
        cap = int(getattr(pltpu.get_tpu_info(), "vmem_capacity_bytes"))
        if cap > 0:
            return cap
    except Exception:
        pass
    return 64 * 2**20   # conservative default (v7x)


def _layer_vmem_bytes(t_blk, b_blk, in_dim, H, x_dtype, out_dtype):
    """Estimate: double-buffered pipelined blocks + resident weights + scratch.
    (w_ih/w_hh have constant index maps; pipeline_mode=pl.Buffered(1) would
    halve their footprint for large H.)"""
    return (
        2 * _padded_bytes((t_blk, b_blk, in_dim), x_dtype)       # x blocks
        + 2 * _padded_bytes((t_blk, b_blk, H), out_dtype)        # out blocks
        + 2 * _padded_bytes((in_dim, 4 * H), jnp.bfloat16)       # W_ih^T
        + 2 * _padded_bytes((H, 4 * H), jnp.bfloat16)            # W_hh^T
        + 2 * _padded_bytes((1, 4 * H), jnp.float32)             # bias
        + 8 * _padded_bytes((b_blk, H), jnp.float32)             # h0,c0,hn,cn
        + _padded_bytes((t_blk, b_blk, 4 * H), jnp.float32)      # gates scratch
        + 2 * _padded_bytes((b_blk, H), jnp.float32)             # h/c scratch
    )


# ----------------------------------------------------------------------------
# One LSTM layer over the full sequence (single pallas_call).
# ----------------------------------------------------------------------------
def lstm_layer(x, w_ih_t, w_hh_t, b, h0, c0, *,
               out_dtype=jnp.float32, t_blk_target=32):
    S, B, in_dim = x.shape
    H = h0.shape[-1]

    w_ih_bf16 = w_ih_t.astype(jnp.bfloat16)            # (in_dim, 4H)
    w_hh_bf16 = w_hh_t.astype(jnp.bfloat16)            # (H, 4H)
    bias = b.reshape(1, 4 * H).astype(jnp.float32)     # (1, 4H)
    h0 = h0.astype(jnp.float32)
    c0 = c0.astype(jnp.float32)

    # Batch blocking: full batch per block so the per-step MXU matmuls have B
    # rows; split 2-way only for very large batches (megacore / v7x) while
    # keeping blocks bf16-tile friendly.
    b_blk = B // 2 if (B >= 256 and B % 32 == 0) else B

    # Time blocking from the generation-aware VMEM budget (amortizes the
    # ~0.35 us/step grid overhead and grows DMAs).
    budget = int(0.8 * _vmem_capacity_bytes())   # headroom for compiler scratch
    t_blk = max(1, min(t_blk_target, S))
    while t_blk > 1 and _layer_vmem_bytes(
            t_blk, b_blk, in_dim, H, x.dtype, out_dtype) > budget:
        t_blk = max(1, t_blk // 2)

    n_t = pl.cdiv(S, t_blk)
    s_pad = n_t * t_blk
    masked = (s_pad != S)
    if masked:
        x = jnp.pad(x, ((0, s_pad - S), (0, 0), (0, 0)))

    grid = (B // b_blk, n_t)
    kernel = _make_lstm_kernel(t_blk, S, masked)

    grid_spec = pltpu.PrefetchScalarGridSpec(
        num_scalar_prefetch=0,
        grid=grid,
        in_specs=[
            pl.BlockSpec((t_blk, b_blk, in_dim), lambda bb, tt: (tt, bb, 0)),
            pl.BlockSpec((in_dim, 4 * H), lambda bb, tt: (0, 0)),   # W_ih^T
            pl.BlockSpec((H, 4 * H), lambda bb, tt: (0, 0)),        # W_hh^T
            pl.BlockSpec((1, 4 * H), lambda bb, tt: (0, 0)),        # bias
            pl.BlockSpec((b_blk, H), lambda bb, tt: (bb, 0)),       # h_0
            pl.BlockSpec((b_blk, H), lambda bb, tt: (bb, 0)),       # c_0
        ],
        out_specs=[
            pl.BlockSpec((t_blk, b_blk, H), lambda bb, tt: (tt, bb, 0)),
            pl.BlockSpec((b_blk, H), lambda bb, tt: (bb, 0)),       # h_n
            pl.BlockSpec((b_blk, H), lambda bb, tt: (bb, 0)),       # c_n
        ],
        scratch_shapes=[
            pltpu.VMEM((t_blk, b_blk, 4 * H), jnp.float32),   # fused gate pre-acts
            pltpu.VMEM((b_blk, H), jnp.float32),              # h state
            pltpu.VMEM((b_blk, H), jnp.float32),              # c state
        ],
    )

    out_shapes = (
        jax.ShapeDtypeStruct((s_pad, B, H), out_dtype),
        jax.ShapeDtypeStruct((B, H), jnp.float32),
        jax.ShapeDtypeStruct((B, H), jnp.float32),
    )

    out, hn, cn = pl.pallas_call(
        kernel,
        out_shape=out_shapes,
        grid_spec=grid_spec,
        compiler_params=pltpu.CompilerParams(
            dimension_semantics=("parallel", "arbitrary"),
            vmem_limit_bytes=budget,
        ),
    )(x, w_ih_bf16, w_hh_bf16, bias, h0, c0)

    if masked:
        out = out[:S]
    return out, hn, cn


# ----------------------------------------------------------------------------
# Model: stack of num_layers LSTM layers (mirrors torch.nn.LSTM forward).
# Inter-layer activations are streamed in bf16; final output / h_n / c_n are
# f32 to match the PyTorch module.
# ----------------------------------------------------------------------------
def init_lstm_params(key, input_size, hidden_size, num_layers):
    """PyTorch-style init: U(-1/sqrt(H), 1/sqrt(H))."""
    bound = 1.0 / jnp.sqrt(jnp.float32(hidden_size))
    params = []
    for layer in range(num_layers):
        in_dim = input_size if layer == 0 else hidden_size
        key, k1, k2, k3, k4 = jax.random.split(key, 5)
        w_ih = jax.random.uniform(k1, (4 * hidden_size, in_dim),
                                  jnp.float32, -bound, bound)
        w_hh = jax.random.uniform(k2, (4 * hidden_size, hidden_size),
                                  jnp.float32, -bound, bound)
        b_ih = jax.random.uniform(k3, (4 * hidden_size,),
                                  jnp.float32, -bound, bound)
        b_hh = jax.random.uniform(k4, (4 * hidden_size,),
                                  jnp.float32, -bound, bound)
        params.append({
            "w_ih_t": w_ih.T,            # (in_dim, 4H)
            "w_hh_t": w_hh.T,            # (H, 4H)
            "b": b_ih + b_hh,            # (4H,)
        })
    return params


@jax.jit
def lstm_model_forward(x, h_0, c_0, *params_flat):
    num_layers = h_0.shape[0]
    layer_in = x
    h_list, c_list = [], []
    out = layer_in
    for l in range(num_layers):
        w_ih_t, w_hh_t, b = params_flat[3 * l:3 * l + 3]
        last = (l == num_layers - 1)
        out_dtype = jnp.float32 if last else jnp.bfloat16
        out, hn, cn = lstm_layer(layer_in, w_ih_t, w_hh_t, b,
                                 h_0[l], c_0[l], out_dtype=out_dtype)
        h_list.append(hn)
        c_list.append(cn)
        layer_in = out
    return out, jnp.stack(h_list, axis=0), jnp.stack(c_list, axis=0)


# ----------------------------------------------------------------------------
# Pure-JAX reference with matching numerics (bf16 matmul operands, f32
# accumulation, f32 cell state, bf16 inter-layer activations).
# ----------------------------------------------------------------------------
def lstm_reference(x, h_0, c_0, params):
    num_layers = h_0.shape[0]
    H = h_0.shape[-1]
    layer_in = x
    h_ns, c_ns = [], []
    out = layer_in
    for l in range(num_layers):
        p = params[l]
        w_ih = p["w_ih_t"].astype(jnp.bfloat16)
        w_hh = p["w_hh_t"].astype(jnp.bfloat16)
        gx = jnp.einsum(
            "sbi,ig->sbg",
            layer_in.astype(jnp.bfloat16), w_ih,
            preferred_element_type=jnp.float32,
        ) + p["b"].astype(jnp.float32)

        def step(carry, gx_t, w_hh=w_hh):
            h, c = carry
            gates = gx_t + jnp.dot(h.astype(jnp.bfloat16), w_hh,
                                   preferred_element_type=jnp.float32)
            i = _sigmoid(gates[:, 0 * H:1 * H])
            f = _sigmoid(gates[:, 1 * H:2 * H])
            g = jnp.tanh(gates[:, 2 * H:3 * H])
            o = _sigmoid(gates[:, 3 * H:4 * H])
            c_new = f * c + i * g
            h_new = o * jnp.tanh(c_new)
            return (h_new, c_new), h_new

        (hn, cn), out = jax.lax.scan(step, (h_0[l], c_0[l]), gx)
        h_ns.append(hn)
        c_ns.append(cn)
        layer_in = out if l == num_layers - 1 else out.astype(jnp.bfloat16)
    return out, jnp.stack(h_ns), jnp.stack(c_ns)


if __name__ == "__main__":
    # Small shapes consistent with the module: LSTM(input_size, hidden, layers)
    seq_len, batch = 8, 4
    input_size, hidden_size, num_layers = 16, 32, 2

    key = jax.random.PRNGKey(0)
    k_x, k_h, k_c, k_p = jax.random.split(key, 4)

    x = jax.random.normal(k_x, (seq_len, batch, input_size), jnp.float32)
    h_0 = jax.random.normal(k_h, (num_layers, batch, hidden_size), jnp.float32)
    c_0 = jax.random.normal(k_c, (num_layers, batch, hidden_size), jnp.float32)

    params = init_lstm_params(k_p, input_size, hidden_size, num_layers)
    params_flat = []
    for p in params:
        params_flat += [p["w_ih_t"], p["w_hh_t"], p["b"]]

    out, h_n, c_n = lstm_model_forward(x, h_0, c_0, *params_flat)
    jax.block_until_ready((out, h_n, c_n))

    out_ref, h_ref, c_ref = lstm_reference(x, h_0, c_0, params)
    assert out.shape == (seq_len, batch, hidden_size)
    assert out.dtype == jnp.float32
    assert h_n.shape == (num_layers, batch, hidden_size)
    assert c_n.shape == (num_layers, batch, hidden_size)
    assert jnp.allclose(out, out_ref, rtol=5e-3, atol=5e-3)
    assert jnp.allclose(h_n, h_ref, rtol=5e-3, atol=5e-3)
    assert jnp.allclose(c_n, c_ref, rtol=5e-3, atol=5e-3)

    # Robustness check: prime sequence length (exercises the masked-tail path)
    # and batch/hidden sizes that are not multiples of 8 / 128.
    s2, b2, i2, h2 = 5, 3, 10, 20
    k1, k2, k3, k4 = jax.random.split(jax.random.PRNGKey(1), 4)
    x2 = jax.random.normal(k1, (s2, b2, i2), jnp.float32)
    h02 = jax.random.normal(k2, (b2, h2), jnp.float32)
    c02 = jax.random.normal(k3, (b2, h2), jnp.float32)
    p2 = init_lstm_params(k4, i2, h2, 1)[0]
    out2, hn2, cn2 = lstm_layer(
        x2, p2["w_ih_t"], p2["w_hh_t"], p2["b"], h02, c02,
        out_dtype=jnp.float32, t_blk_target=4)   # 5 % 4 != 0 -> masked tail
    jax.block_until_ready((out2, hn2, cn2))
    out2_ref, hn2_ref, cn2_ref = lstm_reference(x2, h02[None], c02[None], [p2])
    assert out2.shape == (s2, b2, h2)
    assert jnp.allclose(out2, out2_ref, rtol=5e-3, atol=5e-3)
    assert jnp.allclose(hn2, hn2_ref[0], rtol=5e-3, atol=5e-3)
    assert jnp.allclose(cn2, cn2_ref[0], rtol=5e-3, atol=5e-3)

    print("KERNEL_OK")
</pallas_src>

<mosaic_0001>
module attributes {stable_mosaic.version = 11 : i64} {
  func.func @kernel(%arg0: i32, %arg1: i32, %arg2: memref<8x4x16xf32, #tpu.memory_space<vmem>>, %arg3: memref<16x128xbf16, #tpu.memory_space<vmem>>, %arg4: memref<32x128xbf16, #tpu.memory_space<vmem>>, %arg5: memref<1x128xf32, #tpu.memory_space<vmem>>, %arg6: memref<4x32xf32, #tpu.memory_space<vmem>>, %arg7: memref<4x32xf32, #tpu.memory_space<vmem>>, %arg8: memref<8x4x32xbf16, #tpu.memory_space<vmem>>, %arg9: memref<4x32xf32, #tpu.memory_space<vmem>>, %arg10: memref<4x32xf32, #tpu.memory_space<vmem>>, %arg11: memref<8x4x128xf32, #tpu.memory_space<vmem>>, %arg12: memref<4x32xf32, #tpu.memory_space<vmem>>, %arg13: memref<4x32xf32, #tpu.memory_space<vmem>>) attributes {dimension_semantics = [#tpu.dimension_semantics<parallel>, #tpu.dimension_semantics<arbitrary>], iteration_bounds = array<i64: 1, 1>, scalar_prefetch = 0 : i64, scratch_operands = 3 : i64, tpu.core_type = #tpu.core_type<tc>, window_params = [{transform_indices = @transform_0, window_bounds = array<i64: 8, 4, 16>}, {pipeline_mode = #tpu.pipeline_mode<synchronous>, transform_indices = @transform_1, window_bounds = array<i64: 16, 128>}, {pipeline_mode = #tpu.pipeline_mode<synchronous>, transform_indices = @transform_2, window_bounds = array<i64: 32, 128>}, {pipeline_mode = #tpu.pipeline_mode<synchronous>, transform_indices = @transform_3, window_bounds = array<i64: 1, 128>}, {transform_indices = @transform_4, window_bounds = array<i64: 4, 32>}, {transform_indices = @transform_5, window_bounds = array<i64: 4, 32>}, {transform_indices = @transform_6, window_bounds = array<i64: 8, 4, 32>}, {transform_indices = @transform_7, window_bounds = array<i64: 4, 32>}, {transform_indices = @transform_8, window_bounds = array<i64: 4, 32>}]} {
    %c0_i32 = arith.constant 0 : i32
    %0 = arith.cmpi eq, %arg1, %c0_i32 : i32
    %1 = arith.extui %0 : i1 to i32
    %c0_i32_0 = arith.constant 0 : i32
    %2 = arith.cmpi ne, %1, %c0_i32_0 : i32
    scf.if %2 {
      %c0_192 = arith.constant 0 : index
      %c0_193 = arith.constant 0 : index
      %405 = vector.load %arg6[%c0_192, %c0_193] : memref<4x32xf32, #tpu.memory_space<vmem>>, vector<4x32xf32>
      %c0_194 = arith.constant 0 : index
      %c0_195 = arith.constant 0 : index
      %406 = vector.load %arg12[%c0_194, %c0_195] : memref<4x32xf32, #tpu.memory_space<vmem>>, vector<4x32xf32>
      tpu.vector_store %arg12[%c0_194, %c0_195], %405 {strides = array<i32>} : memref<4x32xf32, #tpu.memory_space<vmem>>, vector<4x32xf32>,
      %c0_196 = arith.constant 0 : index
      %c0_197 = arith.constant 0 : index
      %407 = vector.load %arg7[%c0_196, %c0_197] : memref<4x32xf32, #tpu.memory_space<vmem>>, vector<4x32xf32>
      %c0_198 = arith.constant 0 : index
      %c0_199 = arith.constant 0 : index
      %408 = vector.load %arg13[%c0_198, %c0_199] : memref<4x32xf32, #tpu.memory_space<vmem>>, vector<4x32xf32>
      tpu.vector_store %arg13[%c0_198, %c0_199], %407 {strides = array<i32>} : memref<4x32xf32, #tpu.memory_space<vmem>>, vector<4x32xf32>,
    } else {
    }
    %c0 = arith.constant 0 : index
    %c0_1 = arith.constant 0 : index
    %3 = vector.load %arg3[%c0, %c0_1] : memref<16x128xbf16, #tpu.memory_space<vmem>>, vector<16x128xbf16>
    %c0_2 = arith.constant 0 : index
    %c0_3 = arith.constant 0 : index
    %4 = vector.load %arg4[%c0_2, %c0_3] : memref<32x128xbf16, #tpu.memory_space<vmem>>, vector<32x128xbf16>
    %c0_4 = arith.constant 0 : index
    %c0_5 = arith.constant 0 : index
    %5 = vector.load %arg5[%c0_4, %c0_5] : memref<1x128xf32, #tpu.memory_space<vmem>>, vector<1x128xf32>
    %c0_6 = arith.constant 0 : index
    %c0_7 = arith.constant 0 : index
    %c0_8 = arith.constant 0 : index
    %6 = vector.load %arg2[%c0_6, %c0_7, %c0_8] : memref<8x4x16xf32, #tpu.memory_space<vmem>>, vector<1x4x16xf32>
    %7 = vector.shape_cast %6 : vector<1x4x16xf32> to vector<4x16xf32>
    %8 = arith.truncf %7 : vector<4x16xf32> to vector<4x16xbf16>
    %cst = arith.constant dense<0.000000e+00> : vector<4x128xf32>
    %9 = tpu.matmul %8, %3, %cst {dimension_numbers = #tpu.dot_dimension_numbers<[1], [0], [0], [1], [0, 0, 1, 1], [], []>} : vector<4x16xbf16>, vector<16x128xbf16>, vector<4x128xf32> -> vector<4x128xf32>
    %10 = vector.broadcast %5 : vector<1x128xf32> to vector<4x128xf32>
    %11 = arith.addf %9, %10 : vector<4x128xf32>
    %c0_9 = arith.constant 0 : index
    %c0_10 = arith.constant 0 : index
    %c0_11 = arith.constant 0 : index
    %12 = vector.load %arg11[%c0_9, %c0_10, %c0_11] : memref<8x4x128xf32, #tpu.memory_space<vmem>>, vector<1x4x128xf32>
    %13 = vector.shape_cast %12 : vector<1x4x128xf32> to vector<4x128xf32>
    %14 = vector.shape_cast %11 : vector<4x128xf32> to vector<1x4x128xf32>
    tpu.vector_store %arg11[%c0_9, %c0_10, %c0_11], %14 {strides = array<i32>} : memref<8x4x128xf32, #tpu.memory_space<vmem>>, vector<1x4x128xf32>,
    %c1 = arith.constant 1 : index
    %c0_12 = arith.constant 0 : index
    %c0_13 = arith.constant 0 : index
    %15 = vector.load %arg2[%c1, %c0_12, %c0_13] : memref<8x4x16xf32, #tpu.memory_space<vmem>>, vector<1x4x16xf32>
    %16 = vector.shape_cast %15 : vector<1x4x16xf32> to vector<4x16xf32>
    %17 = arith.truncf %16 : vector<4x16xf32> to vector<4x16xbf16>
    %cst_14 = arith.constant dense<0.000000e+00> : vector<4x128xf32>
    %18 = tpu.matmul %17, %3, %cst_14 {dimension_numbers = #tpu.dot_dimension_numbers<[1], [0], [0], [1], [0, 0, 1, 1], [], []>} : vector<4x16xbf16>, vector<16x128xbf16>, vector<4x128xf32> -> vector<4x128xf32>
    %19 = vector.broadcast %5 : vector<1x128xf32> to vector<4x128xf32>
    %20 = arith.addf %18, %19 : vector<4x128xf32>
    %c1_15 = arith.constant 1 : index
    %c0_16 = arith.constant 0 : index
    %c0_17 = arith.constant 0 : index
    %21 = vector.load %arg11[%c1_15, %c0_16, %c0_17] : memref<8x4x128xf32, #tpu.memory_space<vmem>>, vector<1x4x128xf32>
    %22 = vector.shape_cast %21 : vector<1x4x128xf32> to vector<4x128xf32>
    %23 = vector.shape_cast %20 : vector<4x128xf32> to vector<1x4x128xf32>
    tpu.vector_store %arg11[%c1_15, %c0_16, %c0_17], %23 {strides = array<i32>} : memref<8x4x128xf32, #tpu.memory_space<vmem>>, vector<1x4x128xf32>,
    %c2 = arith.constant 2 : index
    %c0_18 = arith.constant 0 : index
    %c0_19 = arith.constant 0 : index
    %24 = vector.load %arg2[%c2, %c0_18, %c0_19] : memref<8x4x16xf32, #tpu.memory_space<vmem>>, vector<1x4x16xf32>
    %25 = vector.shape_cast %24 : vector<1x4x16xf32> to vector<4x16xf32>
    %26 = arith.truncf %25 : vector<4x16xf32> to vector<4x16xbf16>
    %cst_20 = arith.constant dense<0.000000e+00> : vector<4x128xf32>
    %27 = tpu.matmul %26, %3, %cst_20 {dimension_numbers = #tpu.dot_dimension_numbers<[1], [0], [0], [1], [0, 0, 1, 1], [], []>} : vector<4x16xbf16>, vector<16x128xbf16>, vector<4x128xf32> -> vector<4x128xf32>
    %28 = vector.broadcast %5 : vector<1x128xf32> to vector<4x128xf32>
    %29 = arith.addf %27, %28 : vector<4x128xf32>
    %c2_21 = arith.constant 2 : index
    %c0_22 = arith.constant 0 : index
    %c0_23 = arith.constant 0 : index
    %30 = vector.load %arg11[%c2_21, %c0_22, %c0_23] : memref<8x4x128xf32, #tpu.memory_space<vmem>>, vector<1x4x128xf32>
    %31 = vector.shape_cast %30 : vector<1x4x128xf32> to vector<4x128xf32>
    %32 = vector.shape_cast %29 : vector<4x128xf32> to vector<1x4x128xf32>
    tpu.vector_store %arg11[%c2_21, %c0_22, %c0_23], %32 {strides = array<i32>} : memref<8x4x128xf32, #tpu.memory_space<vmem>>, vector<1x4x128xf32>,
    %c3 = arith.constant 3 : index
    %c0_24 = arith.constant 0 : index
    %c0_25 = arith.constant 0 : index
    %33 = vector.load %arg2[%c3, %c0_24, %c0_25] : memref<8x4x16xf32, #tpu.memory_space<vmem>>, vector<1x4x16xf32>
    %34 = vector.shape_cast %33 : vector<1x4x16xf32> to vector<4x16xf32>
    %35 = arith.truncf %34 : vector<4x16xf32> to vector<4x16xbf16>
    %cst_26 = arith.constant dense<0.000000e+00> : vector<4x128xf32>
    %36 = tpu.matmul %35, %3, %cst_26 {dimension_numbers = #tpu.dot_dimension_numbers<[1], [0], [0], [1], [0, 0, 1, 1], [], []>} : vector<4x16xbf16>, vector<16x128xbf16>, vector<4x128xf32> -> vector<4x128xf32>
    %37 = vector.broadcast %5 : vector<1x128xf32> to vector<4x128xf32>
    %38 = arith.addf %36, %37 : vector<4x128xf32>
    %c3_27 = arith.constant 3 : index
    %c0_28 = arith.constant 0 : index
    %c0_29 = arith.constant 0 : index
    %39 = vector.load %arg11[%c3_27, %c0_28, %c0_29] : memref<8x4x128xf32, #tpu.memory_space<vmem>>, vector<1x4x128xf32>
    %40 = vector.shape_cast %39 : vector<1x4x128xf32> to vector<4x128xf32>
    %41 = vector.shape_cast %38 : vector<4x128xf32> to vector<1x4x128xf32>
    tpu.vector_store %arg11[%c3_27, %c0_28, %c0_29], %41 {strides = array<i32>} : memref<8x4x128xf32, #tpu.memory_space<vmem>>, vector<1x4x128xf32>,
    %c4 = arith.constant 4 : index
    %c0_30 = arith.constant 0 : index
    %c0_31 = arith.constant 0 : index
    %42 = vector.load %arg2[%c4, %c0_30, %c0_31] : memref<8x4x16xf32, #tpu.memory_space<vmem>>, vector<1x4x16xf32>
    %43 = vector.shape_cast %42 : vector<1x4x16xf32> to vector<4x16xf32>
    %44 = arith.truncf %43 : vector<4x16xf32> to vector<4x16xbf16>
    %cst_32 = arith.constant dense<0.000000e+00> : vector<4x128xf32>
    %45 = tpu.matmul %44, %3, %cst_32 {dimension_numbers = #tpu.dot_dimension_numbers<[1], [0], [0], [1], [0, 0, 1, 1], [], []>} : vector<4x16xbf16>, vector<16x128xbf16>, vector<4x128xf32> -> vector<4x128xf32>
    %46 = vector.broadcast %5 : vector<1x128xf32> to vector<4x128xf32>
    %47 = arith.addf %45, %46 : vector<4x128xf32>
    %c4_33 = arith.constant 4 : index
    %c0_34 = arith.constant 0 : index
    %c0_35 = arith.constant 0 : index
    %48 = vector.load %arg11[%c4_33, %c0_34, %c0_35] : memref<8x4x128xf32, #tpu.memory_space<vmem>>, vector<1x4x128xf32>
    %49 = vector.shape_cast %48 : vector<1x4x128xf32> to vector<4x128xf32>
    %50 = vector.shape_cast %47 : vector<4x128xf32> to vector<1x4x128xf32>
    tpu.vector_store %arg11[%c4_33, %c0_34, %c0_35], %50 {strides = array<i32>} : memref<8x4x128xf32, #tpu.memory_space<vmem>>, vector<1x4x128xf32>,
    %c5 = arith.constant 5 : index
    %c0_36 = arith.constant 0 : index
    %c0_37 = arith.constant 0 : index
    %51 = vector.load %arg2[%c5, %c0_36, %c0_37] : memref<8x4x16xf32, #tpu.memory_space<vmem>>, vector<1x4x16xf32>
    %52 = vector.shape_cast %51 : vector<1x4x16xf32> to vector<4x16xf32>
    %53 = arith.truncf %52 : vector<4x16xf32> to vector<4x16xbf16>
    %cst_38 = arith.constant dense<0.000000e+00> : vector<4x128xf32>
    %54 = tpu.matmul %53, %3, %cst_38 {dimension_numbers = #tpu.dot_dimension_numbers<[1], [0], [0], [1], [0, 0, 1, 1], [], []>} : vector<4x16xbf16>, vector<16x128xbf16>, vector<4x128xf32> -> vector<4x128xf32>
    %55 = vector.broadcast %5 : vector<1x128xf32> to vector<4x128xf32>
    %56 = arith.addf %54, %55 : vector<4x128xf32>
    %c5_39 = arith.constant 5 : index
    %c0_40 = arith.constant 0 : index
    %c0_41 = arith.constant 0 : index
    %57 = vector.load %arg11[%c5_39, %c0_40, %c0_41] : memref<8x4x128xf32, #tpu.memory_space<vmem>>, vector<1x4x128xf32>
    %58 = vector.shape_cast %57 : vector<1x4x128xf32> to vector<4x128xf32>
    %59 = vector.shape_cast %56 : vector<4x128xf32> to vector<1x4x128xf32>
    tpu.vector_store %arg11[%c5_39, %c0_40, %c0_41], %59 {strides = array<i32>} : memref<8x4x128xf32, #tpu.memory_space<vmem>>, vector<1x4x128xf32>,
    %c6 = arith.constant 6 : index
    %c0_42 = arith.constant 0 : index
    %c0_43 = arith.constant 0 : index
    %60 = vector.load %arg2[%c6, %c0_42, %c0_43] : memref<8x4x16xf32, #tpu.memory_space<vmem>>, vector<1x4x16xf32>
    %61 = vector.shape_cast %60 : vector<1x4x16xf32> to vector<4x16xf32>
    %62 = arith.truncf %61 : vector<4x16xf32> to vector<4x16xbf16>
    %cst_44 = arith.constant dense<0.000000e+00> : vector<4x128xf32>
    %63 = tpu.matmul %62, %3, %cst_44 {dimension_numbers = #tpu.dot_dimension_numbers<[1], [0], [0], [1], [0, 0, 1, 1], [], []>} : vector<4x16xbf16>, vector<16x128xbf16>, vector<4x128xf32> -> vector<4x128xf32>
    %64 = vector.broadcast %5 : vector<1x128xf32> to vector<4x128xf32>
    %65 = arith.addf %63, %64 : vector<4x128xf32>
    %c6_45 = arith.constant 6 : index
    %c0_46 = arith.constant 0 : index
    %c0_47 = arith.constant 0 : index
    %66 = vector.load %arg11[%c6_45, %c0_46, %c0_47] : memref<8x4x128xf32, #tpu.memory_space<vmem>>, vector<1x4x128xf32>
    %67 = vector.shape_cast %66 : vector<1x4x128xf32> to vector<4x128xf32>
    %68 = vector.shape_cast %65 : vector<4x128xf32> to vector<1x4x128xf32>
    tpu.vector_store %arg11[%c6_45, %c0_46, %c0_47], %68 {strides = array<i32>} : memref<8x4x128xf32, #tpu.memory_space<vmem>>, vector<1x4x128xf32>,
    %c7 = arith.constant 7 : index
    %c0_48 = arith.constant 0 : index
    %c0_49 = arith.constant 0 : index
    %69 = vector.load %arg2[%c7, %c0_48, %c0_49] : memref<8x4x16xf32, #tpu.memory_space<vmem>>, vector<1x4x16xf32>
    %70 = vector.shape_cast %69 : vector<1x4x16xf32> to vector<4x16xf32>
    %71 = arith.truncf %70 : vector<4x16xf32> to vector<4x16xbf16>
    %cst_50 = arith.constant dense<0.000000e+00> : vector<4x128xf32>
    %72 = tpu.matmul %71, %3, %cst_50 {dimension_numbers = #tpu.dot_dimension_numbers<[1], [0], [0], [1], [0, 0, 1, 1], [], []>} : vector<4x16xbf16>, vector<16x128xbf16>, vector<4x128xf32> -> vector<4x128xf32>
    %73 = vector.broadcast %5 : vector<1x128xf32> to vector<4x128xf32>
    %74 = arith.addf %72, %73 : vector<4x128xf32>
    %c7_51 = arith.constant 7 : index
    %c0_52 = arith.constant 0 : index
    %c0_53 = arith.constant 0 : index
    %75 = vector.load %arg11[%c7_51, %c0_52, %c0_53] : memref<8x4x128xf32, #tpu.memory_space<vmem>>, vector<1x4x128xf32>
    %76 = vector.shape_cast %75 : vector<1x4x128xf32> to vector<4x128xf32>
    %77 = vector.shape_cast %74 : vector<4x128xf32> to vector<1x4x128xf32>
    tpu.vector_store %arg11[%c7_51, %c0_52, %c0_53], %77 {strides = array<i32>} : memref<8x4x128xf32, #tpu.memory_space<vmem>>, vector<1x4x128xf32>,
    %c0_54 = arith.constant 0 : index
    %c0_55 = arith.constant 0 : index
    %78 = vector.load %arg12[%c0_54, %c0_55] : memref<4x32xf32, #tpu.memory_space<vmem>>, vector<4x32xf32>
    %c0_56 = arith.constant 0 : index
    %c0_57 = arith.constant 0 : index
    %79 = vector.load %arg13[%c0_56, %c0_57] : memref<4x32xf32, #tpu.memory_space<vmem>>, vector<4x32xf32>
    %c0_58 = arith.constant 0 : index
    %c0_59 = arith.constant 0 : index
    %c0_60 = arith.constant 0 : index
    %80 = vector.load %arg11[%c0_58, %c0_59, %c0_60] : memref<8x4x128xf32, #tpu.memory_space<vmem>>, vector<1x4x128xf32>
    %81 = vector.shape_cast %80 : vector<1x4x128xf32> to vector<4x128xf32>
    %82 = arith.truncf %78 : vector<4x32xf32> to vector<4x32xbf16>
    %cst_61 = arith.constant dense<0.000000e+00> : vector<4x128xf32>
    %83 = tpu.matmul %82, %4, %cst_61 {dimension_numbers = #tpu.dot_dimension_numbers<[1], [0], [0], [1], [0, 0, 1, 1], [], []>} : vector<4x32xbf16>, vector<32x128xbf16>, vector<4x128xf32> -> vector<4x128xf32>
    %84 = arith.addf %81, %83 : vector<4x128xf32>
    %85 = vector.extract_strided_slice %84 {offsets = [0, 0], sizes = [4, 32], strides = [1, 1]} : vector<4x128xf32> to vector<4x32xf32>
    %cst_62 = arith.constant 5.000000e-01 : f32
    %86 = vector.broadcast %cst_62 : f32 to vector<4x32xf32>
    %87 = arith.mulf %86, %85 : vector<4x32xf32>
    %88 = math.tanh %87 : vector<4x32xf32>
    %cst_63 = arith.constant 1.000000e+00 : f32
    %89 = vector.broadcast %cst_63 : f32 to vector<4x32xf32>
    %90 = arith.addf %88, %89 : vector<4x32xf32>
    %cst_64 = arith.constant 5.000000e-01 : f32
    %91 = vector.broadcast %cst_64 : f32 to vector<4x32xf32>
    %92 = arith.mulf %91, %90 : vector<4x32xf32>
    %93 = vector.extract_strided_slice %84 {offsets = [0, 32], sizes = [4, 32], strides = [1, 1]} : vector<4x128xf32> to vector<4x32xf32>
    %cst_65 = arith.constant 5.000000e-01 : f32
    %94 = vector.broadcast %cst_65 : f32 to vector<4x32xf32>
    %95 = arith.mulf %94, %93 : vector<4x32xf32>
    %96 = math.tanh %95 : vector<4x32xf32>
    %cst_66 = arith.constant 1.000000e+00 : f32
    %97 = vector.broadcast %cst_66 : f32 to vector<4x32xf32>
    %98 = arith.addf %96, %97 : vector<4x32xf32>
    %cst_67 = arith.constant 5.000000e-01 : f32
    %99 = vector.broadcast %cst_67 : f32 to vector<4x32xf32>
    %100 = arith.mulf %99, %98 : vector<4x32xf32>
    %101 = vector.extract_strided_slice %84 {offsets = [0, 64], sizes = [4, 32], strides = [1, 1]} : vector<4x128xf32> to vector<4x32xf32>
    %102 = math.tanh %101 : vector<4x32xf32>
    %103 = vector.extract_strided_slice %84 {offsets = [0, 96], sizes = [4, 32], strides = [1, 1]} : vector<4x128xf32> to vector<4x32xf32>
    %cst_68 = arith.constant 5.000000e-01 : f32
    %104 = vector.broadcast %cst_68 : f32 to vector<4x32xf32>
    %105 = arith.mulf %104, %103 : vector<4x32xf32>
    %106 = math.tanh %105 : vector<4x32xf32>
    %cst_69 = arith.constant 1.000000e+00 : f32
    %107 = vector.broadcast %cst_69 : f32 to vector<4x32xf32>
    %108 = arith.addf %106, %107 : vector<4x32xf32>
    %cst_70 = arith.constant 5.000000e-01 : f32
    %109 = vector.broadcast %cst_70 : f32 to vector<4x32xf32>
    %110 = arith.mulf %109, %108 : vector<4x32xf32>
    %111 = arith.mulf %100, %79 : vector<4x32xf32>
    %112 = arith.mulf %92, %102 : vector<4x32xf32>
    %113 = arith.addf %111, %112 : vector<4x32xf32>
    %114 = math.tanh %113 : vector<4x32xf32>
    %115 = arith.mulf %110, %114 : vector<4x32xf32>
    %116 = arith.truncf %115 : vector<4x32xf32> to vector<4x32xbf16>
    %c0_71 = arith.constant 0 : index
    %c0_72 = arith.constant 0 : index
    %c0_73 = arith.constant 0 : index
    %117 = vector.load %arg8[%c0_71, %c0_72, %c0_73] : memref<8x4x32xbf16, #tpu.memory_space<vmem>>, vector<1x4x32xbf16>
    %118 = vector.shape_cast %117 : vector<1x4x32xbf16> to vector<4x32xbf16>
    %119 = vector.shape_cast %116 : vector<4x32xbf16> to vector<1x4x32xbf16>
    tpu.vector_store %arg8[%c0_71, %c0_72, %c0_73], %119 {strides = array<i32>} : memref<8x4x32xbf16, #tpu.memory_space<vmem>>, vector<1x4x32xbf16>,
    %c1_74 = arith.constant 1 : index
    %c0_75 = arith.constant 0 : index
    %c0_76 = arith.constant 0 : index
    %120 = vector.load %arg11[%c1_74, %c0_75, %c0_76] : memref<8x4x128xf32, #tpu.memory_space<vmem>>, vector<1x4x128xf32>
    %121 = vector.shape_cast %120 : vector<1x4x128xf32> to vector<4x128xf32>
    %122 = arith.truncf %115 : vector<4x32xf32> to vector<4x32xbf16>
    %cst_77 = arith.constant dense<0.000000e+00> : vector<4x128xf32>
    %123 = tpu.matmul %122, %4, %cst_77 {dimension_numbers = #tpu.dot_dimension_numbers<[1], [0], [0], [1], [0, 0, 1, 1], [], []>} : vector<4x32xbf16>, vector<32x128xbf16>, vector<4x128xf32> -> vector<4x128xf32>
    %124 = arith.addf %121, %123 : vector<4x128xf32>
    %125 = vector.extract_strided_slice %124 {offsets = [0, 0], sizes = [4, 32], strides = [1, 1]} : vector<4x128xf32> to vector<4x32xf32>
    %cst_78 = arith.constant 5.000000e-01 : f32
    %126 = vector.broadcast %cst_78 : f32 to vector<4x32xf32>
    %127 = arith.mulf %126, %125 : vector<4x32xf32>
    %128 = math.tanh %127 : vector<4x32xf32>
    %cst_79 = arith.constant 1.000000e+00 : f32
    %129 = vector.broadcast %cst_79 : f32 to vector<4x32xf32>
    %130 = arith.addf %128, %129 : vector<4x32xf32>
    %cst_80 = arith.constant 5.000000e-01 : f32
    %131 = vector.broadcast %cst_80 : f32 to vector<4x32xf32>
    %132 = arith.mulf %131, %130 : vector<4x32xf32>
    %133 = vector.extract_strided_slice %124 {offsets = [0, 32], sizes = [4, 32], strides = [1, 1]} : vector<4x128xf32> to vector<4x32xf32>
    %cst_81 = arith.constant 5.000000e-01 : f32
    %134 = vector.broadcast %cst_81 : f32 to vector<4x32xf32>
    %135 = arith.mulf %134, %133 : vector<4x32xf32>
    %136 = math.tanh %135 : vector<4x32xf32>
    %cst_82 = arith.constant 1.000000e+00 : f32
    %137 = vector.broadcast %cst_82 : f32 to vector<4x32xf32>
    %138 = arith.addf %136, %137 : vector<4x32xf32>
    %cst_83 = arith.constant 5.000000e-01 : f32
    %139 = vector.broadcast %cst_83 : f32 to vector<4x32xf32>
    %140 = arith.mulf %139, %138 : vector<4x32xf32>
    %141 = vector.extract_strided_slice %124 {offsets = [0, 64], sizes = [4, 32], strides = [1, 1]} : vector<4x128xf32> to vector<4x32xf32>
    %142 = math.tanh %141 : vector<4x32xf32>
    %143 = vector.extract_strided_slice %124 {offsets = [0, 96], sizes = [4, 32], strides = [1, 1]} : vector<4x128xf32> to vector<4x32xf32>
    %cst_84 = arith.constant 5.000000e-01 : f32
    %144 = vector.broadcast %cst_84 : f32 to vector<4x32xf32>
    %145 = arith.mulf %144, %143 : vector<4x32xf32>
    %146 = math.tanh %145 : vector<4x32xf32>
    %cst_85 = arith.constant 1.000000e+00 : f32
    %147 = vector.broadcast %cst_85 : f32 to vector<4x32xf32>
    %148 = arith.addf %146, %147 : vector<4x32xf32>
    %cst_86 = arith.constant 5.000000e-01 : f32
    %149 = vector.broadcast %cst_86 : f32 to vector<4x32xf32>
    %150 = arith.mulf %149, %148 : vector<4x32xf32>
    %151 = arith.mulf %140, %113 : vector<4x32xf32>
    %152 = arith.mulf %132, %142 : vector<4x32xf32>
    %153 = arith.addf %151, %152 : vector<4x32xf32>
    %154 = math.tanh %153 : vector<4x32xf32>
    %155 = arith.mulf %150, %154 : vector<4x32xf32>
    %156 = arith.truncf %155 : vector<4x32xf32> to vector<4x32xbf16>
    %c1_87 = arith.constant 1 : index
    %c0_88 = arith.constant 0 : index
    %c0_89 = arith.constant 0 : index
    %157 = vector.load %arg8[%c1_87, %c0_88, %c0_89] : memref<8x4x32xbf16, #tpu.memory_space<vmem>>, vector<1x4x32xbf16>
    %158 = vector.shape_cast %157 : vector<1x4x32xbf16> to vector<4x32xbf16>
    %159 = vector.shape_cast %156 : vector<4x32xbf16> to vector<1x4x32xbf16>
    tpu.vector_store %arg8[%c1_87, %c0_88, %c0_89], %159 {strides = array<i32>} : memref<8x4x32xbf16, #tpu.memory_space<vmem>>, vector<1x4x32xbf16>,
    %c2_90 = arith.constant 2 : index
    %c0_91 = arith.constant 0 : index
    %c0_92 = arith.constant 0 : index
    %160 = vector.load %arg11[%c2_90, %c0_91, %c0_92] : memref<8x4x128xf32, #tpu.memory_space<vmem>>, vector<1x4x128xf32>
    %161 = vector.shape_cast %160 : vector<1x4x128xf32> to vector<4x128xf32>
    %162 = arith.truncf %155 : vector<4x32xf32> to vector<4x32xbf16>
    %cst_93 = arith.constant dense<0.000000e+00> : vector<4x128xf32>
    %163 = tpu.matmul %162, %4, %cst_93 {dimension_numbers = #tpu.dot_dimension_numbers<[1], [0], [0], [1], [0, 0, 1, 1], [], []>} : vector<4x32xbf16>, vector<32x128xbf16>, vector<4x128xf32> -> vector<4x128xf32>
    %164 = arith.addf %161, %163 : vector<4x128xf32>
    %165 = vector.extract_strided_slice %164 {offsets = [0, 0], sizes = [4, 32], strides = [1, 1]} : vector<4x128xf32> to vector<4x32xf32>
    %cst_94 = arith.constant 5.000000e-01 : f32
    %166 = vector.broadcast %cst_94 : f32 to vector<4x32xf32>
    %167 = arith.mulf %166, %165 : vector<4x32xf32>
    %168 = math.tanh %167 : vector<4x32xf32>
    %cst_95 = arith.constant 1.000000e+00 : f32
    %169 = vector.broadcast %cst_95 : f32 to vector<4x32xf32>
    %170 = arith.addf %168, %169 : vector<4x32xf32>
    %cst_96 = arith.constant 5.000000e-01 : f32
    %171 = vector.broadcast %cst_96 : f32 to vector<4x32xf32>
    %172 = arith.mulf %171, %170 : vector<4x32xf32>
    %173 = vector.extract_strided_slice %164 {offsets = [0, 32], sizes = [4, 32], strides = [1, 1]} : vector<4x128xf32> to vector<4x32xf32>
    %cst_97 = arith.constant 5.000000e-01 : f32
    %174 = vector.broadcast %cst_97 : f32 to vector<4x32xf32>
    %175 = arith.mulf %174, %173 : vector<4x32xf32>
    %176 = math.tanh %175 : vector<4x32xf32>
    %cst_98 = arith.constant 1.000000e+00 : f32
    %177 = vector.broadcast %cst_98 : f32 to vector<4x32xf32>
    %178 = arith.addf %176, %177 : vector<4x32xf32>
    %cst_99 = arith.constant 5.000000e-01 : f32
    %179 = vector.broadcast %cst_99 : f32 to vector<4x32xf32>
    %180 = arith.mulf %179, %178 : vector<4x32xf32>
    %181 = vector.extract_strided_slice %164 {offsets = [0, 64], sizes = [4, 32], strides = [1, 1]} : vector<4x128xf32> to vector<4x32xf32>
    %182 = math.tanh %181 : vector<4x32xf32>
    %183 = vector.extract_strided_slice %164 {offsets = [0, 96], sizes = [4, 32], strides = [1, 1]} : vector<4x128xf32> to vector<4x32xf32>
    %cst_100 = arith.constant 5.000000e-01 : f32
    %184 = vector.broadcast %cst_100 : f32 to vector<4x32xf32>
    %185 = arith.mulf %184, %183 : vector<4x32xf32>
    %186 = math.tanh %185 : vector<4x32xf32>
    %cst_101 = arith.constant 1.000000e+00 : f32
    %187 = vector.broadcast %cst_101 : f32 to vector<4x32xf32>
    %188 = arith.addf %186, %187 : vector<4x32xf32>
    %cst_102 = arith.constant 5.000000e-01 : f32
    %189 = vector.broadcast %cst_102 : f32 to vector<4x32xf32>
    %190 = arith.mulf %189, %188 : vector<4x32xf32>
    %191 = arith.mulf %180, %153 : vector<4x32xf32>
    %192 = arith.mulf %172, %182 : vector<4x32xf32>
    %193 = arith.addf %191, %192 : vector<4x32xf32>
    %194 = math.tanh %193 : vector<4x32xf32>
    %195 = arith.mulf %190, %194 : vector<4x32xf32>
    %196 = arith.truncf %195 : vector<4x32xf32> to vector<4x32xbf16>
    %c2_103 = arith.constant 2 : index
    %c0_104 = arith.constant 0 : index
    %c0_105 = arith.constant 0 : index
    %197 = vector.load %arg8[%c2_103, %c0_104, %c0_105] : memref<8x4x32xbf16, #tpu.memory_space<vmem>>, vector<1x4x32xbf16>
    %198 = vector.shape_cast %197 : vector<1x4x32xbf16> to vector<4x32xbf16>
    %199 = vector.shape_cast %196 : vector<4x32xbf16> to vector<1x4x32xbf16>
    tpu.vector_store %arg8[%c2_103, %c0_104, %c0_105], %199 {strides = array<i32>} : memref<8x4x32xbf16, #tpu.memory_space<vmem>>, vector<1x4x32xbf16>,
    %c3_106 = arith.constant 3 : index
    %c0_107 = arith.constant 0 : index
    %c0_108 = arith.constant 0 : index
    %200 = vector.load %arg11[%c3_106, %c0_107, %c0_108] : memref<8x4x128xf32, #tpu.memory_space<vmem>>, vector<1x4x128xf32>
    %201 = vector.shape_cast %200 : vector<1x4x128xf32> to vector<4x128xf32>
    %202 = arith.truncf %195 : vector<4x32xf32> to vector<4x32xbf16>
    %cst_109 = arith.constant dense<0.000000e+00> : vector<4x128xf32>
    %203 = tpu.matmul %202, %4, %cst_109 {dimension_numbers = #tpu.dot_dimension_numbers<[1], [0], [0], [1], [0, 0, 1, 1], [], []>} : vector<4x32xbf16>, vector<32x128xbf16>, vector<4x128xf32> -> vector<4x128xf32>
    %204 = arith.addf %201, %203 : vector<4x128xf32>
    %205 = vector.extract_strided_slice %204 {offsets = [0, 0], sizes = [4, 32], strides = [1, 1]} : vector<4x128xf32> to vector<4x32xf32>
    %cst_110 = arith.constant 5.000000e-01 : f32
    %206 = vector.broadcast %cst_110 : f32 to vector<4x32xf32>
    %207 = arith.mulf %206, %205 : vector<4x32xf32>
    %208 = math.tanh %207 : vector<4x32xf32>
    %cst_111 = arith.constant 1.000000e+00 : f32
    %209 = vector.broadcast %cst_111 : f32 to vector<4x32xf32>
    %210 = arith.addf %208, %209 : vector<4x32xf32>
    %cst_112 = arith.constant 5.000000e-01 : f32
    %211 = vector.broadcast %cst_112 : f32 to vector<4x32xf32>
    %212 = arith.mulf %211, %210 : vector<4x32xf32>
    %213 = vector.extract_strided_slice %204 {offsets = [0, 32], sizes = [4, 32], strides = [1, 1]} : vector<4x128xf32> to vector<4x32xf32>
    %cst_113 = arith.constant 5.000000e-01 : f32
    %214 = vector.broadcast %cst_113 : f32 to vector<4x32xf32>
    %215 = arith.mulf %214, %213 : vector<4x32xf32>
    %216 = math.tanh %215 : vector<4x32xf32>
    %cst_114 = arith.constant 1.000000e+00 : f32
    %217 = vector.broadcast %cst_114 : f32 to vector<4x32xf32>
    %218 = arith.addf %216, %217 : vector<4x32xf32>
    %cst_115 = arith.constant 5.000000e-01 : f32
    %219 = vector.broadcast %cst_115 : f32 to vector<4x32xf32>
    %220 = arith.mulf %219, %218 : vector<4x32xf32>
    %221 = vector.extract_strided_slice %204 {offsets = [0, 64], sizes = [4, 32], strides = [1, 1]} : vector<4x128xf32> to vector<4x32xf32>
    %222 = math.tanh %221 : vector<4x32xf32>
    %223 = vector.extract_strided_slice %204 {offsets = [0, 96], sizes = [4, 32], strides = [1, 1]} : vector<4x128xf32> to vector<4x32xf32>
    %cst_116 = arith.constant 5.000000e-01 : f32
    %224 = vector.broadcast %cst_116 : f32 to vector<4x32xf32>
    %225 = arith.mulf %224, %223 : vector<4x32xf32>
    %226 = math.tanh %225 : vector<4x32xf32>
    %cst_117 = arith.constant 1.000000e+00 : f32
    %227 = vector.broadcast %cst_117 : f32 to vector<4x32xf32>
    %228 = arith.addf %226, %227 : vector<4x32xf32>
    %cst_118 = arith.constant 5.000000e-01 : f32
    %229 = vector.broadcast %cst_118 : f32 to vector<4x32xf32>
    %230 = arith.mulf %229, %228 : vector<4x32xf32>
    %231 = arith.mulf %220, %193 : vector<4x32xf32>
    %232 = arith.mulf %212, %222 : vector<4x32xf32>
    %233 = arith.addf %231, %232 : vector<4x32xf32>
    %234 = math.tanh %233 : vector<4x32xf32>
    %235 = arith.mulf %230, %234 : vector<4x32xf32>
    %236 = arith.truncf %235 : vector<4x32xf32> to vector<4x32xbf16>
    %c3_119 = arith.constant 3 : index
    %c0_120 = arith.constant 0 : index
    %c0_121 = arith.constant 0 : index
    %237 = vector.load %arg8[%c3_119, %c0_120, %c0_121] : memref<8x4x32xbf16, #tpu.memory_space<vmem>>, vector<1x4x32xbf16>
    %238 = vector.shape_cast %237 : vector<1x4x32xbf16> to vector<4x32xbf16>
    %239 = vector.shape_cast %236 : vector<4x32xbf16> to vector<1x4x32xbf16>
    tpu.vector_store %arg8[%c3_119, %c0_120, %c0_121], %239 {strides = array<i32>} : memref<8x4x32xbf16, #tpu.memory_space<vmem>>, vector<1x4x32xbf16>,
    %c4_122 = arith.constant 4 : index
    %c0_123 = arith.constant 0 : index
    %c0_124 = arith.constant 0 : index
    %240 = vector.load %arg11[%c4_122, %c0_123, %c0_124] : memref<8x4x128xf32, #tpu.memory_space<vmem>>, vector<1x4x128xf32>
    %241 = vector.shape_cast %240 : vector<1x4x128xf32> to vector<4x128xf32>
    %242 = arith.truncf %235 : vector<4x32xf32> to vector<4x32xbf16>
    %cst_125 = arith.constant dense<0.000000e+00> : vector<4x128xf32>
    %243 = tpu.matmul %242, %4, %cst_125 {dimension_numbers = #tpu.dot_dimension_numbers<[1], [0], [0], [1], [0, 0, 1, 1], [], []>} : vector<4x32xbf16>, vector<32x128xbf16>, vector<4x128xf32> -> vector<4x128xf32>
    %244 = arith.addf %241, %243 : vector<4x128xf32>
    %245 = vector.extract_strided_slice %244 {offsets = [0, 0], sizes = [4, 32], strides = [1, 1]} : vector<4x128xf32> to vector<4x32xf32>
    %cst_126 = arith.constant 5.000000e-01 : f32
    %246 = vector.broadcast %cst_126 : f32 to vector<4x32xf32>
    %247 = arith.mulf %246, %245 : vector<4x32xf32>
    %248 = math.tanh %247 : vector<4x32xf32>
    %cst_127 = arith.constant 1.000000e+00 : f32
    %249 = vector.broadcast %cst_127 : f32 to vector<4x32xf32>
    %250 = arith.addf %248, %249 : vector<4x32xf32>
    %cst_128 = arith.constant 5.000000e-01 : f32
    %251 = vector.broadcast %cst_128 : f32 to vector<4x32xf32>
    %252 = arith.mulf %251, %250 : vector<4x32xf32>
    %253 = vector.extract_strided_slice %244 {offsets = [0, 32], sizes = [4, 32], strides = [1, 1]} : vector<4x128xf32> to vector<4x32xf32>
    %cst_129 = arith.constant 5.000000e-01 : f32
    %254 = vector.broadcast %cst_129 : f32 to vector<4x32xf32>
    %255 = arith.mulf %254, %253 : vector<4x32xf32>
    %256 = math.tanh %255 : vector<4x32xf32>
    %cst_130 = arith.constant 1.000000e+00 : f32
    %257 = vector.broadcast %cst_130 : f32 to vector<4x32xf32>
    %258 = arith.addf %256, %257 : vector<4x32xf32>
    %cst_131 = arith.constant 5.000000e-01 : f32
    %259 = vector.broadcast %cst_131 : f32 to vector<4x32xf32>
    %260 = arith.mulf %259, %258 : vector<4x32xf32>
    %261 = vector.extract_strided_slice %244 {offsets = [0, 64], sizes = [4, 32], strides = [1, 1]} : vector<4x128xf32> to vector<4x32xf32>
    %262 = math.tanh %261 : vector<4x32xf32>
    %263 = vector.extract_strided_slice %244 {offsets = [0, 96], sizes = [4, 32], strides = [1, 1]} : vector<4x128xf32> to vector<4x32xf32>
    %cst_132 = arith.constant 5.000000e-01 : f32
    %264 = vector.broadcast %cst_132 : f32 to vector<4x32xf32>
    %265 = arith.mulf %264, %263 : vector<4x32xf32>
    %266 = math.tanh %265 : vector<4x32xf32>
    %cst_133 = arith.constant 1.000000e+00 : f32
    %267 = vector.broadcast %cst_133 : f32 to vector<4x32xf32>
    %268 = arith.addf %266, %267 : vector<4x32xf32>
    %cst_134 = arith.constant 5.000000e-01 : f32
    %269 = vector.broadcast %cst_134 : f32 to vector<4x32xf32>
    %270 = arith.mulf %269, %268 : vector<4x32xf32>
    %271 = arith.mulf %260, %233 : vector<4x32xf32>
    %272 = arith.mulf %252, %262 : vector<4x32xf32>
    %273 = arith.addf %271, %272 : vector<4x32xf32>
    %274 = math.tanh %273 : vector<4x32xf32>
    %275 = arith.mulf %270, %274 : vector<4x32xf32>
    %276 = arith.truncf %275 : vector<4x32xf32> to vector<4x32xbf16>
    %c4_135 = arith.constant 4 : index
    %c0_136 = arith.constant 0 : index
    %c0_137 = arith.constant 0 : index
    %277 = vector.load %arg8[%c4_135, %c0_136, %c0_137] : memref<8x4x32xbf16, #tpu.memory_space<vmem>>, vector<1x4x32xbf16>
    %278 = vector.shape_cast %277 : vector<1x4x32xbf16> to vector<4x32xbf16>
    %279 = vector.shape_cast %276 : vector<4x32xbf16> to vector<1x4x32xbf16>
    tpu.vector_store %arg8[%c4_135, %c0_136, %c0_137], %279 {strides = array<i32>} : memref<8x4x32xbf16, #tpu.memory_space<vmem>>, vector<1x4x32xbf16>,
    %c5_138 = arith.constant 5 : index
    %c0_139 = arith.constant 0 : index
    %c0_140 = arith.constant 0 : index
    %280 = vector.load %arg11[%c5_138, %c0_139, %c0_140] : memref<8x4x128xf32, #tpu.memory_space<vmem>>, vector<1x4x128xf32>
    %281 = vector.shape_cast %280 : vector<1x4x128xf32> to vector<4x128xf32>
    %282 = arith.truncf %275 : vector<4x32xf32> to vector<4x32xbf16>
    %cst_141 = arith.constant dense<0.000000e+00> : vector<4x128xf32>
    %283 = tpu.matmul %282, %4, %cst_141 {dimension_numbers = #tpu.dot_dimension_numbers<[1], [0], [0], [1], [0, 0, 1, 1], [], []>} : vector<4x32xbf16>, vector<32x128xbf16>, vector<4x128xf32> -> vector<4x128xf32>
    %284 = arith.addf %281, %283 : vector<4x128xf32>
    %285 = vector.extract_strided_slice %284 {offsets = [0, 0], sizes = [4, 32], strides = [1, 1]} : vector<4x128xf32> to vector<4x32xf32>
    %cst_142 = arith.constant 5.000000e-01 : f32
    %286 = vector.broadcast %cst_142 : f32 to vector<4x32xf32>
    %287 = arith.mulf %286, %285 : vector<4x32xf32>
    %288 = math.tanh %287 : vector<4x32xf32>
    %cst_143 = arith.constant 1.000000e+00 : f32
    %289 = vector.broadcast %cst_143 : f32 to vector<4x32xf32>
    %290 = arith.addf %288, %289 : vector<4x32xf32>
    %cst_144 = arith.constant 5.000000e-01 : f32
    %291 = vector.broadcast %cst_144 : f32 to vector<4x32xf32>
    %292 = arith.mulf %291, %290 : vector<4x32xf32>
    %293 = vector.extract_strided_slice %284 {offsets = [0, 32], sizes = [4, 32], strides = [1, 1]} : vector<4x128xf32> to vector<4x32xf32>
    %cst_145 = arith.constant 5.000000e-01 : f32
    %294 = vector.broadcast %cst_145 : f32 to vector<4x32xf32>
    %295 = arith.mulf %294, %293 : vector<4x32xf32>
    %296 = math.tanh %295 : vector<4x32xf32>
    %cst_146 = arith.constant 1.000000e+00 : f32
    %297 = vector.broadcast %cst_146 : f32 to vector<4x32xf32>
    %298 = arith.addf %296, %297 : vector<4x32xf32>
    %cst_147 = arith.constant 5.000000e-01 : f32
    %299 = vector.broadcast %cst_147 : f32 to vector<4x32xf32>
    %300 = arith.mulf %299, %298 : vector<4x32xf32>
    %301 = vector.extract_strided_slice %284 {offsets = [0, 64], sizes = [4, 32], strides = [1, 1]} : vector<4x128xf32> to vector<4x32xf32>
    %302 = math.tanh %301 : vector<4x32xf32>
    %303 = vector.extract_strided_slice %284 {offsets = [0, 96], sizes = [4, 32], strides = [1, 1]} : vector<4x128xf32> to vector<4x32xf32>
    %cst_148 = arith.constant 5.000000e-01 : f32
    %304 = vector.broadcast %cst_148 : f32 to vector<4x32xf32>
    %305 = arith.mulf %304, %303 : vector<4x32xf32>
    %306 = math.tanh %305 : vector<4x32xf32>
    %cst_149 = arith.constant 1.000000e+00 : f32
    %307 = vector.broadcast %cst_149 : f32 to vector<4x32xf32>
    %308 = arith.addf %306, %307 : vector<4x32xf32>
    %cst_150 = arith.constant 5.000000e-01 : f32
    %309 = vector.broadcast %cst_150 : f32 to vector<4x32xf32>
    %310 = arith.mulf %309, %308 : vector<4x32xf32>
    %311 = arith.mulf %300, %273 : vector<4x32xf32>
    %312 = arith.mulf %292, %302 : vector<4x32xf32>
    %313 = arith.addf %311, %312 : vector<4x32xf32>
    %314 = math.tanh %313 : vector<4x32xf32>
    %315 = arith.mulf %310, %314 : vector<4x32xf32>
    %316 = arith.truncf %315 : vector<4x32xf32> to vector<4x32xbf16>
    %c5_151 = arith.constant 5 : index
    %c0_152 = arith.constant 0 : index
    %c0_153 = arith.constant 0 : index
    %317 = vector.load %arg8[%c5_151, %c0_152, %c0_153] : memref<8x4x32xbf16, #tpu.memory_space<vmem>>, vector<1x4x32xbf16>
    %318 = vector.shape_cast %317 : vector<1x4x32xbf16> to vector<4x32xbf16>
    %319 = vector.shape_cast %316 : vector<4x32xbf16> to vector<1x4x32xbf16>
    tpu.vector_store %arg8[%c5_151, %c0_152, %c0_153], %319 {strides = array<i32>} : memref<8x4x32xbf16, #tpu.memory_space<vmem>>, vector<1x4x32xbf16>,
    %c6_154 = arith.constant 6 : index
    %c0_155 = arith.constant 0 : index
    %c0_156 = arith.constant 0 : index
    %320 = vector.load %arg11[%c6_154, %c0_155, %c0_156] : memref<8x4x128xf32, #tpu.memory_space<vmem>>, vector<1x4x128xf32>
    %321 = vector.shape_cast %320 : vector<1x4x128xf32> to vector<4x128xf32>
    %322 = arith.truncf %315 : vector<4x32xf32> to vector<4x32xbf16>
    %cst_157 = arith.constant dense<0.000000e+00> : vector<4x128xf32>
    %323 = tpu.matmul %322, %4, %cst_157 {dimension_numbers = #tpu.dot_dimension_numbers<[1], [0], [0], [1], [0, 0, 1, 1], [], []>} : vector<4x32xbf16>, vector<32x128xbf16>, vector<4x128xf32> -> vector<4x128xf32>
    %324 = arith.addf %321, %323 : vector<4x128xf32>
    %325 = vector.extract_strided_slice %324 {offsets = [0, 0], sizes = [4, 32], strides = [1, 1]} : vector<4x128xf32> to vector<4x32xf32>
    %cst_158 = arith.constant 5.000000e-01 : f32
    %326 = vector.broadcast %cst_158 : f32 to vector<4x32xf32>
    %327 = arith.mulf %326, %325 : vector<4x32xf32>
    %328 = math.tanh %327 : vector<4x32xf32>
    %cst_159 = arith.constant 1.000000e+00 : f32
    %329 = vector.broadcast %cst_159 : f32 to vector<4x32xf32>
    %330 = arith.addf %328, %329 : vector<4x32xf32>
    %cst_160 = arith.constant 5.000000e-01 : f32
    %331 = vector.broadcast %cst_160 : f32 to vector<4x32xf32>
    %332 = arith.mulf %331, %330 : vector<4x32xf32>
    %333 = vector.extract_strided_slice %324 {offsets = [0, 32], sizes = [4, 32], strides = [1, 1]} : vector<4x128xf32> to vector<4x32xf32>
    %cst_161 = arith.constant 5.000000e-01 : f32
    %334 = vector.broadcast %cst_161 : f32 to vector<4x32xf32>
    %335 = arith.mulf %334, %333 : vector<4x32xf32>
    %336 = math.tanh %335 : vector<4x32xf32>
    %cst_162 = arith.constant 1.000000e+00 : f32
    %337 = vector.broadcast %cst_162 : f32 to vector<4x32xf32>
    %338 = arith.addf %336, %337 : vector<4x32xf32>
    %cst_163 = arith.constant 5.000000e-01 : f32
    %339 = vector.broadcast %cst_163 : f32 to vector<4x32xf32>
    %340 = arith.mulf %339, %338 : vector<4x32xf32>
    %341 = vector.extract_strided_slice %324 {offsets = [0, 64], sizes = [4, 32], strides = [1, 1]} : vector<4x128xf32> to vector<4x32xf32>
    %342 = math.tanh %341 : vector<4x32xf32>
    %343 = vector.extract_strided_slice %324 {offsets = [0, 96], sizes = [4, 32], strides = [1, 1]} : vector<4x128xf32> to vector<4x32xf32>
    %cst_164 = arith.constant 5.000000e-01 : f32
    %344 = vector.broadcast %cst_164 : f32 to vector<4x32xf32>
    %345 = arith.mulf %344, %343 : vector<4x32xf32>
    %346 = math.tanh %345 : vector<4x32xf32>
    %cst_165 = arith.constant 1.000000e+00 : f32
    %347 = vector.broadcast %cst_165 : f32 to vector<4x32xf32>
    %348 = arith.addf %346, %347 : vector<4x32xf32>
    %cst_166 = arith.constant 5.000000e-01 : f32
    %349 = vector.broadcast %cst_166 : f32 to vector<4x32xf32>
    %350 = arith.mulf %349, %348 : vector<4x32xf32>
    %351 = arith.mulf %340, %313 : vector<4x32xf32>
    %352 = arith.mulf %332, %342 : vector<4x32xf32>
    %353 = arith.addf %351, %352 : vector<4x32xf32>
    %354 = math.tanh %353 : vector<4x32xf32>
    %355 = arith.mulf %350, %354 : vector<4x32xf32>
    %356 = arith.truncf %355 : vector<4x32xf32> to vector<4x32xbf16>
    %c6_167 = arith.constant 6 : index
    %c0_168 = arith.constant 0 : index
    %c0_169 = arith.constant 0 : index
    %357 = vector.load %arg8[%c6_167, %c0_168, %c0_169] : memref<8x4x32xbf16, #tpu.memory_space<vmem>>, vector<1x4x32xbf16>
    %358 = vector.shape_cast %357 : vector<1x4x32xbf16> to vector<4x32xbf16>
    %359 = vector.shape_cast %356 : vector<4x32xbf16> to vector<1x4x32xbf16>
    tpu.vector_store %arg8[%c6_167, %c0_168, %c0_169], %359 {strides = array<i32>} : memref<8x4x32xbf16, #tpu.memory_space<vmem>>, vector<1x4x32xbf16>,
    %c7_170 = arith.constant 7 : index
    %c0_171 = arith.constant 0 : index
    %c0_172 = arith.constant 0 : index
    %360 = vector.load %arg11[%c7_170, %c0_171, %c0_172] : memref<8x4x128xf32, #tpu.memory_space<vmem>>, vector<1x4x128xf32>
    %361 = vector.shape_cast %360 : vector<1x4x128xf32> to vector<4x128xf32>
    %362 = arith.truncf %355 : vector<4x32xf32> to vector<4x32xbf16>
    %cst_173 = arith.constant dense<0.000000e+00> : vector<4x128xf32>
    %363 = tpu.matmul %362, %4, %cst_173 {dimension_numbers = #tpu.dot_dimension_numbers<[1], [0], [0], [1], [0, 0, 1, 1], [], []>} : vector<4x32xbf16>, vector<32x128xbf16>, vector<4x128xf32> -> vector<4x128xf32>
    %364 = arith.addf %361, %363 : vector<4x128xf32>
    %365 = vector.extract_strided_slice %364 {offsets = [0, 0], sizes = [4, 32], strides = [1, 1]} : vector<4x128xf32> to vector<4x32xf32>
    %cst_174 = arith.constant 5.000000e-01 : f32
    %366 = vector.broadcast %cst_174 : f32 to vector<4x32xf32>
    %367 = arith.mulf %366, %365 : vector<4x32xf32>
    %368 = math.tanh %367 : vector<4x32xf32>
    %cst_175 = arith.constant 1.000000e+00 : f32
    %369 = vector.broadcast %cst_175 : f32 to vector<4x32xf32>
    %370 = arith.addf %368, %369 : vector<4x32xf32>
    %cst_176 = arith.constant 5.000000e-01 : f32
    %371 = vector.broadcast %cst_176 : f32 to vector<4x32xf32>
    %372 = arith.mulf %371, %370 : vector<4x32xf32>
    %373 = vector.extract_strided_slice %364 {offsets = [0, 32], sizes = [4, 32], strides = [1, 1]} : vector<4x128xf32> to vector<4x32xf32>
    %cst_177 = arith.constant 5.000000e-01 : f32
    %374 = vector.broadcast %cst_177 : f32 to vector<4x32xf32>
    %375 = arith.mulf %374, %373 : vector<4x32xf32>
    %376 = math.tanh %375 : vector<4x32xf32>
    %cst_178 = arith.constant 1.000000e+00 : f32
    %377 = vector.broadcast %cst_178 : f32 to vector<4x32xf32>
    %378 = arith.addf %376, %377 : vector<4x32xf32>
    %cst_179 = arith.constant 5.000000e-01 : f32
    %379 = vector.broadcast %cst_179 : f32 to vector<4x32xf32>
    %380 = arith.mulf %379, %378 : vector<4x32xf32>
    %381 = vector.extract_strided_slice %364 {offsets = [0, 64], sizes = [4, 32], strides = [1, 1]} : vector<4x128xf32> to vector<4x32xf32>
    %382 = math.tanh %381 : vector<4x32xf32>
    %383 = vector.extract_strided_slice %364 {offsets = [0, 96], sizes = [4, 32], strides = [1, 1]} : vector<4x128xf32> to vector<4x32xf32>
    %cst_180 = arith.constant 5.000000e-01 : f32
    %384 = vector.broadcast %cst_180 : f32 to vector<4x32xf32>
    %385 = arith.mulf %384, %383 : vector<4x32xf32>
    %386 = math.tanh %385 : vector<4x32xf32>
    %cst_181 = arith.constant 1.000000e+00 : f32
    %387 = vector.broadcast %cst_181 : f32 to vector<4x32xf32>
    %388 = arith.addf %386, %387 : vector<4x32xf32>
    %cst_182 = arith.constant 5.000000e-01 : f32
    %389 = vector.broadcast %cst_182 : f32 to vector<4x32xf32>
    %390 = arith.mulf %389, %388 : vector<4x32xf32>
    %391 = arith.mulf %380, %353 : vector<4x32xf32>
    %392 = arith.mulf %372, %382 : vector<4x32xf32>
    %393 = arith.addf %391, %392 : vector<4x32xf32>
    %394 = math.tanh %393 : vector<4x32xf32>
    %395 = arith.mulf %390, %394 : vector<4x32xf32>
    %396 = arith.truncf %395 : vector<4x32xf32> to vector<4x32xbf16>
    %c7_183 = arith.constant 7 : index
    %c0_184 = arith.constant 0 : index
    %c0_185 = arith.constant 0 : index
    %397 = vector.load %arg8[%c7_183, %c0_184, %c0_185] : memref<8x4x32xbf16, #tpu.memory_space<vmem>>, vector<1x4x32xbf16>
    %398 = vector.shape_cast %397 : vector<1x4x32xbf16> to vector<4x32xbf16>
    %399 = vector.shape_cast %396 : vector<4x32xbf16> to vector<1x4x32xbf16>
    tpu.vector_store %arg8[%c7_183, %c0_184, %c0_185], %399 {strides = array<i32>} : memref<8x4x32xbf16, #tpu.memory_space<vmem>>, vector<1x4x32xbf16>,
    %c0_186 = arith.constant 0 : index
    %c0_187 = arith.constant 0 : index
    %400 = vector.load %arg12[%c0_186, %c0_187] : memref<4x32xf32, #tpu.memory_space<vmem>>, vector<4x32xf32>
    tpu.vector_store %arg12[%c0_186, %c0_187], %395 {strides = array<i32>} : memref<4x32xf32, #tpu.memory_space<vmem>>, vector<4x32xf32>,
    %c0_188 = arith.constant 0 : index
    %c0_189 = arith.constant 0 : index
    %401 = vector.load %arg13[%c0_188, %c0_189] : memref<4x32xf32, #tpu.memory_space<vmem>>, vector<4x32xf32>
    tpu.vector_store %arg13[%c0_188, %c0_189], %393 {strides = array<i32>} : memref<4x32xf32, #tpu.memory_space<vmem>>, vector<4x32xf32>,
    %c0_i32_190 = arith.constant 0 : i32
    %402 = arith.cmpi eq, %arg1, %c0_i32_190 : i32
    %403 = arith.extui %402 : i1 to i32
    %c0_i32_191 = arith.constant 0 : i32
    %404 = arith.cmpi ne, %403, %c0_i32_191 : i32
    scf.if %404 {
      %c0_192 = arith.constant 0 : index
      %c0_193 = arith.constant 0 : index
      %405 = vector.load %arg12[%c0_192, %c0_193] : memref<4x32xf32, #tpu.memory_space<vmem>>, vector<4x32xf32>
      %c0_194 = arith.constant 0 : index
      %c0_195 = arith.constant 0 : index
      %406 = vector.load %arg9[%c0_194, %c0_195] : memref<4x32xf32, #tpu.memory_space<vmem>>, vector<4x32xf32>
      tpu.vector_store %arg9[%c0_194, %c0_195], %405 {strides = array<i32>} : memref<4x32xf32, #tpu.memory_space<vmem>>, vector<4x32xf32>,
      %c0_196 = arith.constant 0 : index
      %c0_197 = arith.constant 0 : index
      %407 = vector.load %arg13[%c0_196, %c0_197] : memref<4x32xf32, #tpu.memory_space<vmem>>, vector<4x32xf32>
      %c0_198 = arith.constant 0 : index
      %c0_199 = arith.constant 0 : index
      %408 = vector.load %arg10[%c0_198, %c0_199] : memref<4x32xf32, #tpu.memory_space<vmem>>, vector<4x32xf32>
      tpu.vector_store %arg10[%c0_198, %c0_199], %407 {strides = array<i32>} : memref<4x32xf32, #tpu.memory_space<vmem>>, vector<4x32xf32>,
    } else {
    }
    return
  }
  func.func @transform_0(%arg0: i32, %arg1: i32) -> (i32, i32, i32) {
    %c0_i32 = arith.constant 0 : i32
    %c0_i32_0 = arith.constant 0 : i32
    return %arg1, %arg0, %c0_i32 : i32, i32, i32
  }
  func.func @transform_1(%arg0: i32, %arg1: i32) -> (i32, i32) {
    %c0_i32 = arith.constant 0 : i32
    %c0_i32_0 = arith.constant 0 : i32
    %c0_i32_1 = arith.constant 0 : i32
    return %c0_i32, %c0_i32_0 : i32, i32
  }
  func.func @transform_2(%arg0: i32, %arg1: i32) -> (i32, i32) {
    %c0_i32 = arith.constant 0 : i32
    %c0_i32_0 = arith.constant 0 : i32
    %c0_i32_1 = arith.constant 0 : i32
    return %c0_i32, %c0_i32_0 : i32, i32
  }
  func.func @transform_3(%arg0: i32, %arg1: i32) -> (i32, i32) {
    %c0_i32 = arith.constant 0 : i32
    %c0_i32_0 = arith.constant 0 : i32
    %c0_i32_1 = arith.constant 0 : i32
    return %c0_i32, %c0_i32_0 : i32, i32
  }
  func.func @transform_4(%arg0: i32, %arg1: i32) -> (i32, i32) {
    %c0_i32 = arith.constant 0 : i32
    %c0_i32_0 = arith.constant 0 : i32
    return %arg0, %c0_i32 : i32, i32
  }
  func.func @transform_5(%arg0: i32, %arg1: i32) -> (i32, i32) {
    %c0_i32 = arith.constant 0 : i32
    %c0_i32_0 = arith.constant 0 : i32
    return %arg0, %c0_i32 : i32, i32
  }
  func.func @transform_6(%arg0: i32, %arg1: i32) -> (i32, i32, i32) {
    %c0_i32 = arith.constant 0 : i32
    %c0_i32_0 = arith.constant 0 : i32
    return %arg1, %arg0, %c0_i32 : i32, i32, i32
  }
  func.func @transform_7(%arg0: i32, %arg1: i32) -> (i32, i32) {
    %c0_i32 = arith.constant 0 : i32
    %c0_i32_0 = arith.constant 0 : i32
    return %arg0, %c0_i32 : i32, i32
  }
  func.func @transform_8(%arg0: i32, %arg1: i32) -> (i32, i32) {
    %c0_i32 = arith.constant 0 : i32
    %c0_i32_0 = arith.constant 0 : i32
    return %arg0, %c0_i32 : i32, i32
  }
}

module attributes {stable_mosaic.version = 11 : i64} {
  func.func @kernel(%arg0: i32, %arg1: i32, %arg2: memref<8x4x32xbf16, #tpu.memory_space<vmem>>, %arg3: memref<32x128xbf16, #tpu.memory_space<vmem>>, %arg4: memref<32x128xbf16, #tpu.memory_space<vmem>>, %arg5: memref<1x128xf32, #tpu.memory_space<vmem>>, %arg6: memref<4x32xf32, #tpu.memory_space<vmem>>, %arg7: memref<4x32xf32, #tpu.memory_space<vmem>>, %arg8: memref<8x4x32xf32, #tpu.memory_space<vmem>>, %arg9: memref<4x32xf32, #tpu.memory_space<vmem>>, %arg10: memref<4x32xf32, #tpu.memory_space<vmem>>, %arg11: memref<8x4x128xf32, #tpu.memory_space<vmem>>, %arg12: memref<4x32xf32, #tpu.memory_space<vmem>>, %arg13: memref<4x32xf32, #tpu.memory_space<vmem>>) attributes {dimension_semantics = [#tpu.dimension_semantics<parallel>, #tpu.dimension_semantics<arbitrary>], iteration_bounds = array<i64: 1, 1>, scalar_prefetch = 0 : i64, scratch_operands = 3 : i64, tpu.core_type = #tpu.core_type<tc>, window_params = [{transform_indices = @transform_0, window_bounds = array<i64: 8, 4, 32>}, {pipeline_mode = #tpu.pipeline_mode<synchronous>, transform_indices = @transform_1, window_bounds = array<i64: 32, 128>}, {pipeline_mode = #tpu.pipeline_mode<synchronous>, transform_indices = @transform_2, window_bounds = array<i64: 32, 128>}, {pipeline_mode = #tpu.pipeline_mode<synchronous>, transform_indices = @transform_3, window_bounds = array<i64: 1, 128>}, {transform_indices = @transform_4, window_bounds = array<i64: 4, 32>}, {transform_indices = @transform_5, window_bounds = array<i64: 4, 32>}, {transform_indices = @transform_6, window_bounds = array<i64: 8, 4, 32>}, {transform_indices = @transform_7, window_bounds = array<i64: 4, 32>}, {transform_indices = @transform_8, window_bounds = array<i64: 4, 32>}]} {
    %c0_i32 = arith.constant 0 : i32
    %0 = arith.cmpi eq, %arg1, %c0_i32 : i32
    %1 = arith.extui %0 : i1 to i32
    %c0_i32_0 = arith.constant 0 : i32
    %2 = arith.cmpi ne, %1, %c0_i32_0 : i32
    scf.if %2 {
      %c0_192 = arith.constant 0 : index
      %c0_193 = arith.constant 0 : index
      %389 = vector.load %arg6[%c0_192, %c0_193] : memref<4x32xf32, #tpu.memory_space<vmem>>, vector<4x32xf32>
      %c0_194 = arith.constant 0 : index
      %c0_195 = arith.constant 0 : index
      %390 = vector.load %arg12[%c0_194, %c0_195] : memref<4x32xf32, #tpu.memory_space<vmem>>, vector<4x32xf32>
      tpu.vector_store %arg12[%c0_194, %c0_195], %389 {strides = array<i32>} : memref<4x32xf32, #tpu.memory_space<vmem>>, vector<4x32xf32>,
      %c0_196 = arith.constant 0 : index
      %c0_197 = arith.constant 0 : index
      %391 = vector.load %arg7[%c0_196, %c0_197] : memref<4x32xf32, #tpu.memory_space<vmem>>, vector<4x32xf32>
      %c0_198 = arith.constant 0 : index
      %c0_199 = arith.constant 0 : index
      %392 = vector.load %arg13[%c0_198, %c0_199] : memref<4x32xf32, #tpu.memory_space<vmem>>, vector<4x32xf32>
      tpu.vector_store %arg13[%c0_198, %c0_199], %391 {strides = array<i32>} : memref<4x32xf32, #tpu.memory_space<vmem>>, vector<4x32xf32>,
    } else {
    }
    %c0 = arith.constant 0 : index
    %c0_1 = arith.constant 0 : index
    %3 = vector.load %arg3[%c0, %c0_1] : memref<32x128xbf16, #tpu.memory_space<vmem>>, vector<32x128xbf16>
    %c0_2 = arith.constant 0 : index
    %c0_3 = arith.constant 0 : index
    %4 = vector.load %arg4[%c0_2, %c0_3] : memref<32x128xbf16, #tpu.memory_space<vmem>>, vector<32x128xbf16>
    %c0_4 = arith.constant 0 : index
    %c0_5 = arith.constant 0 : index
    %5 = vector.load %arg5[%c0_4, %c0_5] : memref<1x128xf32, #tpu.memory_space<vmem>>, vector<1x128xf32>
    %c0_6 = arith.constant 0 : index
    %c0_7 = arith.constant 0 : index
    %c0_8 = arith.constant 0 : index
    %6 = vector.load %arg2[%c0_6, %c0_7, %c0_8] : memref<8x4x32xbf16, #tpu.memory_space<vmem>>, vector<1x4x32xbf16>
    %7 = vector.shape_cast %6 : vector<1x4x32xbf16> to vector<4x32xbf16>
    %cst = arith.constant dense<0.000000e+00> : vector<4x128xf32>
    %8 = tpu.matmul %7, %3, %cst {dimension_numbers = #tpu.dot_dimension_numbers<[1], [0], [0], [1], [0, 0, 1, 1], [], []>} : vector<4x32xbf16>, vector<32x128xbf16>, vector<4x128xf32> -> vector<4x128xf32>
    %9 = vector.broadcast %5 : vector<1x128xf32> to vector<4x128xf32>
    %10 = arith.addf %8, %9 : vector<4x128xf32>
    %c0_9 = arith.constant 0 : index
    %c0_10 = arith.constant 0 : index
    %c0_11 = arith.constant 0 : index
    %11 = vector.load %arg11[%c0_9, %c0_10, %c0_11] : memref<8x4x128xf32, #tpu.memory_space<vmem>>, vector<1x4x128xf32>
    %12 = vector.shape_cast %11 : vector<1x4x128xf32> to vector<4x128xf32>
    %13 = vector.shape_cast %10 : vector<4x128xf32> to vector<1x4x128xf32>
    tpu.vector_store %arg11[%c0_9, %c0_10, %c0_11], %13 {strides = array<i32>} : memref<8x4x128xf32, #tpu.memory_space<vmem>>, vector<1x4x128xf32>,
    %c1 = arith.constant 1 : index
    %c0_12 = arith.constant 0 : index
    %c0_13 = arith.constant 0 : index
    %14 = vector.load %arg2[%c1, %c0_12, %c0_13] : memref<8x4x32xbf16, #tpu.memory_space<vmem>>, vector<1x4x32xbf16>
    %15 = vector.shape_cast %14 : vector<1x4x32xbf16> to vector<4x32xbf16>
    %cst_14 = arith.constant dense<0.000000e+00> : vector<4x128xf32>
    %16 = tpu.matmul %15, %3, %cst_14 {dimension_numbers = #tpu.dot_dimension_numbers<[1], [0], [0], [1], [0, 0, 1, 1], [], []>} : vector<4x32xbf16>, vector<32x128xbf16>, vector<4x128xf32> -> vector<4x128xf32>
    %17 = vector.broadcast %5 : vector<1x128xf32> to vector<4x128xf32>
    %18 = arith.addf %16, %17 : vector<4x128xf32>
    %c1_15 = arith.constant 1 : index
    %c0_16 = arith.constant 0 : index
    %c0_17 = arith.constant 0 : index
    %19 = vector.load %arg11[%c1_15, %c0_16, %c0_17] : memref<8x4x128xf32, #tpu.memory_space<vmem>>, vector<1x4x128xf32>
    %20 = vector.shape_cast %19 : vector<1x4x128xf32> to vector<4x128xf32>
    %21 = vector.shape_cast %18 : vector<4x128xf32> to vector<1x4x128xf32>
    tpu.vector_store %arg11[%c1_15, %c0_16, %c0_17], %21 {strides = array<i32>} : memref<8x4x128xf32, #tpu.memory_space<vmem>>, vector<1x4x128xf32>,
    %c2 = arith.constant 2 : index
    %c0_18 = arith.constant 0 : index
    %c0_19 = arith.constant 0 : index
    %22 = vector.load %arg2[%c2, %c0_18, %c0_19] : memref<8x4x32xbf16, #tpu.memory_space<vmem>>, vector<1x4x32xbf16>
    %23 = vector.shape_cast %22 : vector<1x4x32xbf16> to vector<4x32xbf16>
    %cst_20 = arith.constant dense<0.000000e+00> : vector<4x128xf32>
    %24 = tpu.matmul %23, %3, %cst_20 {dimension_numbers = #tpu.dot_dimension_numbers<[1], [0], [0], [1], [0, 0, 1, 1], [], []>} : vector<4x32xbf16>, vector<32x128xbf16>, vector<4x128xf32> -> vector<4x128xf32>
    %25 = vector.broadcast %5 : vector<1x128xf32> to vector<4x128xf32>
    %26 = arith.addf %24, %25 : vector<4x128xf32>
    %c2_21 = arith.constant 2 : index
    %c0_22 = arith.constant 0 : index
    %c0_23 = arith.constant 0 : index
    %27 = vector.load %arg11[%c2_21, %c0_22, %c0_23] : memref<8x4x128xf32, #tpu.memory_space<vmem>>, vector<1x4x128xf32>
    %28 = vector.shape_cast %27 : vector<1x4x128xf32> to vector<4x128xf32>
    %29 = vector.shape_cast %26 : vector<4x128xf32> to vector<1x4x128xf32>
    tpu.vector_store %arg11[%c2_21, %c0_22, %c0_23], %29 {strides = array<i32>} : memref<8x4x128xf32, #tpu.memory_space<vmem>>, vector<1x4x128xf32>,
    %c3 = arith.constant 3 : index
    %c0_24 = arith.constant 0 : index
    %c0_25 = arith.constant 0 : index
    %30 = vector.load %arg2[%c3, %c0_24, %c0_25] : memref<8x4x32xbf16, #tpu.memory_space<vmem>>, vector<1x4x32xbf16>
    %31 = vector.shape_cast %30 : vector<1x4x32xbf16> to vector<4x32xbf16>
    %cst_26 = arith.constant dense<0.000000e+00> : vector<4x128xf32>
    %32 = tpu.matmul %31, %3, %cst_26 {dimension_numbers = #tpu.dot_dimension_numbers<[1], [0], [0], [1], [0, 0, 1, 1], [], []>} : vector<4x32xbf16>, vector<32x128xbf16>, vector<4x128xf32> -> vector<4x128xf32>
    %33 = vector.broadcast %5 : vector<1x128xf32> to vector<4x128xf32>
    %34 = arith.addf %32, %33 : vector<4x128xf32>
    %c3_27 = arith.constant 3 : index
    %c0_28 = arith.constant 0 : index
    %c0_29 = arith.constant 0 : index
    %35 = vector.load %arg11[%c3_27, %c0_28, %c0_29] : memref<8x4x128xf32, #tpu.memory_space<vmem>>, vector<1x4x128xf32>
    %36 = vector.shape_cast %35 : vector<1x4x128xf32> to vector<4x128xf32>
    %37 = vector.shape_cast %34 : vector<4x128xf32> to vector<1x4x128xf32>
    tpu.vector_store %arg11[%c3_27, %c0_28, %c0_29], %37 {strides = array<i32>} : memref<8x4x128xf32, #tpu.memory_space<vmem>>, vector<1x4x128xf32>,
    %c4 = arith.constant 4 : index
    %c0_30 = arith.constant 0 : index
    %c0_31 = arith.constant 0 : index
    %38 = vector.load %arg2[%c4, %c0_30, %c0_31] : memref<8x4x32xbf16, #tpu.memory_space<vmem>>, vector<1x4x32xbf16>
    %39 = vector.shape_cast %38 : vector<1x4x32xbf16> to vector<4x32xbf16>
    %cst_32 = arith.constant dense<0.000000e+00> : vector<4x128xf32>
    %40 = tpu.matmul %39, %3, %cst_32 {dimension_numbers = #tpu.dot_dimension_numbers<[1], [0], [0], [1], [0, 0, 1, 1], [], []>} : vector<4x32xbf16>, vector<32x128xbf16>, vector<4x128xf32> -> vector<4x128xf32>
    %41 = vector.broadcast %5 : vector<1x128xf32> to vector<4x128xf32>
    %42 = arith.addf %40, %41 : vector<4x128xf32>
    %c4_33 = arith.constant 4 : index
    %c0_34 = arith.constant 0 : index
    %c0_35 = arith.constant 0 : index
    %43 = vector.load %arg11[%c4_33, %c0_34, %c0_35] : memref<8x4x128xf32, #tpu.memory_space<vmem>>, vector<1x4x128xf32>
    %44 = vector.shape_cast %43 : vector<1x4x128xf32> to vector<4x128xf32>
    %45 = vector.shape_cast %42 : vector<4x128xf32> to vector<1x4x128xf32>
    tpu.vector_store %arg11[%c4_33, %c0_34, %c0_35], %45 {strides = array<i32>} : memref<8x4x128xf32, #tpu.memory_space<vmem>>, vector<1x4x128xf32>,
    %c5 = arith.constant 5 : index
    %c0_36 = arith.constant 0 : index
    %c0_37 = arith.constant 0 : index
    %46 = vector.load %arg2[%c5, %c0_36, %c0_37] : memref<8x4x32xbf16, #tpu.memory_space<vmem>>, vector<1x4x32xbf16>
    %47 = vector.shape_cast %46 : vector<1x4x32xbf16> to vector<4x32xbf16>
    %cst_38 = arith.constant dense<0.000000e+00> : vector<4x128xf32>
    %48 = tpu.matmul %47, %3, %cst_38 {dimension_numbers = #tpu.dot_dimension_numbers<[1], [0], [0], [1], [0, 0, 1, 1], [], []>} : vector<4x32xbf16>, vector<32x128xbf16>, vector<4x128xf32> -> vector<4x128xf32>
    %49 = vector.broadcast %5 : vector<1x128xf32> to vector<4x128xf32>
    %50 = arith.addf %48, %49 : vector<4x128xf32>
    %c5_39 = arith.constant 5 : index
    %c0_40 = arith.constant 0 : index
    %c0_41 = arith.constant 0 : index
    %51 = vector.load %arg11[%c5_39, %c0_40, %c0_41] : memref<8x4x128xf32, #tpu.memory_space<vmem>>, vector<1x4x128xf32>
    %52 = vector.shape_cast %51 : vector<1x4x128xf32> to vector<4x128xf32>
    %53 = vector.shape_cast %50 : vector<4x128xf32> to vector<1x4x128xf32>
    tpu.vector_store %arg11[%c5_39, %c0_40, %c0_41], %53 {strides = array<i32>} : memref<8x4x128xf32, #tpu.memory_space<vmem>>, vector<1x4x128xf32>,
    %c6 = arith.constant 6 : index
    %c0_42 = arith.constant 0 : index
    %c0_43 = arith.constant 0 : index
    %54 = vector.load %arg2[%c6, %c0_42, %c0_43] : memref<8x4x32xbf16, #tpu.memory_space<vmem>>, vector<1x4x32xbf16>
    %55 = vector.shape_cast %54 : vector<1x4x32xbf16> to vector<4x32xbf16>
    %cst_44 = arith.constant dense<0.000000e+00> : vector<4x128xf32>
    %56 = tpu.matmul %55, %3, %cst_44 {dimension_numbers = #tpu.dot_dimension_numbers<[1], [0], [0], [1], [0, 0, 1, 1], [], []>} : vector<4x32xbf16>, vector<32x128xbf16>, vector<4x128xf32> -> vector<4x128xf32>
    %57 = vector.broadcast %5 : vector<1x128xf32> to vector<4x128xf32>
    %58 = arith.addf %56, %57 : vector<4x128xf32>
    %c6_45 = arith.constant 6 : index
    %c0_46 = arith.constant 0 : index
    %c0_47 = arith.constant 0 : index
    %59 = vector.load %arg11[%c6_45, %c0_46, %c0_47] : memref<8x4x128xf32, #tpu.memory_space<vmem>>, vector<1x4x128xf32>
    %60 = vector.shape_cast %59 : vector<1x4x128xf32> to vector<4x128xf32>
    %61 = vector.shape_cast %58 : vector<4x128xf32> to vector<1x4x128xf32>
    tpu.vector_store %arg11[%c6_45, %c0_46, %c0_47], %61 {strides = array<i32>} : memref<8x4x128xf32, #tpu.memory_space<vmem>>, vector<1x4x128xf32>,
    %c7 = arith.constant 7 : index
    %c0_48 = arith.constant 0 : index
    %c0_49 = arith.constant 0 : index
    %62 = vector.load %arg2[%c7, %c0_48, %c0_49] : memref<8x4x32xbf16, #tpu.memory_space<vmem>>, vector<1x4x32xbf16>
    %63 = vector.shape_cast %62 : vector<1x4x32xbf16> to vector<4x32xbf16>
    %cst_50 = arith.constant dense<0.000000e+00> : vector<4x128xf32>
    %64 = tpu.matmul %63, %3, %cst_50 {dimension_numbers = #tpu.dot_dimension_numbers<[1], [0], [0], [1], [0, 0, 1, 1], [], []>} : vector<4x32xbf16>, vector<32x128xbf16>, vector<4x128xf32> -> vector<4x128xf32>
    %65 = vector.broadcast %5 : vector<1x128xf32> to vector<4x128xf32>
    %66 = arith.addf %64, %65 : vector<4x128xf32>
    %c7_51 = arith.constant 7 : index
    %c0_52 = arith.constant 0 : index
    %c0_53 = arith.constant 0 : index
    %67 = vector.load %arg11[%c7_51, %c0_52, %c0_53] : memref<8x4x128xf32, #tpu.memory_space<vmem>>, vector<1x4x128xf32>
    %68 = vector.shape_cast %67 : vector<1x4x128xf32> to vector<4x128xf32>
    %69 = vector.shape_cast %66 : vector<4x128xf32> to vector<1x4x128xf32>
    tpu.vector_store %arg11[%c7_51, %c0_52, %c0_53], %69 {strides = array<i32>} : memref<8x4x128xf32, #tpu.memory_space<vmem>>, vector<1x4x128xf32>,
    %c0_54 = arith.constant 0 : index
    %c0_55 = arith.constant 0 : index
    %70 = vector.load %arg12[%c0_54, %c0_55] : memref<4x32xf32, #tpu.memory_space<vmem>>, vector<4x32xf32>
    %c0_56 = arith.constant 0 : index
    %c0_57 = arith.constant 0 : index
    %71 = vector.load %arg13[%c0_56, %c0_57] : memref<4x32xf32, #tpu.memory_space<vmem>>, vector<4x32xf32>
    %c0_58 = arith.constant 0 : index
    %c0_59 = arith.constant 0 : index
    %c0_60 = arith.constant 0 : index
    %72 = vector.load %arg11[%c0_58, %c0_59, %c0_60] : memref<8x4x128xf32, #tpu.memory_space<vmem>>, vector<1x4x128xf32>
    %73 = vector.shape_cast %72 : vector<1x4x128xf32> to vector<4x128xf32>
    %74 = arith.truncf %70 : vector<4x32xf32> to vector<4x32xbf16>
    %cst_61 = arith.constant dense<0.000000e+00> : vector<4x128xf32>
    %75 = tpu.matmul %74, %4, %cst_61 {dimension_numbers = #tpu.dot_dimension_numbers<[1], [0], [0], [1], [0, 0, 1, 1], [], []>} : vector<4x32xbf16>, vector<32x128xbf16>, vector<4x128xf32> -> vector<4x128xf32>
    %76 = arith.addf %73, %75 : vector<4x128xf32>
    %77 = vector.extract_strided_slice %76 {offsets = [0, 0], sizes = [4, 32], strides = [1, 1]} : vector<4x128xf32> to vector<4x32xf32>
    %cst_62 = arith.constant 5.000000e-01 : f32
    %78 = vector.broadcast %cst_62 : f32 to vector<4x32xf32>
    %79 = arith.mulf %78, %77 : vector<4x32xf32>
    %80 = math.tanh %79 : vector<4x32xf32>
    %cst_63 = arith.constant 1.000000e+00 : f32
    %81 = vector.broadcast %cst_63 : f32 to vector<4x32xf32>
    %82 = arith.addf %80, %81 : vector<4x32xf32>
    %cst_64 = arith.constant 5.000000e-01 : f32
    %83 = vector.broadcast %cst_64 : f32 to vector<4x32xf32>
    %84 = arith.mulf %83, %82 : vector<4x32xf32>
    %85 = vector.extract_strided_slice %76 {offsets = [0, 32], sizes = [4, 32], strides = [1, 1]} : vector<4x128xf32> to vector<4x32xf32>
    %cst_65 = arith.constant 5.000000e-01 : f32
    %86 = vector.broadcast %cst_65 : f32 to vector<4x32xf32>
    %87 = arith.mulf %86, %85 : vector<4x32xf32>
    %88 = math.tanh %87 : vector<4x32xf32>
    %cst_66 = arith.constant 1.000000e+00 : f32
    %89 = vector.broadcast %cst_66 : f32 to vector<4x32xf32>
    %90 = arith.addf %88, %89 : vector<4x32xf32>
    %cst_67 = arith.constant 5.000000e-01 : f32
    %91 = vector.broadcast %cst_67 : f32 to vector<4x32xf32>
    %92 = arith.mulf %91, %90 : vector<4x32xf32>
    %93 = vector.extract_strided_slice %76 {offsets = [0, 64], sizes = [4, 32], strides = [1, 1]} : vector<4x128xf32> to vector<4x32xf32>
    %94 = math.tanh %93 : vector<4x32xf32>
    %95 = vector.extract_strided_slice %76 {offsets = [0, 96], sizes = [4, 32], strides = [1, 1]} : vector<4x128xf32> to vector<4x32xf32>
    %cst_68 = arith.constant 5.000000e-01 : f32
    %96 = vector.broadcast %cst_68 : f32 to vector<4x32xf32>
    %97 = arith.mulf %96, %95 : vector<4x32xf32>
    %98 = math.tanh %97 : vector<4x32xf32>
    %cst_69 = arith.constant 1.000000e+00 : f32
    %99 = vector.broadcast %cst_69 : f32 to vector<4x32xf32>
    %100 = arith.addf %98, %99 : vector<4x32xf32>
    %cst_70 = arith.constant 5.000000e-01 : f32
    %101 = vector.broadcast %cst_70 : f32 to vector<4x32xf32>
    %102 = arith.mulf %101, %100 : vector<4x32xf32>
    %103 = arith.mulf %92, %71 : vector<4x32xf32>
    %104 = arith.mulf %84, %94 : vector<4x32xf32>
    %105 = arith.addf %103, %104 : vector<4x32xf32>
    %106 = math.tanh %105 : vector<4x32xf32>
    %107 = arith.mulf %102, %106 : vector<4x32xf32>
    %c0_71 = arith.constant 0 : index
    %c0_72 = arith.constant 0 : index
    %c0_73 = arith.constant 0 : index
    %108 = vector.load %arg8[%c0_71, %c0_72, %c0_73] : memref<8x4x32xf32, #tpu.memory_space<vmem>>, vector<1x4x32xf32>
    %109 = vector.shape_cast %108 : vector<1x4x32xf32> to vector<4x32xf32>
    %110 = vector.shape_cast %107 : vector<4x32xf32> to vector<1x4x32xf32>
    tpu.vector_store %arg8[%c0_71, %c0_72, %c0_73], %110 {strides = array<i32>} : memref<8x4x32xf32, #tpu.memory_space<vmem>>, vector<1x4x32xf32>,
    %c1_74 = arith.constant 1 : index
    %c0_75 = arith.constant 0 : index
    %c0_76 = arith.constant 0 : index
    %111 = vector.load %arg11[%c1_74, %c0_75, %c0_76] : memref<8x4x128xf32, #tpu.memory_space<vmem>>, vector<1x4x128xf32>
    %112 = vector.shape_cast %111 : vector<1x4x128xf32> to vector<4x128xf32>
    %113 = arith.truncf %107 : vector<4x32xf32> to vector<4x32xbf16>
    %cst_77 = arith.constant dense<0.000000e+00> : vector<4x128xf32>
    %114 = tpu.matmul %113, %4, %cst_77 {dimension_numbers = #tpu.dot_dimension_numbers<[1], [0], [0], [1], [0, 0, 1, 1], [], []>} : vector<4x32xbf16>, vector<32x128xbf16>, vector<4x128xf32> -> vector<4x128xf32>
    %115 = arith.addf %112, %114 : vector<4x128xf32>
    %116 = vector.extract_strided_slice %115 {offsets = [0, 0], sizes = [4, 32], strides = [1, 1]} : vector<4x128xf32> to vector<4x32xf32>
    %cst_78 = arith.constant 5.000000e-01 : f32
    %117 = vector.broadcast %cst_78 : f32 to vector<4x32xf32>
    %118 = arith.mulf %117, %116 : vector<4x32xf32>
    %119 = math.tanh %118 : vector<4x32xf32>
    %cst_79 = arith.constant 1.000000e+00 : f32
    %120 = vector.broadcast %cst_79 : f32 to vector<4x32xf32>
    %121 = arith.addf %119, %120 : vector<4x32xf32>
    %cst_80 = arith.constant 5.000000e-01 : f32
    %122 = vector.broadcast %cst_80 : f32 to vector<4x32xf32>
    %123 = arith.mulf %122, %121 : vector<4x32xf32>
    %124 = vector.extract_strided_slice %115 {offsets = [0, 32], sizes = [4, 32], strides = [1, 1]} : vector<4x128xf32> to vector<4x32xf32>
    %cst_81 = arith.constant 5.000000e-01 : f32
    %125 = vector.broadcast %cst_81 : f32 to vector<4x32xf32>
    %126 = arith.mulf %125, %124 : vector<4x32xf32>
    %127 = math.tanh %126 : vector<4x32xf32>
    %cst_82 = arith.constant 1.000000e+00 : f32
    %128 = vector.broadcast %cst_82 : f32 to vector<4x32xf32>
    %129 = arith.addf %127, %128 : vector<4x32xf32>
    %cst_83 = arith.constant 5.000000e-01 : f32
    %130 = vector.broadcast %cst_83 : f32 to vector<4x32xf32>
    %131 = arith.mulf %130, %129 : vector<4x32xf32>
    %132 = vector.extract_strided_slice %115 {offsets = [0, 64], sizes = [4, 32], strides = [1, 1]} : vector<4x128xf32> to vector<4x32xf32>
    %133 = math.tanh %132 : vector<4x32xf32>
    %134 = vector.extract_strided_slice %115 {offsets = [0, 96], sizes = [4, 32], strides = [1, 1]} : vector<4x128xf32> to vector<4x32xf32>
    %cst_84 = arith.constant 5.000000e-01 : f32
    %135 = vector.broadcast %cst_84 : f32 to vector<4x32xf32>
    %136 = arith.mulf %135, %134 : vector<4x32xf32>
    %137 = math.tanh %136 : vector<4x32xf32>
    %cst_85 = arith.constant 1.000000e+00 : f32
    %138 = vector.broadcast %cst_85 : f32 to vector<4x32xf32>
    %139 = arith.addf %137, %138 : vector<4x32xf32>
    %cst_86 = arith.constant 5.000000e-01 : f32
    %140 = vector.broadcast %cst_86 : f32 to vector<4x32xf32>
    %141 = arith.mulf %140, %139 : vector<4x32xf32>
    %142 = arith.mulf %131, %105 : vector<4x32xf32>
    %143 = arith.mulf %123, %133 : vector<4x32xf32>
    %144 = arith.addf %142, %143 : vector<4x32xf32>
    %145 = math.tanh %144 : vector<4x32xf32>
    %146 = arith.mulf %141, %145 : vector<4x32xf32>
    %c1_87 = arith.constant 1 : index
    %c0_88 = arith.constant 0 : index
    %c0_89 = arith.constant 0 : index
    %147 = vector.load %arg8[%c1_87, %c0_88, %c0_89] : memref<8x4x32xf32, #tpu.memory_space<vmem>>, vector<1x4x32xf32>
    %148 = vector.shape_cast %147 : vector<1x4x32xf32> to vector<4x32xf32>
    %149 = vector.shape_cast %146 : vector<4x32xf32> to vector<1x4x32xf32>
    tpu.vector_store %arg8[%c1_87, %c0_88, %c0_89], %149 {strides = array<i32>} : memref<8x4x32xf32, #tpu.memory_space<vmem>>, vector<1x4x32xf32>,
    %c2_90 = arith.constant 2 : index
    %c0_91 = arith.constant 0 : index
    %c0_92 = arith.constant 0 : index
    %150 = vector.load %arg11[%c2_90, %c0_91, %c0_92] : memref<8x4x128xf32, #tpu.memory_space<vmem>>, vector<1x4x128xf32>
    %151 = vector.shape_cast %150 : vector<1x4x128xf32> to vector<4x128xf32>
    %152 = arith.truncf %146 : vector<4x32xf32> to vector<4x32xbf16>
    %cst_93 = arith.constant dense<0.000000e+00> : vector<4x128xf32>
    %153 = tpu.matmul %152, %4, %cst_93 {dimension_numbers = #tpu.dot_dimension_numbers<[1], [0], [0], [1], [0, 0, 1, 1], [], []>} : vector<4x32xbf16>, vector<32x128xbf16>, vector<4x128xf32> -> vector<4x128xf32>
    %154 = arith.addf %151, %153 : vector<4x128xf32>
    %155 = vector.extract_strided_slice %154 {offsets = [0, 0], sizes = [4, 32], strides = [1, 1]} : vector<4x128xf32> to vector<4x32xf32>
    %cst_94 = arith.constant 5.000000e-01 : f32
    %156 = vector.broadcast %cst_94 : f32 to vector<4x32xf32>
    %157 = arith.mulf %156, %155 : vector<4x32xf32>
    %158 = math.tanh %157 : vector<4x32xf32>
    %cst_95 = arith.constant 1.000000e+00 : f32
    %159 = vector.broadcast %cst_95 : f32 to vector<4x32xf32>
    %160 = arith.addf %158, %159 : vector<4x32xf32>
    %cst_96 = arith.constant 5.000000e-01 : f32
    %161 = vector.broadcast %cst_96 : f32 to vector<4x32xf32>
    %162 = arith.mulf %161, %160 : vector<4x32xf32>
    %163 = vector.extract_strided_slice %154 {offsets = [0, 32], sizes = [4, 32], strides = [1, 1]} : vector<4x128xf32> to vector<4x32xf32>
    %cst_97 = arith.constant 5.000000e-01 : f32
    %164 = vector.broadcast %cst_97 : f32 to vector<4x32xf32>
    %165 = arith.mulf %164, %163 : vector<4x32xf32>
    %166 = math.tanh %165 : vector<4x32xf32>
    %cst_98 = arith.constant 1.000000e+00 : f32
    %167 = vector.broadcast %cst_98 : f32 to vector<4x32xf32>
    %168 = arith.addf %166, %167 : vector<4x32xf32>
    %cst_99 = arith.constant 5.000000e-01 : f32
    %169 = vector.broadcast %cst_99 : f32 to vector<4x32xf32>
    %170 = arith.mulf %169, %168 : vector<4x32xf32>
    %171 = vector.extract_strided_slice %154 {offsets = [0, 64], sizes = [4, 32], strides = [1, 1]} : vector<4x128xf32> to vector<4x32xf32>
    %172 = math.tanh %171 : vector<4x32xf32>
    %173 = vector.extract_strided_slice %154 {offsets = [0, 96], sizes = [4, 32], strides = [1, 1]} : vector<4x128xf32> to vector<4x32xf32>
    %cst_100 = arith.constant 5.000000e-01 : f32
    %174 = vector.broadcast %cst_100 : f32 to vector<4x32xf32>
    %175 = arith.mulf %174, %173 : vector<4x32xf32>
    %176 = math.tanh %175 : vector<4x32xf32>
    %cst_101 = arith.constant 1.000000e+00 : f32
    %177 = vector.broadcast %cst_101 : f32 to vector<4x32xf32>
    %178 = arith.addf %176, %177 : vector<4x32xf32>
    %cst_102 = arith.constant 5.000000e-01 : f32
    %179 = vector.broadcast %cst_102 : f32 to vector<4x32xf32>
    %180 = arith.mulf %179, %178 : vector<4x32xf32>
    %181 = arith.mulf %170, %144 : vector<4x32xf32>
    %182 = arith.mulf %162, %172 : vector<4x32xf32>
    %183 = arith.addf %181, %182 : vector<4x32xf32>
    %184 = math.tanh %183 : vector<4x32xf32>
    %185 = arith.mulf %180, %184 : vector<4x32xf32>
    %c2_103 = arith.constant 2 : index
    %c0_104 = arith.constant 0 : index
    %c0_105 = arith.constant 0 : index
    %186 = vector.load %arg8[%c2_103, %c0_104, %c0_105] : memref<8x4x32xf32, #tpu.memory_space<vmem>>, vector<1x4x32xf32>
    %187 = vector.shape_cast %186 : vector<1x4x32xf32> to vector<4x32xf32>
    %188 = vector.shape_cast %185 : vector<4x32xf32> to vector<1x4x32xf32>
    tpu.vector_store %arg8[%c2_103, %c0_104, %c0_105], %188 {strides = array<i32>} : memref<8x4x32xf32, #tpu.memory_space<vmem>>, vector<1x4x32xf32>,
    %c3_106 = arith.constant 3 : index
    %c0_107 = arith.constant 0 : index
    %c0_108 = arith.constant 0 : index
    %189 = vector.load %arg11[%c3_106, %c0_107, %c0_108] : memref<8x4x128xf32, #tpu.memory_space<vmem>>, vector<1x4x128xf32>
    %190 = vector.shape_cast %189 : vector<1x4x128xf32> to vector<4x128xf32>
    %191 = arith.truncf %185 : vector<4x32xf32> to vector<4x32xbf16>
    %cst_109 = arith.constant dense<0.000000e+00> : vector<4x128xf32>
    %192 = tpu.matmul %191, %4, %cst_109 {dimension_numbers = #tpu.dot_dimension_numbers<[1], [0], [0], [1], [0, 0, 1, 1], [], []>} : vector<4x32xbf16>, vector<32x128xbf16>, vector<4x128xf32> -> vector<4x128xf32>
    %193 = arith.addf %190, %192 : vector<4x128xf32>
    %194 = vector.extract_strided_slice %193 {offsets = [0, 0], sizes = [4, 32], strides = [1, 1]} : vector<4x128xf32> to vector<4x32xf32>
    %cst_110 = arith.constant 5.000000e-01 : f32
    %195 = vector.broadcast %cst_110 : f32 to vector<4x32xf32>
    %196 = arith.mulf %195, %194 : vector<4x32xf32>
    %197 = math.tanh %196 : vector<4x32xf32>
    %cst_111 = arith.constant 1.000000e+00 : f32
    %198 = vector.broadcast %cst_111 : f32 to vector<4x32xf32>
    %199 = arith.addf %197, %198 : vector<4x32xf32>
    %cst_112 = arith.constant 5.000000e-01 : f32
    %200 = vector.broadcast %cst_112 : f32 to vector<4x32xf32>
    %201 = arith.mulf %200, %199 : vector<4x32xf32>
    %202 = vector.extract_strided_slice %193 {offsets = [0, 32], sizes = [4, 32], strides = [1, 1]} : vector<4x128xf32> to vector<4x32xf32>
    %cst_113 = arith.constant 5.000000e-01 : f32
    %203 = vector.broadcast %cst_113 : f32 to vector<4x32xf32>
    %204 = arith.mulf %203, %202 : vector<4x32xf32>
    %205 = math.tanh %204 : vector<4x32xf32>
    %cst_114 = arith.constant 1.000000e+00 : f32
    %206 = vector.broadcast %cst_114 : f32 to vector<4x32xf32>
    %207 = arith.addf %205, %206 : vector<4x32xf32>
    %cst_115 = arith.constant 5.000000e-01 : f32
    %208 = vector.broadcast %cst_115 : f32 to vector<4x32xf32>
    %209 = arith.mulf %208, %207 : vector<4x32xf32>
    %210 = vector.extract_strided_slice %193 {offsets = [0, 64], sizes = [4, 32], strides = [1, 1]} : vector<4x128xf32> to vector<4x32xf32>
    %211 = math.tanh %210 : vector<4x32xf32>
    %212 = vector.extract_strided_slice %193 {offsets = [0, 96], sizes = [4, 32], strides = [1, 1]} : vector<4x128xf32> to vector<4x32xf32>
    %cst_116 = arith.constant 5.000000e-01 : f32
    %213 = vector.broadcast %cst_116 : f32 to vector<4x32xf32>
    %214 = arith.mulf %213, %212 : vector<4x32xf32>
    %215 = math.tanh %214 : vector<4x32xf32>
    %cst_117 = arith.constant 1.000000e+00 : f32
    %216 = vector.broadcast %cst_117 : f32 to vector<4x32xf32>
    %217 = arith.addf %215, %216 : vector<4x32xf32>
    %cst_118 = arith.constant 5.000000e-01 : f32
    %218 = vector.broadcast %cst_118 : f32 to vector<4x32xf32>
    %219 = arith.mulf %218, %217 : vector<4x32xf32>
    %220 = arith.mulf %209, %183 : vector<4x32xf32>
    %221 = arith.mulf %201, %211 : vector<4x32xf32>
    %222 = arith.addf %220, %221 : vector<4x32xf32>
    %223 = math.tanh %222 : vector<4x32xf32>
    %224 = arith.mulf %219, %223 : vector<4x32xf32>
    %c3_119 = arith.constant 3 : index
    %c0_120 = arith.constant 0 : index
    %c0_121 = arith.constant 0 : index
    %225 = vector.load %arg8[%c3_119, %c0_120, %c0_121] : memref<8x4x32xf32, #tpu.memory_space<vmem>>, vector<1x4x32xf32>
    %226 = vector.shape_cast %225 : vector<1x4x32xf32> to vector<4x32xf32>
    %227 = vector.shape_cast %224 : vector<4x32xf32> to vector<1x4x32xf32>
    tpu.vector_store %arg8[%c3_119, %c0_120, %c0_121], %227 {strides = array<i32>} : memref<8x4x32xf32, #tpu.memory_space<vmem>>, vector<1x4x32xf32>,
    %c4_122 = arith.constant 4 : index
    %c0_123 = arith.constant 0 : index
    %c0_124 = arith.constant 0 : index
    %228 = vector.load %arg11[%c4_122, %c0_123, %c0_124] : memref<8x4x128xf32, #tpu.memory_space<vmem>>, vector<1x4x128xf32>
    %229 = vector.shape_cast %228 : vector<1x4x128xf32> to vector<4x128xf32>
    %230 = arith.truncf %224 : vector<4x32xf32> to vector<4x32xbf16>
    %cst_125 = arith.constant dense<0.000000e+00> : vector<4x128xf32>
    %231 = tpu.matmul %230, %4, %cst_125 {dimension_numbers = #tpu.dot_dimension_numbers<[1], [0], [0], [1], [0, 0, 1, 1], [], []>} : vector<4x32xbf16>, vector<32x128xbf16>, vector<4x128xf32> -> vector<4x128xf32>
    %232 = arith.addf %229, %231 : vector<4x128xf32>
    %233 = vector.extract_strided_slice %232 {offsets = [0, 0], sizes = [4, 32], strides = [1, 1]} : vector<4x128xf32> to vector<4x32xf32>
    %cst_126 = arith.constant 5.000000e-01 : f32
    %234 = vector.broadcast %cst_126 : f32 to vector<4x32xf32>
    %235 = arith.mulf %234, %233 : vector<4x32xf32>
    %236 = math.tanh %235 : vector<4x32xf32>
    %cst_127 = arith.constant 1.000000e+00 : f32
    %237 = vector.broadcast %cst_127 : f32 to vector<4x32xf32>
    %238 = arith.addf %236, %237 : vector<4x32xf32>
    %cst_128 = arith.constant 5.000000e-01 : f32
    %239 = vector.broadcast %cst_128 : f32 to vector<4x32xf32>
    %240 = arith.mulf %239, %238 : vector<4x32xf32>
    %241 = vector.extract_strided_slice %232 {offsets = [0, 32], sizes = [4, 32], strides = [1, 1]} : vector<4x128xf32> to vector<4x32xf32>
    %cst_129 = arith.constant 5.000000e-01 : f32
    %242 = vector.broadcast %cst_129 : f32 to vector<4x32xf32>
    %243 = arith.mulf %242, %241 : vector<4x32xf32>
    %244 = math.tanh %243 : vector<4x32xf32>
    %cst_130 = arith.constant 1.000000e+00 : f32
    %245 = vector.broadcast %cst_130 : f32 to vector<4x32xf32>
    %246 = arith.addf %244, %245 : vector<4x32xf32>
    %cst_131 = arith.constant 5.000000e-01 : f32
    %247 = vector.broadcast %cst_131 : f32 to vector<4x32xf32>
    %248 = arith.mulf %247, %246 : vector<4x32xf32>
    %249 = vector.extract_strided_slice %232 {offsets = [0, 64], sizes = [4, 32], strides = [1, 1]} : vector<4x128xf32> to vector<4x32xf32>
    %250 = math.tanh %249 : vector<4x32xf32>
    %251 = vector.extract_strided_slice %232 {offsets = [0, 96], sizes = [4, 32], strides = [1, 1]} : vector<4x128xf32> to vector<4x32xf32>
    %cst_132 = arith.constant 5.000000e-01 : f32
    %252 = vector.broadcast %cst_132 : f32 to vector<4x32xf32>
    %253 = arith.mulf %252, %251 : vector<4x32xf32>
    %254 = math.tanh %253 : vector<4x32xf32>
    %cst_133 = arith.constant 1.000000e+00 : f32
    %255 = vector.broadcast %cst_133 : f32 to vector<4x32xf32>
    %256 = arith.addf %254, %255 : vector<4x32xf32>
    %cst_134 = arith.constant 5.000000e-01 : f32
    %257 = vector.broadcast %cst_134 : f32 to vector<4x32xf32>
    %258 = arith.mulf %257, %256 : vector<4x32xf32>
    %259 = arith.mulf %248, %222 : vector<4x32xf32>
    %260 = arith.mulf %240, %250 : vector<4x32xf32>
    %261 = arith.addf %259, %260 : vector<4x32xf32>
    %262 = math.tanh %261 : vector<4x32xf32>
    %263 = arith.mulf %258, %262 : vector<4x32xf32>
    %c4_135 = arith.constant 4 : index
    %c0_136 = arith.constant 0 : index
    %c0_137 = arith.constant 0 : index
    %264 = vector.load %arg8[%c4_135, %c0_136, %c0_137] : memref<8x4x32xf32, #tpu.memory_space<vmem>>, vector<1x4x32xf32>
    %265 = vector.shape_cast %264 : vector<1x4x32xf32> to vector<4x32xf32>
    %266 = vector.shape_cast %263 : vector<4x32xf32> to vector<1x4x32xf32>
    tpu.vector_store %arg8[%c4_135, %c0_136, %c0_137], %266 {strides = array<i32>} : memref<8x4x32xf32, #tpu.memory_space<vmem>>, vector<1x4x32xf32>,
    %c5_138 = arith.constant 5 : index
    %c0_139 = arith.constant 0 : index
    %c0_140 = arith.constant 0 : index
    %267 = vector.load %arg11[%c5_138, %c0_139, %c0_140] : memref<8x4x128xf32, #tpu.memory_space<vmem>>, vector<1x4x128xf32>
    %268 = vector.shape_cast %267 : vector<1x4x128xf32> to vector<4x128xf32>
    %269 = arith.truncf %263 : vector<4x32xf32> to vector<4x32xbf16>
    %cst_141 = arith.constant dense<0.000000e+00> : vector<4x128xf32>
    %270 = tpu.matmul %269, %4, %cst_141 {dimension_numbers = #tpu.dot_dimension_numbers<[1], [0], [0], [1], [0, 0, 1, 1], [], []>} : vector<4x32xbf16>, vector<32x128xbf16>, vector<4x128xf32> -> vector<4x128xf32>
    %271 = arith.addf %268, %270 : vector<4x128xf32>
    %272 = vector.extract_strided_slice %271 {offsets = [0, 0], sizes = [4, 32], strides = [1, 1]} : vector<4x128xf32> to vector<4x32xf32>
    %cst_142 = arith.constant 5.000000e-01 : f32
    %273 = vector.broadcast %cst_142 : f32 to vector<4x32xf32>
    %274 = arith.mulf %273, %272 : vector<4x32xf32>
    %275 = math.tanh %274 : vector<4x32xf32>
    %cst_143 = arith.constant 1.000000e+00 : f32
    %276 = vector.broadcast %cst_143 : f32 to vector<4x32xf32>
    %277 = arith.addf %275, %276 : vector<4x32xf32>
    %cst_144 = arith.constant 5.000000e-01 : f32
    %278 = vector.broadcast %cst_144 : f32 to vector<4x32xf32>
    %279 = arith.mulf %278, %277 : vector<4x32xf32>
    %280 = vector.extract_strided_slice %271 {offsets = [0, 32], sizes = [4, 32], strides = [1, 1]} : vector<4x128xf32> to vector<4x32xf32>
    %cst_145 = arith.constant 5.000000e-01 : f32
    %281 = vector.broadcast %cst_145 : f32 to vector<4x32xf32>
    %282 = arith.mulf %281, %280 : vector<4x32xf32>
    %283 = math.tanh %282 : vector<4x32xf32>
    %cst_146 = arith.constant 1.000000e+00 : f32
    %284 = vector.broadcast %cst_146 : f32 to vector<4x32xf32>
    %285 = arith.addf %283, %284 : vector<4x32xf32>
    %cst_147 = arith.constant 5.000000e-01 : f32
    %286 = vector.broadcast %cst_147 : f32 to vector<4x32xf32>
    %287 = arith.mulf %286, %285 : vector<4x32xf32>
    %288 = vector.extract_strided_slice %271 {offsets = [0, 64], sizes = [4, 32], strides = [1, 1]} : vector<4x128xf32> to vector<4x32xf32>
    %289 = math.tanh %288 : vector<4x32xf32>
    %290 = vector.extract_strided_slice %271 {offsets = [0, 96], sizes = [4, 32], strides = [1, 1]} : vector<4x128xf32> to vector<4x32xf32>
    %cst_148 = arith.constant 5.000000e-01 : f32
    %291 = vector.broadcast %cst_148 : f32 to vector<4x32xf32>
    %292 = arith.mulf %291, %290 : vector<4x32xf32>
    %293 = math.tanh %292 : vector<4x32xf32>
    %cst_149 = arith.constant 1.000000e+00 : f32
    %294 = vector.broadcast %cst_149 : f32 to vector<4x32xf32>
    %295 = arith.addf %293, %294 : vector<4x32xf32>
    %cst_150 = arith.constant 5.000000e-01 : f32
    %296 = vector.broadcast %cst_150 : f32 to vector<4x32xf32>
    %297 = arith.mulf %296, %295 : vector<4x32xf32>
    %298 = arith.mulf %287, %261 : vector<4x32xf32>
    %299 = arith.mulf %279, %289 : vector<4x32xf32>
    %300 = arith.addf %298, %299 : vector<4x32xf32>
    %301 = math.tanh %300 : vector<4x32xf32>
    %302 = arith.mulf %297, %301 : vector<4x32xf32>
    %c5_151 = arith.constant 5 : index
    %c0_152 = arith.constant 0 : index
    %c0_153 = arith.constant 0 : index
    %303 = vector.load %arg8[%c5_151, %c0_152, %c0_153] : memref<8x4x32xf32, #tpu.memory_space<vmem>>, vector<1x4x32xf32>
    %304 = vector.shape_cast %303 : vector<1x4x32xf32> to vector<4x32xf32>
    %305 = vector.shape_cast %302 : vector<4x32xf32> to vector<1x4x32xf32>
    tpu.vector_store %arg8[%c5_151, %c0_152, %c0_153], %305 {strides = array<i32>} : memref<8x4x32xf32, #tpu.memory_space<vmem>>, vector<1x4x32xf32>,
    %c6_154 = arith.constant 6 : index
    %c0_155 = arith.constant 0 : index
    %c0_156 = arith.constant 0 : index
    %306 = vector.load %arg11[%c6_154, %c0_155, %c0_156] : memref<8x4x128xf32, #tpu.memory_space<vmem>>, vector<1x4x128xf32>
    %307 = vector.shape_cast %306 : vector<1x4x128xf32> to vector<4x128xf32>
    %308 = arith.truncf %302 : vector<4x32xf32> to vector<4x32xbf16>
    %cst_157 = arith.constant dense<0.000000e+00> : vector<4x128xf32>
    %309 = tpu.matmul %308, %4, %cst_157 {dimension_numbers = #tpu.dot_dimension_numbers<[1], [0], [0], [1], [0, 0, 1, 1], [], []>} : vector<4x32xbf16>, vector<32x128xbf16>, vector<4x128xf32> -> vector<4x128xf32>
    %310 = arith.addf %307, %309 : vector<4x128xf32>
    %311 = vector.extract_strided_slice %310 {offsets = [0, 0], sizes = [4, 32], strides = [1, 1]} : vector<4x128xf32> to vector<4x32xf32>
    %cst_158 = arith.constant 5.000000e-01 : f32
    %312 = vector.broadcast %cst_158 : f32 to vector<4x32xf32>
    %313 = arith.mulf %312, %311 : vector<4x32xf32>
    %314 = math.tanh %313 : vector<4x32xf32>
    %cst_159 = arith.constant 1.000000e+00 : f32
    %315 = vector.broadcast %cst_159 : f32 to vector<4x32xf32>
    %316 = arith.addf %314, %315 : vector<4x32xf32>
    %cst_160 = arith.constant 5.000000e-01 : f32
    %317 = vector.broadcast %cst_160 : f32 to vector<4x32xf32>
    %318 = arith.mulf %317, %316 : vector<4x32xf32>
    %319 = vector.extract_strided_slice %310 {offsets = [0, 32], sizes = [4, 32], strides = [1, 1]} : vector<4x128xf32> to vector<4x32xf32>
    %cst_161 = arith.constant 5.000000e-01 : f32
    %320 = vector.broadcast %cst_161 : f32 to vector<4x32xf32>
    %321 = arith.mulf %320, %319 : vector<4x32xf32>
    %322 = math.tanh %321 : vector<4x32xf32>
    %cst_162 = arith.constant 1.000000e+00 : f32
    %323 = vector.broadcast %cst_162 : f32 to vector<4x32xf32>
    %324 = arith.addf %322, %323 : vector<4x32xf32>
    %cst_163 = arith.constant 5.000000e-01 : f32
    %325 = vector.broadcast %cst_163 : f32 to vector<4x32xf32>
    %326 = arith.mulf %325, %324 : vector<4x32xf32>
    %327 = vector.extract_strided_slice %310 {offsets = [0, 64], sizes = [4, 32], strides = [1, 1]} : vector<4x128xf32> to vector<4x32xf32>
    %328 = math.tanh %327 : vector<4x32xf32>
    %329 = vector.extract_strided_slice %310 {offsets = [0, 96], sizes = [4, 32], strides = [1, 1]} : vector<4x128xf32> to vector<4x32xf32>
    %cst_164 = arith.constant 5.000000e-01 : f32
    %330 = vector.broadcast %cst_164 : f32 to vector<4x32xf32>
    %331 = arith.mulf %330, %329 : vector<4x32xf32>
    %332 = math.tanh %331 : vector<4x32xf32>
    %cst_165 = arith.constant 1.000000e+00 : f32
    %333 = vector.broadcast %cst_165 : f32 to vector<4x32xf32>
    %334 = arith.addf %332, %333 : vector<4x32xf32>
    %cst_166 = arith.constant 5.000000e-01 : f32
    %335 = vector.broadcast %cst_166 : f32 to vector<4x32xf32>
    %336 = arith.mulf %335, %334 : vector<4x32xf32>
    %337 = arith.mulf %326, %300 : vector<4x32xf32>
    %338 = arith.mulf %318, %328 : vector<4x32xf32>
    %339 = arith.addf %337, %338 : vector<4x32xf32>
    %340 = math.tanh %339 : vector<4x32xf32>
    %341 = arith.mulf %336, %340 : vector<4x32xf32>
    %c6_167 = arith.constant 6 : index
    %c0_168 = arith.constant 0 : index
    %c0_169 = arith.constant 0 : index
    %342 = vector.load %arg8[%c6_167, %c0_168, %c0_169] : memref<8x4x32xf32, #tpu.memory_space<vmem>>, vector<1x4x32xf32>
    %343 = vector.shape_cast %342 : vector<1x4x32xf32> to vector<4x32xf32>
    %344 = vector.shape_cast %341 : vector<4x32xf32> to vector<1x4x32xf32>
    tpu.vector_store %arg8[%c6_167, %c0_168, %c0_169], %344 {strides = array<i32>} : memref<8x4x32xf32, #tpu.memory_space<vmem>>, vector<1x4x32xf32>,
    %c7_170 = arith.constant 7 : index
    %c0_171 = arith.constant 0 : index
    %c0_172 = arith.constant 0 : index
    %345 = vector.load %arg11[%c7_170, %c0_171, %c0_172] : memref<8x4x128xf32, #tpu.memory_space<vmem>>, vector<1x4x128xf32>
    %346 = vector.shape_cast %345 : vector<1x4x128xf32> to vector<4x128xf32>
    %347 = arith.truncf %341 : vector<4x32xf32> to vector<4x32xbf16>
    %cst_173 = arith.constant dense<0.000000e+00> : vector<4x128xf32>
    %348 = tpu.matmul %347, %4, %cst_173 {dimension_numbers = #tpu.dot_dimension_numbers<[1], [0], [0], [1], [0, 0, 1, 1], [], []>} : vector<4x32xbf16>, vector<32x128xbf16>, vector<4x128xf32> -> vector<4x128xf32>
    %349 = arith.addf %346, %348 : vector<4x128xf32>
    %350 = vector.extract_strided_slice %349 {offsets = [0, 0], sizes = [4, 32], strides = [1, 1]} : vector<4x128xf32> to vector<4x32xf32>
    %cst_174 = arith.constant 5.000000e-01 : f32
    %351 = vector.broadcast %cst_174 : f32 to vector<4x32xf32>
    %352 = arith.mulf %351, %350 : vector<4x32xf32>
    %353 = math.tanh %352 : vector<4x32xf32>
    %cst_175 = arith.constant 1.000000e+00 : f32
    %354 = vector.broadcast %cst_175 : f32 to vector<4x32xf32>
    %355 = arith.addf %353, %354 : vector<4x32xf32>
    %cst_176 = arith.constant 5.000000e-01 : f32
    %356 = vector.broadcast %cst_176 : f32 to vector<4x32xf32>
    %357 = arith.mulf %356, %355 : vector<4x32xf32>
    %358 = vector.extract_strided_slice %349 {offsets = [0, 32], sizes = [4, 32], strides = [1, 1]} : vector<4x128xf32> to vector<4x32xf32>
    %cst_177 = arith.constant 5.000000e-01 : f32
    %359 = vector.broadcast %cst_177 : f32 to vector<4x32xf32>
    %360 = arith.mulf %359, %358 : vector<4x32xf32>
    %361 = math.tanh %360 : vector<4x32xf32>
    %cst_178 = arith.constant 1.000000e+00 : f32
    %362 = vector.broadcast %cst_178 : f32 to vector<4x32xf32>
    %363 = arith.addf %361, %362 : vector<4x32xf32>
    %cst_179 = arith.constant 5.000000e-01 : f32
    %364 = vector.broadcast %cst_179 : f32 to vector<4x32xf32>
    %365 = arith.mulf %364, %363 : vector<4x32xf32>
    %366 = vector.extract_strided_slice %349 {offsets = [0, 64], sizes = [4, 32], strides = [1, 1]} : vector<4x128xf32> to vector<4x32xf32>
    %367 = math.tanh %366 : vector<4x32xf32>
    %368 = vector.extract_strided_slice %349 {offsets = [0, 96], sizes = [4, 32], strides = [1, 1]} : vector<4x128xf32> to vector<4x32xf32>
    %cst_180 = arith.constant 5.000000e-01 : f32
    %369 = vector.broadcast %cst_180 : f32 to vector<4x32xf32>
    %370 = arith.mulf %369, %368 : vector<4x32xf32>
    %371 = math.tanh %370 : vector<4x32xf32>
    %cst_181 = arith.constant 1.000000e+00 : f32
    %372 = vector.broadcast %cst_181 : f32 to vector<4x32xf32>
    %373 = arith.addf %371, %372 : vector<4x32xf32>
    %cst_182 = arith.constant 5.000000e-01 : f32
    %374 = vector.broadcast %cst_182 : f32 to vector<4x32xf32>
    %375 = arith.mulf %374, %373 : vector<4x32xf32>
    %376 = arith.mulf %365, %339 : vector<4x32xf32>
    %377 = arith.mulf %357, %367 : vector<4x32xf32>
    %378 = arith.addf %376, %377 : vector<4x32xf32>
    %379 = math.tanh %378 : vector<4x32xf32>
    %380 = arith.mulf %375, %379 : vector<4x32xf32>
    %c7_183 = arith.constant 7 : index
    %c0_184 = arith.constant 0 : index
    %c0_185 = arith.constant 0 : index
    %381 = vector.load %arg8[%c7_183, %c0_184, %c0_185] : memref<8x4x32xf32, #tpu.memory_space<vmem>>, vector<1x4x32xf32>
    %382 = vector.shape_cast %381 : vector<1x4x32xf32> to vector<4x32xf32>
    %383 = vector.shape_cast %380 : vector<4x32xf32> to vector<1x4x32xf32>
    tpu.vector_store %arg8[%c7_183, %c0_184, %c0_185], %383 {strides = array<i32>} : memref<8x4x32xf32, #tpu.memory_space<vmem>>, vector<1x4x32xf32>,
    %c0_186 = arith.constant 0 : index
    %c0_187 = arith.constant 0 : index
    %384 = vector.load %arg12[%c0_186, %c0_187] : memref<4x32xf32, #tpu.memory_space<vmem>>, vector<4x32xf32>
    tpu.vector_store %arg12[%c0_186, %c0_187], %380 {strides = array<i32>} : memref<4x32xf32, #tpu.memory_space<vmem>>, vector<4x32xf32>,
    %c0_188 = arith.constant 0 : index
    %c0_189 = arith.constant 0 : index
    %385 = vector.load %arg13[%c0_188, %c0_189] : memref<4x32xf32, #tpu.memory_space<vmem>>, vector<4x32xf32>
    tpu.vector_store %arg13[%c0_188, %c0_189], %378 {strides = array<i32>} : memref<4x32xf32, #tpu.memory_space<vmem>>, vector<4x32xf32>,
    %c0_i32_190 = arith.constant 0 : i32
    %386 = arith.cmpi eq, %arg1, %c0_i32_190 : i32
    %387 = arith.extui %386 : i1 to i32
    %c0_i32_191 = arith.constant 0 : i32
    %388 = arith.cmpi ne, %387, %c0_i32_191 : i32
    scf.if %388 {
      %c0_192 = arith.constant 0 : index
      %c0_193 = arith.constant 0 : index
      %389 = vector.load %arg12[%c0_192, %c0_193] : memref<4x32xf32, #tpu.memory_space<vmem>>, vector<4x32xf32>
      %c0_194 = arith.constant 0 : index
      %c0_195 = arith.constant 0 : index
      %390 = vector.load %arg9[%c0_194, %c0_195] : memref<4x32xf32, #tpu.memory_space<vmem>>, vector<4x32xf32>
      tpu.vector_store %arg9[%c0_194, %c0_195], %389 {strides = array<i32>} : memref<4x32xf32, #tpu.memory_space<vmem>>, vector<4x32xf32>,
      %c0_196 = arith.constant 0 : index
      %c0_197 = arith.constant 0 : index
      %391 = vector.load %arg13[%c0_196, %c0_197] : memref<4x32xf32, #tpu.memory_space<vmem>>, vector<4x32xf32>
      %c0_198 = arith.constant 0 : index
      %c0_199 = arith.constant 0 : index
      %392 = vector.load %arg10[%c0_198, %c0_199] : memref<4x32xf32, #tpu.memory_space<vmem>>, vector<4x32xf32>
      tpu.vector_store %arg10[%c0_198, %c0_199], %391 {strides = array<i32>} : memref<4x32xf32, #tpu.memory_space<vmem>>, vector<4x32xf32>,
    } else {
    }
    return
  }
  func.func @transform_0(%arg0: i32, %arg1: i32) -> (i32, i32, i32) {
    %c0_i32 = arith.constant 0 : i32
    %c0_i32_0 = arith.constant 0 : i32
    return %arg1, %arg0, %c0_i32 : i32, i32, i32
  }
  func.func @transform_1(%arg0: i32, %arg1: i32) -> (i32, i32) {
    %c0_i32 = arith.constant 0 : i32
    %c0_i32_0 = arith.constant 0 : i32
    %c0_i32_1 = arith.constant 0 : i32
    return %c0_i32, %c0_i32_0 : i32, i32
  }
  func.func @transform_2(%arg0: i32, %arg1: i32) -> (i32, i32) {
    %c0_i32 = arith.constant 0 : i32
    %c0_i32_0 = arith.constant 0 : i32
    %c0_i32_1 = arith.constant 0 : i32
    return %c0_i32, %c0_i32_0 : i32, i32
  }
  func.func @transform_3(%arg0: i32, %arg1: i32) -> (i32, i32) {
    %c0_i32 = arith.constant 0 : i32
    %c0_i32_0 = arith.constant 0 : i32
    %c0_i32_1 = arith.constant 0 : i32
    return %c0_i32, %c0_i32_0 : i32, i32
  }
  func.func @transform_4(%arg0: i32, %arg1: i32) -> (i32, i32) {
    %c0_i32 = arith.constant 0 : i32
    %c0_i32_0 = arith.constant 0 : i32
    return %arg0, %c0_i32 : i32, i32
  }
  func.func @transform_5(%arg0: i32, %arg1: i32) -> (i32, i32) {
    %c0_i32 = arith.constant 0 : i32
    %c0_i32_0 = arith.constant 0 : i32
    return %arg0, %c0_i32 : i32, i32
  }
  func.func @transform_6(%arg0: i32, %arg1: i32) -> (i32, i32, i32) {
    %c0_i32 = arith.constant 0 : i32
    %c0_i32_0 = arith.constant 0 : i32
    return %arg1, %arg0, %c0_i32 : i32, i32, i32
  }
  func.func @transform_7(%arg0: i32, %arg1: i32) -> (i32, i32) {
    %c0_i32 = arith.constant 0 : i32
    %c0_i32_0 = arith.constant 0 : i32
    return %arg0, %c0_i32 : i32, i32
  }
  func.func @transform_8(%arg0: i32, %arg1: i32) -> (i32, i32) {
    %c0_i32 = arith.constant 0 : i32
    %c0_i32_0 = arith.constant 0 : i32
    return %arg0, %c0_i32 : i32, i32
  }
}

</mosaic_0001>

<bundles_post_ra>
// kernel: lstm_model_forward.2
= control target key start
LH: loop header
LB: loop body
LE: loop exit
PB: predicated region body
PF: predicated region fallthrough
CT: control target
= control target key end

     0   :  { %v1393_v0 = vmov 0.0   ;;  %vm1394_vm0 = vmmov 0   ;;  %vm57_vm1 = vcmask 130048   ;;  %vm32_vm2 = vcmask 257024   ;;  %s1398_s10 = smov 96   ;;  %s1715_s1 = inlined_call_operand.vmem [shape: bf16[16,128], index: 1, kind: input, shape index: {}]   ;;  %s1716_s0 = inlined_call_operand.vmem [shape: f32[8,4,16], index: 0, kind: input, shape index: {}]   ;;  %s1717_s2 = inlined_call_operand.vmem [shape: bf16[32,128], index: 2, kind: input, shape index: {}]   ;;  %s1718_s4 = inlined_call_operand.vmem [shape: f32[4,32], index: 4, kind: input, shape index: {}]   ;;  %s1719_s5 = inlined_call_operand.vmem [shape: f32[4,32], index: 5, kind: input, shape index: {}]   ;;  %s1720_s3 = inlined_call_operand.vmem [shape: f32[1,128], index: 3, kind: input, shape index: {}]   ;;  %s1721_s6 = inlined_call_operand.vmem [shape: bf16[8,4,32], index: 6, kind: output, shape index: {0}]   ;;  %s1722_s8 = inlined_call_operand.vmem [shape: f32[4,32], index: 8, kind: output, shape index: {2}]   ;;  %s1723_s7 = inlined_call_operand.vmem [shape: f32[4,32], index: 7, kind: output, shape index: {1}]  }
   0x1   :  { %1224 = vmatprep.subr.bf16.mxu0 %v1393_v0  ;;  %v1448_v1 = vld [vmem:[%s1715_s1] sm:$0xff]   ;;  %1226 = vmatprep.mubr.msk.bf16.mxu0 %vm1394_vm0, %v1393_v0  ;;  %v1155_v5 = vld [vmem:[%s1716_s0 + $0x8] sm:$0xf]  ;;  %v1159_v7 = vld [vmem:[%s1716_s0 + $0x10] sm:$0xf]  ;;  %vm454_vm3 = vcmask 261120  }
   0x2   :  { %v43_v2 = vld [vmem:[%s1716_s0] sm:$0xf]  ;;  %1230 = vmatprep.subr.bf16.mxu1 %v1393_v0  ;;  %1232 = vmatprep.mubr.msk.bf16.mxu1 %vm1394_vm0, %v1393_v0  ;;  %v152_v6 = vpack.c.bf16 %v1155_v5, %v1155_v5  ;;  %v248_v8 = vpack.c.bf16 %v1159_v7, %v1159_v7  ;;  %v1163_v9 = vld [vmem:[%s1716_s0 + $0x18] sm:$0xf]  ;;  %v1493_v11 = vld [vmem:[%s1717_s2 + $0x8] sm:$0xff]   ;;  %vm537_vm4 = vcmask 254976  }
   0x3   :  { %1225 = vmatpush3.bf16.msra.mxu0 %v1448_v1  ;;  %v44_v3 = vpack.c.bf16 %v43_v2, %v43_v2  ;;  %1231 = vmatpush3.bf16.msra.mxu1 %v1448_v1  ;;  %v31_v4 = vld [vmem:[%s1718_s4] sm:$0xf]  ;;  %v344_v10 = vpack.c.bf16 %v1163_v9, %v1163_v9  ;;  %v1153_v55 = vld [vmem:[%s1716_s0 + $0x4] sm:$0xf]  ;;  %v1157_v57 = vld [vmem:[%s1716_s0 + $0xc] sm:$0xf] }
   0x4   :  { %1236 = vmatprep.subr.bf16.mxu0 %v1393_v0  ;;  %1242 = vmatprep.subr.bf16.mxu1 %v1393_v0  ;;  %33 = vst.msk [vmem:[#allocation3] sm:$0xf] %vm32_vm2, %v31_v4  ;;  %v1500_v12 = vld [vmem:[%s1717_s2] sm:$0xff]   ;;  %v104_v56 = vpack.c.bf16 %v1153_v55, %v1153_v55  ;;  %v200_v58 = vpack.c.bf16 %v1157_v57, %v1157_v57  ;;  %v1161_v60 = vld [vmem:[%s1716_s0 + $0x14] sm:$0xf] }
   0x5   :  { %v34_v15 = vld [vmem:[%s1719_s5] sm:$0xf]  ;;  %s1396_s5 = smov 32   ;;  %v296_v61 = vpack.c.bf16 %v1161_v60, %v1161_v60  ;;  %v1165_v62 = vld [vmem:[%s1716_s0 + $0x1c] sm:$0xf] }
   0x6   :  { %1227 = vmatmul.mubr.msk.bf16.vlgmr.msra.gmra.mxu0 %vm57_vm1, %v44_v3  ;;  %35 = vst.msk [vmem:[#allocation4] sm:$0xf] %vm32_vm2, %v34_v15  ;;  %v1521_v16 = vld [vmem:[%s1720_s3] ss:$0 sm:$0xff]  ;;  %s1395_s3 = smov 64   ;;  %1233 = vmatmul.mubr.msk.bf16.vlgmr.msra.gmra.mxu1 %vm57_vm1, %v104_v56  ;;  %v392_v63 = vpack.c.bf16 %v1165_v62, %v1165_v62 }
   0x7   :  { %1237 = vmatpush3.bf16.msra.mxu0 %v1448_v1  ;;  %1238 = vmatprep.mubr.msk.bf16.mxu0 %vm1394_vm0, %v1393_v0 }
   0x8   :  { %1248 = vmatprep.subr.bf16.mxu0 %v1393_v0  ;;  %1243 = vmatpush3.bf16.msra.mxu1 %v1448_v1 }
   0x9   :  { %1244 = vmatprep.mubr.msk.bf16.mxu1 %vm1394_vm0, %v1393_v0  ;;  %1254 = vmatprep.subr.bf16.mxu1 %v1393_v0 }
   0xb   :  { %v438_v13 = vld [vmem:[#allocation3] sm:$0xf] }
   0xc   :  { %v441_v14 = vpack.c.bf16 %v438_v13, %v438_v13 }
   0xd   :  { %v439_v44 = vld [vmem:[#allocation4] sm:$0xf] }
   0xe   :  { %1239 = vmatmul.mubr.msk.bf16.vlgmr.msra.gmra.mxu0 %vm57_vm1, %v152_v6  ;;  %1245 = vmatmul.mubr.msk.bf16.vlgmr.msra.gmra.mxu1 %vm57_vm1, %v200_v58 }
   0xf   :  { %1249 = vmatpush3.bf16.msra.mxu0 %v1448_v1  ;;  %1250 = vmatprep.mubr.msk.bf16.mxu0 %vm1394_vm0, %v1393_v0 }
  0x10   :  { %1260 = vmatprep.subr.bf16.mxu0 %v1393_v0  ;;  %1255 = vmatpush3.bf16.msra.mxu1 %v1448_v1 }
  0x11   :  { %1256 = vmatprep.mubr.msk.bf16.mxu1 %vm1394_vm0, %v1393_v0  ;;  %1266 = vmatprep.subr.bf16.mxu1 %v1393_v0 }
  0x16   :  { %1251 = vmatmul.mubr.msk.bf16.vlgmr.msra.gmra.mxu0 %vm57_vm1, %v248_v8  ;;  %1257 = vmatmul.mubr.msk.bf16.vlgmr.msra.gmra.mxu1 %vm57_vm1, %v296_v61 }
  0x17   :  { %1261 = vmatpush3.bf16.msra.mxu0 %v1448_v1  ;;  %1262 = vmatprep.mubr.msk.bf16.mxu0 %vm1394_vm0, %v1393_v0 }
  0x18   :  { %1272 = vmatprep.subr.bf16.mxu0 %v1393_v0  ;;  %1267 = vmatpush3.bf16.msra.mxu1 %v1448_v1 }
  0x19   :  { %1268 = vmatprep.mubr.msk.bf16.mxu1 %vm1394_vm0, %v1393_v0  ;;  %1280 = vmatprep.subr.bf16.mxu1 %v1393_v0 }
  0x1e   :  { %1263 = vmatmul.mubr.msk.bf16.vlgmr.msra.gmra.mxu0 %vm57_vm1, %v344_v10  ;;  %1269 = vmatmul.mubr.msk.bf16.vlgmr.msra.gmra.mxu1 %vm57_vm1, %v392_v63 }
  0x1f   :  { %1273 = vmatpush3.bf16.msra.mxu0 %v1493_v11  ;;  %1276 = vmatprep.mubr.msk.bf16.mxu0 %vm1394_vm0, %v1393_v0 }
  0x20   :  { %1274 = vmatprep.subr.bf16.mxu0 %v1393_v0  ;;  %1281 = vmatpush3.bf16.msra.mxu1 %v1493_v11 }
  0x21   :  { %1284 = vmatprep.mubr.msk.bf16.mxu1 %vm1394_vm0, %v1393_v0  ;;  %1282 = vmatprep.subr.bf16.mxu1 %v1393_v0 }
  0x23   :  { %1275 = vmatpush3.bf16.msra.mxu0 %v1500_v12 }
  0x24   :  { %1288 = vmatprep.subr.bf16.mxu0 %v1393_v0  ;;  %1283 = vmatpush3.bf16.msra.mxu1 %v1500_v12 }
  0x25   :  { %1296 = vmatprep.subr.bf16.mxu1 %v1393_v0 }
  0x26   :  { %1277 = vmatmul.mubr.msk.bf16.vlgmr.msra.gmra.mxu0 %vm454_vm3, %v441_v14 }
  0x27   :  { %1289 = vmatpush3.bf16.msra.mxu0 %v1493_v11  ;;  %1292 = vmatprep.mubr.msk.bf16.mxu0 %vm1394_vm0, %v1393_v0 }
  0x28   :  { %1290 = vmatprep.subr.bf16.mxu0 %v1393_v0 }
  0x2b   :  { %1291 = vmatpush3.bf16.msra.mxu0 %v1500_v12 }
  0x2c   :  { %1304 = vmatprep.subr.bf16.mxu0 %v1393_v0 }
  0xc6   :  { %v95_v17 = vpop.f32.mrf.mxu0  ;;  %v142_v4 = vpop.f32.mrf.mxu1 }
  0xc7   :  { %v96_v18 = vadd.f32 %v1521_v16, %v95_v17  ;;  %v143_v5 = vadd.f32 %v1521_v16, %v142_v4 }
  0xc8   :  { %v1228_v19 = vpop.f32.mrf.mxu0  ;;  %v1234_v6 = vpop.f32.mrf.mxu1 }
  0xc9   :  { %101 = vst [vmem:[#allocation2] sm:$0xf] %v96_v18  ;;  %149 = vst [vmem:[#allocation2 + $0x4] sm:$0xf] %v143_v5 }
  0xca   :  { %v98_v20 = vpop.f32.mrf.mxu0  ;;  %v145_v7 = vpop.f32.mrf.mxu1 }
  0xcc   :  { %v1229_v21 = vpop.f32.mrf.mxu0  ;;  %v1235_v8 = vpop.f32.mrf.mxu1 }
  0xce   :  { %v190_v22 = vpop.f32.mrf.mxu0  ;;  %v238_v9 = vpop.f32.mrf.mxu1 }
  0xcf   :  { %v191_v23 = vadd.f32 %v1521_v16, %v190_v22  ;;  %v239_v10 = vadd.f32 %v1521_v16, %v238_v9 }
  0xd0   :  { %v1240_v24 = vpop.f32.mrf.mxu0  ;;  %v440_v37 = vld [vmem:[#allocation2] sm:$0xf]  ;;  %v1246_v13 = vpop.f32.mrf.mxu1 }
  0xd1   :  { %197 = vst [vmem:[#allocation2 + $0x8] sm:$0xf] %v191_v23  ;;  %245 = vst [vmem:[#allocation2 + $0xc] sm:$0xf] %v239_v10 }
  0xd2   :  { %v193_v25 = vpop.f32.mrf.mxu0  ;;  %v241_v14 = vpop.f32.mrf.mxu1 }
  0xd4   :  { %v1241_v26 = vpop.f32.mrf.mxu0  ;;  %v1247_v15 = vpop.f32.mrf.mxu1 }
  0xd6   :  { %v286_v27 = vpop.f32.mrf.mxu0  ;;  %v334_v17 = vpop.f32.mrf.mxu1 }
  0xd7   :  { %v287_v28 = vadd.f32 %v1521_v16, %v286_v27  ;;  %v335_v18 = vadd.f32 %v1521_v16, %v334_v17 }
  0xd8   :  { %v1252_v29 = vpop.f32.mrf.mxu0  ;;  %v1258_v19 = vpop.f32.mrf.mxu1  ;;  %v705_v7 = vld [vmem:[#allocation2 + $0xc] sm:$0xf] }
  0xd9   :  { %293 = vst [vmem:[#allocation2 + $0x10] sm:$0xf] %v287_v28  ;;  %341 = vst [vmem:[#allocation2 + $0x14] sm:$0xf] %v335_v18  ;;  %v539_v28 = vld [vmem:[#allocation2 + $0x4] sm:$0xf] }
  0xda   :  { %v289_v30 = vpop.f32.mrf.mxu0  ;;  %v337_v20 = vpop.f32.mrf.mxu1 }
  0xdc   :  { %v1253_v31 = vpop.f32.mrf.mxu0  ;;  %v1259_v21 = vpop.f32.mrf.mxu1 }
  0xde   :  { %v382_v32 = vpop.f32.mrf.mxu0  ;;  %v430_v22 = vpop.f32.mrf.mxu1 }
  0xdf   :  { %v383_v33 = vadd.f32 %v1521_v16, %v382_v32  ;;  %v431_v23 = vadd.f32 %v1521_v16, %v430_v22 }
  0xe0   :  { %v1264_v34 = vpop.f32.mrf.mxu0  ;;  %v1270_v24 = vpop.f32.mrf.mxu1 }
  0xe1   :  { %389 = vst [vmem:[#allocation2 + $0x18] sm:$0xf] %v383_v33  ;;  %437 = vst [vmem:[#allocation2 + $0x1c] sm:$0xf] %v431_v23 }
  0xe2   :  { %v385_v35 = vpop.f32.mrf.mxu0  ;;  %v433_v25 = vpop.f32.mrf.mxu1 }
  0xe4   :  { %v1265_v36 = vpop.f32.mrf.mxu0  ;;  %v1271_v26 = vpop.f32.mrf.mxu1 }
  0xe6   :  { %v492_v38 = vpop.f32.mrf.mxu0 }
  0xe7   :  { %v498_v39 = vadd.f32 %v492_v38, %v440_v37 }
  0xe8   :  { %v1278_v40 = vpop.f32.mrf.mxu0 }
  0xe9   :  { %1345 = vtanh.f32 %v498_v39  ;;  %v499_v45 = vmul.f32 0.5, %v498_v39 }
  0xea   :  { %v495_v41 = vpop.f32.mrf.mxu0 }
  0xeb   :  { %1347 = vtanh.f32 %v499_v45 }
  0xec   :  { %v1279_v42 = vpop.f32.mrf.mxu0 }
  0xf6   :  { %v1346_v43 = vpop.eup %1345 }
  0xf7   :  { %510 = vrot.lane.b32.xlu0 %v1346_v43, %s1395_s3 }
  0xf8   :  { %v1348_v46 = vpop.eup %1347 }
  0xf9   :  { %v501_v47 = vadd.f32 1.0, %v1348_v46 }
  0xfb   :  { %505 = vrot.lane.b32.xlu0 %v439_v44, %s1396_s5  ;;  %v502_v48 = vmul.f32 0.5, %v501_v47 }
 0x169   :  { %v511_v49 = vpop.permute.xlu0 %510 }
 0x16a   :  { %v513_v50 = vmul.f32 %v511_v49, %v502_v48 }
 0x16c   :  { %515 = vrot.lane.b32.xlu1 %v513_v50, %s1396_s5 }
 0x16d   :  { %v506_v51 = vpop.permute.xlu0 %505 }
 0x16e   :  { %v508_v52 = vmul.f32 %v506_v51, %v502_v48 }
 0x1de   :  { %v516_v53 = vpop.permute.xlu1 %515 }
 0x1df   :  { %v1530_v54 = vadd.f32 %v516_v53, %v508_v52 }
 0x1e1   :  { %1349 = vtanh.f32 %v1530_v54 }
 0x1ee   :  { %v1350_v59 = vpop.eup %1349 }
 0x1ef   :  { %521 = vrot.lane.b32.xlu1 %v1350_v59, %s1395_s3 }
 0x261   :  { %v522_v1 = vpop.permute.xlu1 %521 }
 0x262   :  { %v524_v2 = vmul.f32 %v522_v1, %v502_v48  ;;  %v622_v48 = vld [vmem:[#allocation2 + $0x8] sm:$0xf] }
 0x264   :  { %v1568_v3 = vpack.c.bf16 %v524_v2, %v524_v2 }
 0x266   :  { %540 = vrot.lane.b32.xlu0 %v1568_v3, %s1396_s5 }
 0x2d8   :  { %v541_v27 = vpop.permute.xlu0 %540 }
 0x2d9   :  { %1285 = vmatmul.mubr.msk.bf16.vlgmr.msra.gmra.mxu1 %vm454_vm3, %v541_v27 }
 0x2da   :  { %1297 = vmatpush3.bf16.msra.mxu1 %v1493_v11  ;;  %1300 = vmatprep.mubr.msk.bf16.mxu1 %vm1394_vm0, %v1393_v0 }
 0x2db   :  { %1298 = vmatprep.subr.bf16.mxu1 %v1393_v0 }
 0x2de   :  { %1299 = vmatpush3.bf16.msra.mxu1 %v1500_v12 }
 0x2df   :  { %1312 = vmatprep.subr.bf16.mxu1 %v1393_v0 }
 0x399   :  { %v579_v16 = vpop.f32.mrf.mxu1 }
 0x39a   :  { %v585_v29 = vadd.f32 %v579_v16, %v539_v28 }
 0x39b   :  { %v1286_v30 = vpop.f32.mrf.mxu1 }
 0x39c   :  { %1351 = vtanh.f32 %v585_v29  ;;  %v586_v34 = vmul.f32 0.5, %v585_v29  ;;  %v788_v30 = vld [vmem:[#allocation2 + $0x10] sm:$0xf] }
 0x39d   :  { %v582_v31 = vpop.f32.mrf.mxu1 }
 0x39e   :  { %1353 = vtanh.f32 %v586_v34 }
 0x39f   :  { %v1287_v32 = vpop.f32.mrf.mxu1 }
 0x3a9   :  { %v1352_v33 = vpop.eup %1351 }
 0x3aa   :  { %593 = vrot.lane.b32.xlu1 %v1352_v33, %s1395_s3 }
 0x3ab   :  { %v1354_v35 = vpop.eup %1353 }
 0x3ac   :  { %v588_v36 = vadd.f32 1.0, %v1354_v35 }
 0x3ae   :  { %v589_v37 = vmul.f32 0.5, %v588_v36 }
 0x3b0   :  { %v591_v40 = vmul.f32 %v589_v37, %v1530_v54 }
 0x41c   :  { %v594_v38 = vpop.permute.xlu1 %593 }
 0x41d   :  { %v596_v39 = vmul.f32 %v594_v38, %v589_v37 }
 0x41f   :  { %598 = vrot.lane.b32.xlu0 %v596_v39, %s1396_s5 }
 0x491   :  { %v599_v41 = vpop.permute.xlu0 %598 }
 0x492   :  { %v601_v42 = vadd.f32 %v599_v41, %v591_v40 }
 0x494   :  { %1355 = vtanh.f32 %v601_v42 }
 0x4a1   :  { %v1356_v43 = vpop.eup %1355 }
 0x4a2   :  { %604 = vrot.lane.b32.xlu1 %v1356_v43, %s1395_s3 }
 0x514   :  { %v605_v44 = vpop.permute.xlu1 %604 }
 0x515   :  { %v607_v45 = vmul.f32 %v605_v44, %v589_v37 }
 0x517   :  { %v1587_v46 = vpack.c.bf16 %v607_v45, %v607_v45 }
 0x519   :  { %623 = vrot.lane.b32.xlu0 %v1587_v46, %s1396_s5 }
 0x58b   :  { %v624_v47 = vpop.permute.xlu0 %623 }
 0x58c   :  { %1293 = vmatmul.mubr.msk.bf16.vlgmr.msra.gmra.mxu0 %vm454_vm3, %v624_v47 }
 0x58d   :  { %1305 = vmatpush3.bf16.msra.mxu0 %v1493_v11  ;;  %1308 = vmatprep.mubr.msk.bf16.mxu0 %vm1394_vm0, %v1393_v0 }
 0x58e   :  { %1306 = vmatprep.subr.bf16.mxu0 %v1393_v0 }
 0x591   :  { %1307 = vmatpush3.bf16.msra.mxu0 %v1500_v12 }
 0x592   :  { %1320 = vmatprep.subr.bf16.mxu0 %v1393_v0 }
 0x64c   :  { %v662_v49 = vpop.f32.mrf.mxu0 }
 0x64d   :  { %v668_v50 = vadd.f32 %v662_v49, %v622_v48 }
 0x64e   :  { %v1294_v51 = vpop.f32.mrf.mxu0 }
 0x64f   :  { %1357 = vtanh.f32 %v668_v50  ;;  %v669_v55 = vmul.f32 0.5, %v668_v50 }
 0x650   :  { %v665_v52 = vpop.f32.mrf.mxu0 }
 0x651   :  { %1359 = vtanh.f32 %v669_v55  ;;  %v871_v52 = vld [vmem:[#allocation2 + $0x14] sm:$0xf] }
 0x652   :  { %v1295_v53 = vpop.f32.mrf.mxu0 }
 0x65c   :  { %v1358_v54 = vpop.eup %1357 }
 0x65d   :  { %676 = vrot.lane.b32.xlu1 %v1358_v54, %s1395_s3 }
 0x65e   :  { %v1360_v56 = vpop.eup %1359 }
 0x65f   :  { %v671_v57 = vadd.f32 1.0, %v1360_v56 }
 0x661   :  { %v672_v58 = vmul.f32 0.5, %v671_v57 }
 0x663   :  { %v674_v61 = vmul.f32 %v672_v58, %v601_v42 }
 0x6cf   :  { %v677_v59 = vpop.permute.xlu1 %676 }
 0x6d0   :  { %v679_v60 = vmul.f32 %v677_v59, %v672_v58 }
 0x6d2   :  { %681 = vrot.lane.b32.xlu0 %v679_v60, %s1396_s5 }
 0x744   :  { %v682_v62 = vpop.permute.xlu0 %681 }
 0x745   :  { %v684_v63 = vadd.f32 %v682_v62, %v674_v61 }
 0x747   :  { %1361 = vtanh.f32 %v684_v63 }
 0x754   :  { %v1362_v1 = vpop.eup %1361 }
 0x755   :  { %687 = vrot.lane.b32.xlu1 %v1362_v1, %s1395_s3 }
 0x7c7   :  { %v688_v2 = vpop.permute.xlu1 %687 }
 0x7c8   :  { %v690_v4 = vmul.f32 %v688_v2, %v672_v58 }
 0x7ca   :  { %v1601_v5 = vpack.c.bf16 %v690_v4, %v690_v4 }
 0x7cc   :  { %706 = vrot.lane.b32.xlu0 %v1601_v5, %s1396_s5 }
 0x83e   :  { %v707_v6 = vpop.permute.xlu0 %706 }
 0x83f   :  { %1301 = vmatmul.mubr.msk.bf16.vlgmr.msra.gmra.mxu1 %vm454_vm3, %v707_v6 }
 0x840   :  { %1313 = vmatpush3.bf16.msra.mxu1 %v1493_v11  ;;  %1316 = vmatprep.mubr.msk.bf16.mxu1 %vm1394_vm0, %v1393_v0 }
 0x841   :  { %1314 = vmatprep.subr.bf16.mxu1 %v1393_v0 }
 0x844   :  { %1315 = vmatpush3.bf16.msra.mxu1 %v1500_v12 }
 0x845   :  { %1328 = vmatprep.subr.bf16.mxu1 %v1393_v0 }
 0x8ff   :  { %v745_v8 = vpop.f32.mrf.mxu1 }
 0x900   :  { %v751_v9 = vadd.f32 %v745_v8, %v705_v7 }
 0x901   :  { %v1302_v10 = vpop.f32.mrf.mxu1 }
 0x902   :  { %1363 = vtanh.f32 %v751_v9  ;;  %v752_v17 = vmul.f32 0.5, %v751_v9  ;;  %v954_v9 = vld [vmem:[#allocation2 + $0x18] sm:$0xf] }
 0x903   :  { %v748_v13 = vpop.f32.mrf.mxu1 }
 0x904   :  { %1365 = vtanh.f32 %v752_v17 }
 0x905   :  { %v1303_v14 = vpop.f32.mrf.mxu1 }
 0x90f   :  { %v1364_v15 = vpop.eup %1363 }
 0x910   :  { %759 = vrot.lane.b32.xlu1 %v1364_v15, %s1395_s3 }
 0x911   :  { %v1366_v18 = vpop.eup %1365 }
 0x912   :  { %v754_v19 = vadd.f32 1.0, %v1366_v18 }
 0x914   :  { %v755_v20 = vmul.f32 0.5, %v754_v19 }
 0x916   :  { %v757_v23 = vmul.f32 %v755_v20, %v684_v63 }
 0x982   :  { %v760_v21 = vpop.permute.xlu1 %759 }
 0x983   :  { %v762_v22 = vmul.f32 %v760_v21, %v755_v20 }
 0x985   :  { %764 = vrot.lane.b32.xlu0 %v762_v22, %s1396_s5 }
 0x9f7   :  { %v765_v24 = vpop.permute.xlu0 %764 }
 0x9f8   :  { %v767_v25 = vadd.f32 %v765_v24, %v757_v23 }
 0x9fa   :  { %1367 = vtanh.f32 %v767_v25 }
 0xa07   :  { %v1368_v26 = vpop.eup %1367 }
 0xa08   :  { %770 = vrot.lane.b32.xlu1 %v1368_v26, %s1395_s3 }
 0xa7a   :  { %v771_v27 = vpop.permute.xlu1 %770 }
 0xa7b   :  { %v773_v28 = vmul.f32 %v771_v27, %v755_v20 }
 0xa7d   :  { %v1615_v16 = vpack.c.bf16 %v773_v28, %v773_v28 }
 0xa7f   :  { %789 = vrot.lane.b32.xlu0 %v1615_v16, %s1396_s5 }
 0xaf1   :  { %v790_v29 = vpop.permute.xlu0 %789 }
 0xaf2   :  { %1309 = vmatmul.mubr.msk.bf16.vlgmr.msra.gmra.mxu0 %vm454_vm3, %v790_v29 }
 0xaf3   :  { %1321 = vmatpush3.bf16.msra.mxu0 %v1493_v11  ;;  %1324 = vmatprep.mubr.msk.bf16.mxu0 %vm1394_vm0, %v1393_v0 }
 0xaf4   :  { %1322 = vmatprep.subr.bf16.mxu0 %v1393_v0 }
 0xaf7   :  { %1323 = vmatpush3.bf16.msra.mxu0 %v1500_v12 }
 0xbb2   :  { %v828_v31 = vpop.f32.mrf.mxu0 }
 0xbb3   :  { %v834_v32 = vadd.f32 %v828_v31, %v788_v30 }
 0xbb4   :  { %v1310_v33 = vpop.f32.mrf.mxu0 }
 0xbb5   :  { %1369 = vtanh.f32 %v834_v32  ;;  %v835_v37 = vmul.f32 0.5, %v834_v32  ;;  %v1037_v33 = vld [vmem:[#allocation2 + $0x1c] sm:$0xf] }
 0xbb6   :  { %v831_v34 = vpop.f32.mrf.mxu0 }
 0xbb7   :  { %1371 = vtanh.f32 %v835_v37 }
 0xbb8   :  { %v1311_v35 = vpop.f32.mrf.mxu0 }
 0xbc2   :  { %v1370_v36 = vpop.eup %1369 }
 0xbc3   :  { %842 = vrot.lane.b32.xlu1 %v1370_v36, %s1395_s3 }
 0xbc4   :  { %v1372_v38 = vpop.eup %1371 }
 0xbc5   :  { %v837_v39 = vadd.f32 1.0, %v1372_v38 }
 0xbc7   :  { %v838_v40 = vmul.f32 0.5, %v837_v39 }
 0xbc9   :  { %v840_v43 = vmul.f32 %v838_v40, %v767_v25 }
 0xc35   :  { %v843_v41 = vpop.permute.xlu1 %842 }
 0xc36   :  { %v845_v42 = vmul.f32 %v843_v41, %v838_v40 }
 0xc38   :  { %847 = vrot.lane.b32.xlu0 %v845_v42, %s1396_s5  ;;  %v1397_v42 = vmov 1983009808  }
 0xcaa   :  { %v848_v44 = vpop.permute.xlu0 %847 }
 0xcab   :  { %v850_v45 = vadd.f32 %v848_v44, %v840_v43  ;;  %v528_v43 = vunpack.c.l.s4 %v1397_v42  ;;  %v530_v44 = vlaneseq }
 0xcad   :  { %1373 = vtanh.f32 %v850_v45 }
 0xcba   :  { %v1374_v47 = vpop.eup %1373 }
 0xcbb   :  { %853 = vrot.lane.b32.xlu1 %v1374_v47, %s1395_s3  ;;  %v529_v47 = vunpack.c.0.s8 %v528_v43 }
 0xd2d   :  { %v854_v48 = vpop.permute.xlu1 %853 }
 0xd2e   :  { %v856_v49 = vmul.f32 %v854_v48, %v838_v40  ;;  %v531_v48 = vshrl.u32 %v530_v44, 7 }
 0xd30   :  { %v1628_v50 = vpack.c.bf16 %v856_v49, %v856_v49 }
 0xd32   :  { %872 = vrot.lane.b32.xlu0 %v1628_v50, %s1396_s5 }
 0xda4   :  { %v873_v51 = vpop.permute.xlu0 %872 }
 0xda5   :  { %1317 = vmatmul.mubr.msk.bf16.vlgmr.msra.gmra.mxu1 %vm454_vm3, %v873_v51 }
 0xda6   :  { %1329 = vmatpush3.bf16.msra.mxu1 %v1493_v11  ;;  %1332 = vmatprep.mubr.msk.bf16.mxu1 %vm1394_vm0, %v1393_v0 }
 0xda7   :  { %1330 = vmatprep.subr.bf16.mxu1 %v1393_v0 }
 0xdaa   :  { %1331 = vmatpush3.bf16.msra.mxu1 %v1500_v12 }
 0xe65   :  { %v911_v53 = vpop.f32.mrf.mxu1 }
 0xe66   :  { %v917_v54 = vadd.f32 %v911_v53, %v871_v52  ;;  %v532_v52 = vsub.s32 %v529_v47, %v531_v48 }
 0xe67   :  { %v1318_v55 = vpop.f32.mrf.mxu1 }
 0xe68   :  { %1375 = vtanh.f32 %v917_v54  ;;  %v918_v59 = vmul.f32 0.5, %v917_v54  ;;  %v533_v54 = vrot.slane %v1568_v3, %v532_v52  ;;  %v699_v55 = vrot.slane %v1601_v5, %v532_v52 }
 0xe69   :  { %v914_v56 = vpop.f32.mrf.mxu1  ;;  %v616_v5 = vrot.slane %v1587_v46, %v532_v52 }
 0xe6a   :  { %1377 = vtanh.f32 %v918_v59 }
 0xe6b   :  { %v1319_v57 = vpop.f32.mrf.mxu1 }
 0xe75   :  { %v1376_v58 = vpop.eup %1375 }
 0xe76   :  { %925 = vrot.lane.b32.xlu1 %v1376_v58, %s1395_s3 }
 0xe77   :  { %v1378_v11 = vpop.eup %1377 }
 0xe78   :  { %v920_v60 = vadd.f32 1.0, %v1378_v11 }
 0xe7a   :  { %v921_v61 = vmul.f32 0.5, %v920_v60  ;;  %v782_v60 = vrot.slane %v1615_v16, %v532_v52 }
 0xe7c   :  { %v923_v0 = vmul.f32 %v921_v61, %v850_v45 }
 0xee8   :  { %v926_v62 = vpop.permute.xlu1 %925 }
 0xee9   :  { %v928_v63 = vmul.f32 %v926_v62, %v921_v61 }
 0xeeb   :  { %930 = vrot.lane.b32.xlu0 %v928_v63, %s1396_s5 }
 0xf5d   :  { %v931_v12 = vpop.permute.xlu0 %930 }
 0xf5e   :  { %v933_v1 = vadd.f32 %v931_v12, %v923_v0 }
 0xf60   :  { %1379 = vtanh.f32 %v933_v1 }
 0xf6d   :  { %v1380_v2 = vpop.eup %1379 }
 0xf6e   :  { %936 = vrot.lane.b32.xlu1 %v1380_v2, %s1395_s3 }
 0xfe0   :  { %v937_v4 = vpop.permute.xlu1 %936 }
 0xfe1   :  { %v939_v6 = vmul.f32 %v937_v4, %v921_v61 }
 0xfe3   :  { %v1641_v7 = vpack.c.bf16 %v939_v6, %v939_v6 }
 0xfe5   :  { %955 = vrot.lane.b32.xlu0 %v1641_v7, %s1396_s5  ;;  %v948_v61 = vrot.slane %v1641_v7, %v532_v52 }
0x1057   :  { %v956_v8 = vpop.permute.xlu0 %955 }
0x1058   :  { %1325 = vmatmul.mubr.msk.bf16.vlgmr.msra.gmra.mxu0 %vm454_vm3, %v956_v8 }
0x1118   :  { %v994_v10 = vpop.f32.mrf.mxu0 }
0x1119   :  { %v1000_v13 = vadd.f32 %v994_v10, %v954_v9 }
0x111a   :  { %v1326_v14 = vpop.f32.mrf.mxu0 }
0x111b   :  { %1381 = vtanh.f32 %v1000_v13  ;;  %v1001_v19 = vmul.f32 0.5, %v1000_v13 }
0x111c   :  { %v997_v15 = vpop.f32.mrf.mxu0 }
0x111d   :  { %1383 = vtanh.f32 %v1001_v19 }
0x111e   :  { %v1327_v17 = vpop.f32.mrf.mxu0 }
0x1128   :  { %v1382_v18 = vpop.eup %1381 }
0x1129   :  { %1008 = vrot.lane.b32.xlu1 %v1382_v18, %s1395_s3 }
0x112a   :  { %v1384_v20 = vpop.eup %1383 }
0x112b   :  { %v1003_v21 = vadd.f32 1.0, %v1384_v20 }
0x112d   :  { %v1004_v22 = vmul.f32 0.5, %v1003_v21 }
0x112f   :  { %v1006_v25 = vmul.f32 %v1004_v22, %v933_v1  ;;  %v865_v1 = vrot.slane %v1628_v50, %v532_v52 }
0x119b   :  { %v1009_v23 = vpop.permute.xlu1 %1008 }
0x119c   :  { %v1011_v24 = vmul.f32 %v1009_v23, %v1004_v22 }
0x119e   :  { %1013 = vrot.lane.b32.xlu0 %v1011_v24, %s1396_s5 }
0x1210   :  { %v1014_v26 = vpop.permute.xlu0 %1013 }
0x1211   :  { %v1016_v27 = vadd.f32 %v1014_v26, %v1006_v25 }
0x1213   :  { %1385 = vtanh.f32 %v1016_v27 }
0x1220   :  { %v1386_v28 = vpop.eup %1385 }
0x1221   :  { %1019 = vrot.lane.b32.xlu1 %v1386_v28, %s1395_s3 }
0x1293   :  { %v1020_v29 = vpop.permute.xlu1 %1019 }
0x1294   :  { %v1022_v30 = vmul.f32 %v1020_v29, %v1004_v22 }
0x1296   :  { %v1649_v31 = vpack.c.bf16 %v1022_v30, %v1022_v30 }
0x1298   :  { %1038 = vrot.lane.b32.xlu0 %v1649_v31, %s1396_s5  ;;  %v1031_v2 = vrot.slane %v1649_v31, %v532_v52 }
0x130a   :  { %v1039_v32 = vpop.permute.xlu0 %1038 }
0x130b   :  { %1333 = vmatmul.mubr.msk.bf16.vlgmr.msra.gmra.mxu1 %vm454_vm3, %v1039_v32 }
0x13cb   :  { %v1077_v34 = vpop.f32.mrf.mxu1 }
0x13cc   :  { %v1083_v35 = vadd.f32 %v1077_v34, %v1037_v33 }
0x13cd   :  { %v1334_v36 = vpop.f32.mrf.mxu1 }
0x13ce   :  { %1387 = vtanh.f32 %v1083_v35  ;;  %v1084_v40 = vmul.f32 0.5, %v1083_v35 }
0x13cf   :  { %v1080_v37 = vpop.f32.mrf.mxu1 }
0x13d0   :  { %1389 = vtanh.f32 %v1084_v40 }
0x13d1   :  { %v1335_v38 = vpop.f32.mrf.mxu1 }
0x13db   :  { %v1388_v39 = vpop.eup %1387 }
0x13dc   :  { %1091 = vrot.lane.b32.xlu1 %v1388_v39, %s1395_s3 }
0x13dd   :  { %v1390_v41 = vpop.eup %1389 }
0x13de   :  { %v1086_v45 = vadd.f32 1.0, %v1390_v41 }
0x13e0   :  { %v1087_v49 = vmul.f32 0.5, %v1086_v45 }
0x13e2   :  { %v1089_v56 = vmul.f32 %v1087_v49, %v1016_v27 }
0x144e   :  { %v1092_v51 = vpop.permute.xlu1 %1091 }
0x144f   :  { %v1094_v53 = vmul.f32 %v1092_v51, %v1087_v49 }
0x1451   :  { %1096 = vrot.lane.b32.xlu0 %v1094_v53, %s1396_s5 }
0x1455   :  { %534 = vrot.lane.b32.xlu0 %v533_v54, %s1396_s5 }
0x1459   :  { %700 = vrot.lane.b32.xlu0 %v699_v55, %s1396_s5 }
0x14c3   :  { %v1097_v57 = vpop.permute.xlu0 %1096 }
0x14c4   :  { %v1099_v58 = vadd.f32 %v1097_v57, %v1089_v56 }
0x14c6   :  { %1391 = vtanh.f32 %v1099_v58 }
0x14c7   :  { %v535_v59 = vpop.permute.xlu0 %534 }
0x14c8   :  { %538 = vst.msk [vmem:[%s1721_s6] sm:$0x3] %vm537_vm4, %v535_v59 }
0x14cb   :  { %v701_v11 = vpop.permute.xlu0 %700 }
0x14cc   :  { %1173 = vst.msk [vmem:[%s1721_s6 + $0x4] sm:$0x3] %vm537_vm4, %v701_v11 }
0x14d3   :  { %v1392_v3 = vpop.eup %1391 }
0x14d4   :  { %1102 = vrot.lane.b32.xlu1 %v1392_v3, %s1395_s3 }
0x14d8   :  { %1127 = vrot.lane.b32.xlu1 %v1099_v58, %s1398_s10 }
0x14dc   :  { %617 = vrot.lane.b32.xlu1 %v616_v5, %s1396_s5 }
0x14e0   :  { %783 = vrot.lane.b32.xlu1 %v782_v60, %s1396_s5 }
0x14e4   :  { %949 = vrot.lane.b32.xlu1 %v948_v61, %s1396_s5 }
0x1546   :  { %v1103_v62 = vpop.permute.xlu1 %1102 }
0x1547   :  { %v1105_v63 = vmul.f32 %v1103_v62, %v1087_v49 }
0x1549   :  { %v1106_v0 = vpack.c.bf16 %v1105_v63, %v1105_v63  ;;  %1121 = vrot.lane.b32.xlu0 %v1105_v63, %s1396_s5 }
0x154a   :  { %v1128_v12 = vpop.permute.xlu1 %1127 }
0x154b   :  { %1130 = vst.msk [vmem:[#allocation4] sm:$0xf] %vm32_vm2, %v1128_v12  ;;  %v1114_v46 = vrot.slane %v1106_v0, %v532_v52 }
0x154d   :  { %866 = vrot.lane.b32.xlu0 %v865_v1, %s1396_s5  ;;  %1115 = vrot.lane.b32.xlu1 %v1114_v46, %s1396_s5 }
0x154e   :  { %v618_v16 = vpop.permute.xlu1 %617 }
0x154f   :  { %1171 = vst.msk [vmem:[%s1721_s6 + $0x2] sm:$0x3] %vm537_vm4, %v618_v16 }
0x1551   :  { %1032 = vrot.lane.b32.xlu0 %v1031_v2, %s1396_s5 }
0x1552   :  { %v1136_v4 = vld [vmem:[#allocation4] sm:$0xf]  ;;  %v784_v6 = vpop.permute.xlu1 %783 }
0x1553   :  { %1137 = vst.msk [vmem:[%s1722_s8] sm:$0xf] %vm32_vm2, %v1136_v4 }
0x1554   :  { %1175 = vst.msk [vmem:[%s1721_s6 + $0x6] sm:$0x3] %vm537_vm4, %v784_v6 }
0x1556   :  { %v950_v50 = vpop.permute.xlu1 %949 }
0x1557   :  { %1179 = vst.msk [vmem:[%s1721_s6 + $0xa] sm:$0x3] %vm537_vm4, %v950_v50 }
0x15bb   :  { %v1122_v7 = vpop.permute.xlu0 %1121 }
0x15bc   :  { %1125 = vst.msk [vmem:[#allocation3] sm:$0xf] %vm32_vm2, %v1122_v7 }
0x15bf   :  { %v867_v8 = vpop.permute.xlu0 %866  ;;  %v1116_v9 = vpop.permute.xlu1 %1115 }
0x15c0   :  { %1177 = vst.msk [vmem:[%s1721_s6 + $0x8] sm:$0x3] %vm537_vm4, %v867_v8  ;;  %1183 = vst.msk [vmem:[%s1721_s6 + $0xe] sm:$0x3] %vm537_vm4, %v1116_v9 }
0x15c3   :  { %v1134_v10 = vld [vmem:[#allocation3] sm:$0xf]  ;;  %v1033_v13 = vpop.permute.xlu0 %1032 }
0x15c4   :  { %1135 = vst.msk [vmem:[%s1723_s7] sm:$0xf] %vm32_vm2, %v1134_v10 }
0x15c5   :  { %1181 = vst.msk [vmem:[%s1721_s6 + $0xc] sm:$0x3] %vm537_vm4, %v1033_v13 }

// kernel: lstm_model_forward.3
= control target key start
LH: loop header
LB: loop body
LE: loop exit
PB: predicated region body
PF: predicated region fallthrough
CT: control target
= control target key end

     0   :  { %v1392_v1 = vmov 0.0   ;;  %vm1393_vm0 = vmmov 0   ;;  %vm33_vm1 = vcmask 257024   ;;  %vm65_vm2 = vcmask 261120   ;;  %s1718_s0 = inlined_call_operand.vmem [shape: bf16[8,4,32], index: 0, kind: input, shape index: {}]   ;;  %s1719_s1 = inlined_call_operand.vmem [shape: bf16[32,128], index: 1, kind: input, shape index: {}]   ;;  %s1720_s2 = inlined_call_operand.vmem [shape: bf16[32,128], index: 2, kind: input, shape index: {}]   ;;  %s1721_s3 = inlined_call_operand.vmem [shape: f32[1,128], index: 3, kind: input, shape index: {}]   ;;  %s1722_s4 = inlined_call_operand.vmem [shape: f32[4,32], index: 4, kind: input, shape index: {}]   ;;  %s1723_s5 = inlined_call_operand.vmem [shape: f32[4,32], index: 5, kind: input, shape index: {}]   ;;  %s1724_s6 = inlined_call_operand.hbm [shape: f32[8,4,32], index: 6, kind: output, shape index: {0}]   ;;  %s1725_s7 = inlined_call_operand.vmem [shape: f32[4,32], index: 7, kind: output, shape index: {1}]   ;;  %s1726_s8 = inlined_call_operand.vmem [shape: f32[4,32], index: 8, kind: output, shape index: {2}]  }
   0x1   :  { %v1447_v0 = vld [vmem:[%s1719_s1 + $0x8] sm:$0xff]   ;;  %1183 = vmatprep.subr.bf16.mxu0 %v1392_v1  ;;  %1191 = vmatprep.subr.bf16.mxu1 %v1392_v1  ;;  %v1455_v2 = vld [vmem:[%s1719_s1] sm:$0xff]  }
   0x2   :  { %1184 = vmatpush3.bf16.msra.mxu0 %v1447_v0  ;;  %1187 = vmatprep.mubr.msk.bf16.mxu0 %vm1393_vm0, %v1392_v1  ;;  %v32_v3 = vld [vmem:[%s1722_s4] sm:$0xf] }
   0x3   :  { %1185 = vmatprep.subr.bf16.mxu0 %v1392_v1  ;;  %1192 = vmatpush3.bf16.msra.mxu1 %v1447_v0  ;;  %v46_v4 = vld [vmem:[%s1718_s0] sm:$0x3]  ;;  %34 = vst.msk [vmem:[#allocation3] sm:$0xf] %vm33_vm1, %v32_v3 }
   0x4   :  { %1193 = vmatprep.subr.bf16.mxu1 %v1392_v1  ;;  %1195 = vmatprep.mubr.msk.bf16.mxu1 %vm1393_vm0, %v1392_v1 }
   0x6   :  { %1186 = vmatpush3.bf16.msra.mxu0 %v1455_v2 }
   0x7   :  { %14 = vsyncpa [#allocation6], 0  ;;  %1199 = vmatprep.subr.bf16.mxu0 %v1392_v1  ;;  %1194 = vmatpush3.bf16.msra.mxu1 %v1455_v2  ;;  %v1113_v5 = vld [vmem:[%s1718_s0 + $0x4] sm:$0x3]  ;;  %v1117_v6 = vld [vmem:[%s1718_s0 + $0x8] sm:$0x3] }
   0x8   :  { %1207 = vmatprep.subr.bf16.mxu1 %v1392_v1  ;;  %v1121_v7 = vld [vmem:[%s1718_s0 + $0xc] sm:$0x3]  ;;  %v1515_v9 = vld [vmem:[%s1720_s2] sm:$0xff]   ;;  %v1119_v55 = vld [vmem:[%s1718_s0 + $0xa] sm:$0x3]  ;;  %s1397_s11 = smov [#allocation5]  }
   0x9   :  { %1188 = vmatmul.mubr.msk.bf16.vlgmr.msra.gmra.mxu0 %vm65_vm2, %v46_v4  ;;  %v1507_v8 = vld [vmem:[%s1720_s2 + $0x8] sm:$0xff]   ;;  %v35_v12 = vld [vmem:[%s1723_s5] sm:$0xf]  ;;  %s1395_s5 = smov 32   ;;  %v1115_v53 = vld [vmem:[%s1718_s0 + $0x6] sm:$0x3] }
   0xa   :  { %1200 = vmatpush3.bf16.msra.mxu0 %v1447_v0  ;;  %1203 = vmatprep.mubr.msk.bf16.mxu0 %vm1393_vm0, %v1392_v1  ;;  %v439_v10 = vld [vmem:[#allocation3] sm:$0xf]  ;;  %36 = vst.msk [vmem:[#allocation4] sm:$0xf] %vm33_vm1, %v35_v12  ;;  %v1123_v56 = vld [vmem:[%s1718_s0 + $0xe] sm:$0x3] }
   0xb   :  { %1201 = vmatprep.subr.bf16.mxu0 %v1392_v1  ;;  %v442_v11 = vpack.c.bf16 %v439_v10, %v439_v10  ;;  %v1536_v13 = vld [vmem:[%s1721_s3] ss:$0 sm:$0xff]  ;;  %s1394_s3 = smov 64   ;;  %v1111_v52 = vld [vmem:[%s1718_s0 + $0x2] sm:$0x3]  ;;  %s1396_s0 = smov 96  }
   0xc   :  { %1196 = vmatmul.mubr.msk.bf16.vlgmr.msra.gmra.mxu1 %vm65_vm2, %v1111_v52  ;;  %s1088_s4 = sshll.u32 %s1397_s11, 4  ;;  %s1089_s4 = int_to_ptr.vmem [resolvable:$true] %s1088_s4 }
   0xd   :  { %1208 = vmatpush3.bf16.msra.mxu1 %v1447_v0  ;;  %1211 = vmatprep.mubr.msk.bf16.mxu1 %vm1393_vm0, %v1392_v1  ;;  %s1370_s13 = scalar_lea.vmem %s1089_s4, 512  ;;  %p1375_p1 = scmp.lt.s32.totalorder %s1089_s4, %s1089_s4 }
   0xe   :  { %1202 = vmatpush3.bf16.msra.mxu0 %v1455_v2  ;;  %1209 = vmatprep.subr.bf16.mxu1 %v1392_v1  ;;  %p1371_p0 = scmp.ne.s32.totalorder %s1089_s4, %s1370_s13  ;;  %p1376_p2 = scmp.lt.s32.totalorder %s1370_s13, %s1370_s13 }
   0xf   :  { %1215 = vmatprep.subr.bf16.mxu0 %v1392_v1 }
  0x10   :  { %p1377_p3 = por %p1376_p2, %p1375_p1 }
  0x11   :  { %1204 = vmatmul.mubr.msk.bf16.vlgmr.msra.gmra.mxu0 %vm65_vm2, %v1113_v5  ;;  %v440_v41 = vld [vmem:[#allocation4] sm:$0xf]  ;;  %1210 = vmatpush3.bf16.msra.mxu1 %v1455_v2 }
  0x12   :  { %1216 = vmatpush3.bf16.msra.mxu0 %v1447_v0  ;;  %1219 = vmatprep.mubr.msk.bf16.mxu0 %vm1393_vm0, %v1392_v1  ;;  %p1378_p4 = pnand %p1377_p3, %p1371_p0 }
  0x13   :  { %1217 = vmatprep.subr.bf16.mxu0 %v1392_v1  ;;  %1223 = vmatprep.subr.bf16.mxu1 %v1392_v1 }
  0x14   :  { %1212 = vmatmul.mubr.msk.bf16.vlgmr.msra.gmra.mxu1 %vm65_vm2, %v1115_v53 }
  0x15   :  { %1224 = vmatpush3.bf16.msra.mxu1 %v1447_v0  ;;  %1227 = vmatprep.mubr.msk.bf16.mxu1 %vm1393_vm0, %v1392_v1 }
  0x16   :  { %1218 = vmatpush3.bf16.msra.mxu0 %v1455_v2  ;;  %1225 = vmatprep.subr.bf16.mxu1 %v1392_v1 }
  0x17   :  { %1231 = vmatprep.subr.bf16.mxu0 %v1392_v1 }
  0x19   :  { %1220 = vmatmul.mubr.msk.bf16.vlgmr.msra.gmra.mxu0 %vm65_vm2, %v1117_v6  ;;  %1226 = vmatpush3.bf16.msra.mxu1 %v1455_v2 }
  0x1a   :  { %1232 = vmatpush3.bf16.msra.mxu0 %v1447_v0  ;;  %1235 = vmatprep.mubr.msk.bf16.mxu0 %vm1393_vm0, %v1392_v1 }
  0x1b   :  { %1233 = vmatprep.subr.bf16.mxu0 %v1392_v1  ;;  %1239 = vmatprep.subr.bf16.mxu1 %v1392_v1 }
  0x1c   :  { %1228 = vmatmul.mubr.msk.bf16.vlgmr.msra.gmra.mxu1 %vm65_vm2, %v1119_v55 }
  0x1d   :  { %1240 = vmatpush3.bf16.msra.mxu1 %v1447_v0  ;;  %1243 = vmatprep.mubr.msk.bf16.mxu1 %vm1393_vm0, %v1392_v1 }
  0x1e   :  { %1234 = vmatpush3.bf16.msra.mxu0 %v1455_v2  ;;  %1241 = vmatprep.subr.bf16.mxu1 %v1392_v1 }
  0x1f   :  { %1247 = vmatprep.subr.bf16.mxu0 %v1392_v1 }
  0x21   :  { %1236 = vmatmul.mubr.msk.bf16.vlgmr.msra.gmra.mxu0 %vm65_vm2, %v1121_v7  ;;  %1242 = vmatpush3.bf16.msra.mxu1 %v1455_v2 }
  0x22   :  { %1248 = vmatpush3.bf16.msra.mxu0 %v1507_v8  ;;  %1251 = vmatprep.mubr.msk.bf16.mxu0 %vm1393_vm0, %v1392_v1 }
  0x23   :  { %1249 = vmatprep.subr.bf16.mxu0 %v1392_v1  ;;  %1255 = vmatprep.subr.bf16.mxu1 %v1392_v1 }
  0x24   :  { %1244 = vmatmul.mubr.msk.bf16.vlgmr.msra.gmra.mxu1 %vm65_vm2, %v1123_v56 }
  0x25   :  { %1256 = vmatpush3.bf16.msra.mxu1 %v1507_v8  ;;  %1259 = vmatprep.mubr.msk.bf16.mxu1 %vm1393_vm0, %v1392_v1 }
  0x26   :  { %1250 = vmatpush3.bf16.msra.mxu0 %v1515_v9  ;;  %1257 = vmatprep.subr.bf16.mxu1 %v1392_v1 }
  0x27   :  { %1263 = vmatprep.subr.bf16.mxu0 %v1392_v1 }
  0x29   :  { %1252 = vmatmul.mubr.msk.bf16.vlgmr.msra.gmra.mxu0 %vm65_vm2, %v442_v11  ;;  %1258 = vmatpush3.bf16.msra.mxu1 %v1515_v9 }
  0x2a   :  { %1264 = vmatpush3.bf16.msra.mxu0 %v1507_v8  ;;  %1267 = vmatprep.mubr.msk.bf16.mxu0 %vm1393_vm0, %v1392_v1 }
  0x2b   :  { %1265 = vmatprep.subr.bf16.mxu0 %v1392_v1  ;;  %1271 = vmatprep.subr.bf16.mxu1 %v1392_v1 }
  0x2e   :  { %1266 = vmatpush3.bf16.msra.mxu0 %v1515_v9 }
  0x2f   :  { %1279 = vmatprep.subr.bf16.mxu0 %v1392_v1 }
  0xc9   :  { %v103_v14 = vpop.f32.mrf.mxu0 }
  0xca   :  { %v104_v15 = vadd.f32 %v1536_v13, %v103_v14 }
  0xcb   :  { %v1189_v16 = vpop.f32.mrf.mxu0 }
  0xcc   :  { %109 = vst [vmem:[#allocation2] sm:$0xf] %v104_v15  ;;  %v149_v60 = vpop.f32.mrf.mxu1 }
  0xcd   :  { %v106_v17 = vpop.f32.mrf.mxu0  ;;  %v150_v61 = vadd.f32 %v1536_v13, %v149_v60 }
  0xce   :  { %v1197_v62 = vpop.f32.mrf.mxu1 }
  0xcf   :  { %v1190_v18 = vpop.f32.mrf.mxu0  ;;  %156 = vst [vmem:[#allocation2 + $0x4] sm:$0xf] %v150_v61 }
  0xd0   :  { %v152_v63 = vpop.f32.mrf.mxu1 }
  0xd1   :  { %v196_v19 = vpop.f32.mrf.mxu0 }
  0xd2   :  { %v197_v20 = vadd.f32 %v1536_v13, %v196_v19  ;;  %v1198_v0 = vpop.f32.mrf.mxu1 }
  0xd3   :  { %v1205_v21 = vpop.f32.mrf.mxu0  ;;  %v441_v34 = vld [vmem:[#allocation2] sm:$0xf] }
  0xd4   :  { %203 = vst [vmem:[#allocation2 + $0x8] sm:$0xf] %v197_v20  ;;  %v243_v2 = vpop.f32.mrf.mxu1 }
  0xd5   :  { %v199_v22 = vpop.f32.mrf.mxu0  ;;  %v244_v3 = vadd.f32 %v1536_v13, %v243_v2 }
  0xd6   :  { %v1213_v4 = vpop.f32.mrf.mxu1  ;;  %v531_v21 = vld [vmem:[#allocation2 + $0x4] sm:$0xf] }
  0xd7   :  { %v1206_v23 = vpop.f32.mrf.mxu0  ;;  %250 = vst [vmem:[#allocation2 + $0xc] sm:$0xf] %v244_v3 }
  0xd8   :  { %v246_v5 = vpop.f32.mrf.mxu1 }
  0xd9   :  { %v290_v24 = vpop.f32.mrf.mxu0 }
  0xda   :  { %v291_v25 = vadd.f32 %v1536_v13, %v290_v24  ;;  %v1214_v6 = vpop.f32.mrf.mxu1 }
  0xdb   :  { %v1221_v26 = vpop.f32.mrf.mxu0 }
  0xdc   :  { %297 = vst [vmem:[#allocation2 + $0x10] sm:$0xf] %v291_v25  ;;  %v337_v7 = vpop.f32.mrf.mxu1 }
  0xdd   :  { %v293_v27 = vpop.f32.mrf.mxu0  ;;  %v338_v10 = vadd.f32 %v1536_v13, %v337_v7 }
  0xde   :  { %v1229_v11 = vpop.f32.mrf.mxu1  ;;  %v685_v63 = vld [vmem:[#allocation2 + $0xc] sm:$0xf] }
  0xdf   :  { %v1222_v28 = vpop.f32.mrf.mxu0  ;;  %344 = vst [vmem:[#allocation2 + $0x14] sm:$0xf] %v338_v10 }
  0xe0   :  { %v340_v12 = vpop.f32.mrf.mxu1 }
  0xe1   :  { %v384_v29 = vpop.f32.mrf.mxu0 }
  0xe2   :  { %v385_v30 = vadd.f32 %v1536_v13, %v384_v29  ;;  %v1230_v14 = vpop.f32.mrf.mxu1 }
  0xe3   :  { %v1237_v31 = vpop.f32.mrf.mxu0 }
  0xe4   :  { %391 = vst [vmem:[#allocation2 + $0x18] sm:$0xf] %v385_v30  ;;  %v431_v15 = vpop.f32.mrf.mxu1 }
  0xe5   :  { %v387_v32 = vpop.f32.mrf.mxu0  ;;  %v432_v16 = vadd.f32 %v1536_v13, %v431_v15 }
  0xe6   :  { %v1245_v17 = vpop.f32.mrf.mxu1 }
  0xe7   :  { %v1238_v33 = vpop.f32.mrf.mxu0  ;;  %438 = vst [vmem:[#allocation2 + $0x1c] sm:$0xf] %v432_v16 }
  0xe8   :  { %v434_v18 = vpop.f32.mrf.mxu1 }
  0xe9   :  { %v492_v35 = vpop.f32.mrf.mxu0 }
  0xea   :  { %v498_v36 = vadd.f32 %v492_v35, %v441_v34  ;;  %v1246_v19 = vpop.f32.mrf.mxu1 }
  0xeb   :  { %v1253_v37 = vpop.f32.mrf.mxu0 }
  0xec   :  { %1322 = vtanh.f32 %v498_v36  ;;  %v499_v42 = vmul.f32 0.5, %v498_v36 }
  0xed   :  { %v495_v38 = vpop.f32.mrf.mxu0 }
  0xee   :  { %1324 = vtanh.f32 %v499_v42 }
  0xef   :  { %v1254_v39 = vpop.f32.mrf.mxu0 }
  0xf9   :  { %v1323_v40 = vpop.eup %1322 }
  0xfa   :  { %510 = vrot.lane.b32.xlu0 %v1323_v40, %s1394_s3 }
  0xfb   :  { %v1325_v43 = vpop.eup %1324 }
  0xfc   :  { %v501_v44 = vadd.f32 1.0, %v1325_v43 }
  0xfe   :  { %505 = vrot.lane.b32.xlu0 %v440_v41, %s1395_s5  ;;  %v502_v45 = vmul.f32 0.5, %v501_v44  ;;  %v608_v41 = vld [vmem:[#allocation2 + $0x8] sm:$0xf] }
 0x16c   :  { %v511_v46 = vpop.permute.xlu0 %510 }
 0x16d   :  { %v513_v47 = vmul.f32 %v511_v46, %v502_v45 }
 0x16f   :  { %515 = vrot.lane.b32.xlu1 %v513_v47, %s1395_s5 }
 0x170   :  { %v506_v48 = vpop.permute.xlu0 %505 }
 0x171   :  { %v508_v49 = vmul.f32 %v506_v48, %v502_v45 }
 0x1e1   :  { %v516_v50 = vpop.permute.xlu1 %515 }
 0x1e2   :  { %v1545_v51 = vadd.f32 %v516_v50, %v508_v49 }
 0x1e4   :  { %1326 = vtanh.f32 %v1545_v51 }
 0x1f1   :  { %v1327_v54 = vpop.eup %1326 }
 0x1f2   :  { %521 = vrot.lane.b32.xlu1 %v1327_v54, %s1394_s3 }
 0x264   :  { %v522_v57 = vpop.permute.xlu1 %521 }
 0x265   :  { %v1589_v58 = vmul.f32 %v522_v57, %v502_v45 }
 0x267   :  { %v532_v59 = vpack.c.bf16 %v1589_v58, %v1589_v58 }
 0x269   :  { %534 = vrot.lane.b32.xlu0 %v532_v59, %s1395_s5 }
 0x2db   :  { %v535_v20 = vpop.permute.xlu0 %534 }
 0x2dc   :  { %1260 = vmatmul.mubr.msk.bf16.vlgmr.msra.gmra.mxu1 %vm65_vm2, %v535_v20 }
 0x2dd   :  { %1272 = vmatpush3.bf16.msra.mxu1 %v1507_v8  ;;  %1275 = vmatprep.mubr.msk.bf16.mxu1 %vm1393_vm0, %v1392_v1 }
 0x2de   :  { %1273 = vmatprep.subr.bf16.mxu1 %v1392_v1 }
 0x2e1   :  { %1274 = vmatpush3.bf16.msra.mxu1 %v1515_v9 }
 0x2e2   :  { %1287 = vmatprep.subr.bf16.mxu1 %v1392_v1 }
 0x39c   :  { %v573_v13 = vpop.f32.mrf.mxu1 }
 0x39d   :  { %v579_v22 = vadd.f32 %v573_v13, %v531_v21 }
 0x39e   :  { %v1261_v23 = vpop.f32.mrf.mxu1 }
 0x39f   :  { %1328 = vtanh.f32 %v579_v22  ;;  %v580_v27 = vmul.f32 0.5, %v579_v22  ;;  %v762_v23 = vld [vmem:[#allocation2 + $0x10] sm:$0xf] }
 0x3a0   :  { %v576_v24 = vpop.f32.mrf.mxu1 }
 0x3a1   :  { %1330 = vtanh.f32 %v580_v27 }
 0x3a2   :  { %v1262_v25 = vpop.f32.mrf.mxu1 }
 0x3ac   :  { %v1329_v26 = vpop.eup %1328 }
 0x3ad   :  { %587 = vrot.lane.b32.xlu1 %v1329_v26, %s1394_s3 }
 0x3ae   :  { %v1331_v28 = vpop.eup %1330 }
 0x3af   :  { %v582_v29 = vadd.f32 1.0, %v1331_v28 }
 0x3b1   :  { %v583_v30 = vmul.f32 0.5, %v582_v29 }
 0x3b3   :  { %v585_v33 = vmul.f32 %v583_v30, %v1545_v51 }
 0x41f   :  { %v588_v31 = vpop.permute.xlu1 %587 }
 0x420   :  { %v590_v32 = vmul.f32 %v588_v31, %v583_v30 }
 0x422   :  { %592 = vrot.lane.b32.xlu0 %v590_v32, %s1395_s5 }
 0x494   :  { %v593_v34 = vpop.permute.xlu0 %592 }
 0x495   :  { %v595_v35 = vadd.f32 %v593_v34, %v585_v33 }
 0x497   :  { %1332 = vtanh.f32 %v595_v35 }
 0x4a4   :  { %v1333_v36 = vpop.eup %1332 }
 0x4a5   :  { %598 = vrot.lane.b32.xlu1 %v1333_v36, %s1394_s3 }
 0x517   :  { %v599_v37 = vpop.permute.xlu1 %598 }
 0x518   :  { %v1609_v38 = vmul.f32 %v599_v37, %v583_v30 }
 0x51a   :  { %v609_v39 = vpack.c.bf16 %v1609_v38, %v1609_v38 }
 0x51c   :  { %611 = vrot.lane.b32.xlu0 %v609_v39, %s1395_s5 }
 0x58e   :  { %v612_v40 = vpop.permute.xlu0 %611 }
 0x58f   :  { %1268 = vmatmul.mubr.msk.bf16.vlgmr.msra.gmra.mxu0 %vm65_vm2, %v612_v40 }
 0x590   :  { %1280 = vmatpush3.bf16.msra.mxu0 %v1507_v8  ;;  %1283 = vmatprep.mubr.msk.bf16.mxu0 %vm1393_vm0, %v1392_v1 }
 0x591   :  { %1281 = vmatprep.subr.bf16.mxu0 %v1392_v1 }
 0x594   :  { %1282 = vmatpush3.bf16.msra.mxu0 %v1515_v9 }
 0x595   :  { %1295 = vmatprep.subr.bf16.mxu0 %v1392_v1 }
 0x64f   :  { %v650_v42 = vpop.f32.mrf.mxu0 }
 0x650   :  { %v656_v43 = vadd.f32 %v650_v42, %v608_v41 }
 0x651   :  { %v1269_v44 = vpop.f32.mrf.mxu0 }
 0x652   :  { %1334 = vtanh.f32 %v656_v43  ;;  %v657_v48 = vmul.f32 0.5, %v656_v43 }
 0x653   :  { %v653_v45 = vpop.f32.mrf.mxu0 }
 0x654   :  { %1336 = vtanh.f32 %v657_v48  ;;  %v839_v45 = vld [vmem:[#allocation2 + $0x14] sm:$0xf] }
 0x655   :  { %v1270_v46 = vpop.f32.mrf.mxu0 }
 0x65f   :  { %v1335_v47 = vpop.eup %1334 }
 0x660   :  { %664 = vrot.lane.b32.xlu1 %v1335_v47, %s1394_s3 }
 0x661   :  { %v1337_v49 = vpop.eup %1336 }
 0x662   :  { %v659_v50 = vadd.f32 1.0, %v1337_v49 }
 0x664   :  { %v660_v51 = vmul.f32 0.5, %v659_v50 }
 0x666   :  { %v662_v54 = vmul.f32 %v660_v51, %v595_v35 }
 0x6d2   :  { %v665_v52 = vpop.permute.xlu1 %664 }
 0x6d3   :  { %v667_v53 = vmul.f32 %v665_v52, %v660_v51 }
 0x6d5   :  { %669 = vrot.lane.b32.xlu0 %v667_v53, %s1395_s5 }
 0x747   :  { %v670_v55 = vpop.permute.xlu0 %669 }
 0x748   :  { %v672_v56 = vadd.f32 %v670_v55, %v662_v54 }
 0x74a   :  { %1338 = vtanh.f32 %v672_v56 }
 0x757   :  { %v1339_v57 = vpop.eup %1338 }
 0x758   :  { %675 = vrot.lane.b32.xlu1 %v1339_v57, %s1394_s3 }
 0x7ca   :  { %v676_v59 = vpop.permute.xlu1 %675 }
 0x7cb   :  { %v1624_v60 = vmul.f32 %v676_v59, %v660_v51 }
 0x7cd   :  { %v686_v61 = vpack.c.bf16 %v1624_v60, %v1624_v60 }
 0x7cf   :  { %688 = vrot.lane.b32.xlu0 %v686_v61, %s1395_s5 }
 0x841   :  { %v689_v62 = vpop.permute.xlu0 %688 }
 0x842   :  { %1276 = vmatmul.mubr.msk.bf16.vlgmr.msra.gmra.mxu1 %vm65_vm2, %v689_v62 }
 0x843   :  { %1288 = vmatpush3.bf16.msra.mxu1 %v1507_v8  ;;  %1291 = vmatprep.mubr.msk.bf16.mxu1 %vm1393_vm0, %v1392_v1 }
 0x844   :  { %1289 = vmatprep.subr.bf16.mxu1 %v1392_v1 }
 0x847   :  { %1290 = vmatpush3.bf16.msra.mxu1 %v1515_v9 }
 0x848   :  { %1303 = vmatprep.subr.bf16.mxu1 %v1392_v1 }
 0x902   :  { %v727_v0 = vpop.f32.mrf.mxu1 }
 0x903   :  { %v733_v2 = vadd.f32 %v727_v0, %v685_v63 }
 0x904   :  { %v1277_v3 = vpop.f32.mrf.mxu1 }
 0x905   :  { %1340 = vtanh.f32 %v733_v2  ;;  %v734_v7 = vmul.f32 0.5, %v733_v2  ;;  %v916_v2 = vld [vmem:[#allocation2 + $0x18] sm:$0xf] }
 0x906   :  { %v730_v4 = vpop.f32.mrf.mxu1 }
 0x907   :  { %1342 = vtanh.f32 %v734_v7 }
 0x908   :  { %v1278_v5 = vpop.f32.mrf.mxu1 }
 0x912   :  { %v1341_v6 = vpop.eup %1340 }
 0x913   :  { %741 = vrot.lane.b32.xlu1 %v1341_v6, %s1394_s3 }
 0x914   :  { %v1343_v10 = vpop.eup %1342 }
 0x915   :  { %v736_v11 = vadd.f32 1.0, %v1343_v10 }
 0x917   :  { %v737_v12 = vmul.f32 0.5, %v736_v11 }
 0x919   :  { %v739_v16 = vmul.f32 %v737_v12, %v672_v56 }
 0x985   :  { %v742_v14 = vpop.permute.xlu1 %741 }
 0x986   :  { %v744_v15 = vmul.f32 %v742_v14, %v737_v12 }
 0x988   :  { %746 = vrot.lane.b32.xlu0 %v744_v15, %s1395_s5 }
 0x9fa   :  { %v747_v17 = vpop.permute.xlu0 %746 }
 0x9fb   :  { %v749_v18 = vadd.f32 %v747_v17, %v739_v16 }
 0x9fd   :  { %1344 = vtanh.f32 %v749_v18 }
 0xa0a   :  { %v1345_v19 = vpop.eup %1344 }
 0xa0b   :  { %752 = vrot.lane.b32.xlu1 %v1345_v19, %s1394_s3 }
 0xa7d   :  { %v753_v20 = vpop.permute.xlu1 %752 }
 0xa7e   :  { %v1639_v21 = vmul.f32 %v753_v20, %v737_v12 }
 0xa80   :  { %v763_v13 = vpack.c.bf16 %v1639_v21, %v1639_v21 }
 0xa82   :  { %765 = vrot.lane.b32.xlu0 %v763_v13, %s1395_s5 }
 0xaf4   :  { %v766_v22 = vpop.permute.xlu0 %765 }
 0xaf5   :  { %1284 = vmatmul.mubr.msk.bf16.vlgmr.msra.gmra.mxu0 %vm65_vm2, %v766_v22 }
 0xaf6   :  { %1296 = vmatpush3.bf16.msra.mxu0 %v1507_v8  ;;  %1299 = vmatprep.mubr.msk.bf16.mxu0 %vm1393_vm0, %v1392_v1 }
 0xaf7   :  { %1297 = vmatprep.subr.bf16.mxu0 %v1392_v1 }
 0xafa   :  { %1298 = vmatpush3.bf16.msra.mxu0 %v1515_v9 }
 0xbb5   :  { %v804_v24 = vpop.f32.mrf.mxu0 }
 0xbb6   :  { %v810_v25 = vadd.f32 %v804_v24, %v762_v23 }
 0xbb7   :  { %v1285_v26 = vpop.f32.mrf.mxu0 }
 0xbb8   :  { %1346 = vtanh.f32 %v810_v25  ;;  %v811_v30 = vmul.f32 0.5, %v810_v25  ;;  %v993_v26 = vld [vmem:[#allocation2 + $0x1c] sm:$0xf] }
 0xbb9   :  { %v807_v27 = vpop.f32.mrf.mxu0 }
 0xbba   :  { %1348 = vtanh.f32 %v811_v30 }
 0xbbb   :  { %v1286_v28 = vpop.f32.mrf.mxu0 }
 0xbc5   :  { %v1347_v29 = vpop.eup %1346 }
 0xbc6   :  { %818 = vrot.lane.b32.xlu1 %v1347_v29, %s1394_s3 }
 0xbc7   :  { %v1349_v31 = vpop.eup %1348 }
 0xbc8   :  { %v813_v32 = vadd.f32 1.0, %v1349_v31 }
 0xbca   :  { %v814_v33 = vmul.f32 0.5, %v813_v32 }
 0xbcc   :  { %v816_v36 = vmul.f32 %v814_v33, %v749_v18 }
 0xc38   :  { %v819_v34 = vpop.permute.xlu1 %818 }
 0xc39   :  { %v821_v35 = vmul.f32 %v819_v34, %v814_v33 }
 0xc3b   :  { %823 = vrot.lane.b32.xlu0 %v821_v35, %s1395_s5 }
 0xcad   :  { %v824_v37 = vpop.permute.xlu0 %823 }
 0xcae   :  { %v826_v39 = vadd.f32 %v824_v37, %v816_v36 }
 0xcb0   :  { %1350 = vtanh.f32 %v826_v39 }
 0xcbd   :  { %v1351_v40 = vpop.eup %1350 }
 0xcbe   :  { %829 = vrot.lane.b32.xlu1 %v1351_v40, %s1394_s3 }
 0xd30   :  { %v830_v41 = vpop.permute.xlu1 %829 }
 0xd31   :  { %v1653_v42 = vmul.f32 %v830_v41, %v814_v33 }
 0xd33   :  { %v840_v43 = vpack.c.bf16 %v1653_v42, %v1653_v42 }
 0xd35   :  { %842 = vrot.lane.b32.xlu0 %v840_v43, %s1395_s5 }
 0xda7   :  { %v843_v44 = vpop.permute.xlu0 %842 }
 0xda8   :  { %1292 = vmatmul.mubr.msk.bf16.vlgmr.msra.gmra.mxu1 %vm65_vm2, %v843_v44 }
 0xda9   :  { %1304 = vmatpush3.bf16.msra.mxu1 %v1507_v8  ;;  %1307 = vmatprep.mubr.msk.bf16.mxu1 %vm1393_vm0, %v1392_v1 }
 0xdaa   :  { %1305 = vmatprep.subr.bf16.mxu1 %v1392_v1 }
 0xdad   :  { %1306 = vmatpush3.bf16.msra.mxu1 %v1515_v9 }
 0xe68   :  { %v881_v46 = vpop.f32.mrf.mxu1 }
 0xe69   :  { %v887_v47 = vadd.f32 %v881_v46, %v839_v45 }
 0xe6a   :  { %v1293_v48 = vpop.f32.mrf.mxu1 }
 0xe6b   :  { %1352 = vtanh.f32 %v887_v47  ;;  %v888_v52 = vmul.f32 0.5, %v887_v47 }
 0xe6c   :  { %v884_v49 = vpop.f32.mrf.mxu1 }
 0xe6d   :  { %1354 = vtanh.f32 %v888_v52 }
 0xe6e   :  { %v1294_v50 = vpop.f32.mrf.mxu1 }
 0xe78   :  { %v1353_v51 = vpop.eup %1352 }
 0xe79   :  { %895 = vrot.lane.b32.xlu1 %v1353_v51, %s1394_s3 }
 0xe7a   :  { %v1355_v8 = vpop.eup %1354 }
 0xe7b   :  { %v890_v53 = vadd.f32 1.0, %v1355_v8 }
 0xe7d   :  { %v891_v54 = vmul.f32 0.5, %v890_v53 }
 0xe7f   :  { %v893_v1 = vmul.f32 %v891_v54, %v826_v39 }
 0xeeb   :  { %v896_v55 = vpop.permute.xlu1 %895 }
 0xeec   :  { %v898_v56 = vmul.f32 %v896_v55, %v891_v54 }
 0xeee   :  { %900 = vrot.lane.b32.xlu0 %v898_v56, %s1395_s5 }
 0xf60   :  { %v901_v9 = vpop.permute.xlu0 %900 }
 0xf61   :  { %v903_v57 = vadd.f32 %v901_v9, %v893_v1 }
 0xf63   :  { %1356 = vtanh.f32 %v903_v57 }
 0xf70   :  { %v1357_v59 = vpop.eup %1356 }
 0xf71   :  { %906 = vrot.lane.b32.xlu1 %v1357_v59, %s1394_s3 }
 0xfe3   :  { %v907_v61 = vpop.permute.xlu1 %906 }
 0xfe4   :  { %v1667_v62 = vmul.f32 %v907_v61, %v891_v54 }
 0xfe6   :  { %v917_v63 = vpack.c.bf16 %v1667_v62, %v1667_v62 }
 0xfe8   :  { %919 = vrot.lane.b32.xlu0 %v917_v63, %s1395_s5 }
0x105a   :  { %v920_v0 = vpop.permute.xlu0 %919 }
0x105b   :  { %1300 = vmatmul.mubr.msk.bf16.vlgmr.msra.gmra.mxu0 %vm65_vm2, %v920_v0 }
0x111b   :  { %v958_v3 = vpop.f32.mrf.mxu0 }
0x111c   :  { %v964_v4 = vadd.f32 %v958_v3, %v916_v2 }
0x111d   :  { %v1301_v5 = vpop.f32.mrf.mxu0 }
0x111e   :  { %1358 = vtanh.f32 %v964_v4  ;;  %v965_v11 = vmul.f32 0.5, %v964_v4 }
0x111f   :  { %v961_v6 = vpop.f32.mrf.mxu0 }
0x1120   :  { %1360 = vtanh.f32 %v965_v11 }
0x1121   :  { %v1302_v7 = vpop.f32.mrf.mxu0 }
0x112b   :  { %v1359_v10 = vpop.eup %1358 }
0x112c   :  { %972 = vrot.lane.b32.xlu1 %v1359_v10, %s1394_s3 }
0x112d   :  { %v1361_v12 = vpop.eup %1360 }
0x112e   :  { %v967_v14 = vadd.f32 1.0, %v1361_v12 }
0x1130   :  { %v968_v15 = vmul.f32 0.5, %v967_v14 }
0x1132   :  { %v970_v18 = vmul.f32 %v968_v15, %v903_v57 }
0x119e   :  { %v973_v16 = vpop.permute.xlu1 %972 }
0x119f   :  { %v975_v17 = vmul.f32 %v973_v16, %v968_v15 }
0x11a1   :  { %977 = vrot.lane.b32.xlu0 %v975_v17, %s1395_s5 }
0x1213   :  { %v978_v19 = vpop.permute.xlu0 %977 }
0x1214   :  { %v980_v20 = vadd.f32 %v978_v19, %v970_v18 }
0x1216   :  { %1362 = vtanh.f32 %v980_v20 }
0x1223   :  { %v1363_v13 = vpop.eup %1362 }
0x1224   :  { %983 = vrot.lane.b32.xlu1 %v1363_v13, %s1394_s3 }
0x1296   :  { %v984_v22 = vpop.permute.xlu1 %983 }
0x1297   :  { %v986_v23 = vmul.f32 %v984_v22, %v968_v15 }
0x1299   :  { %v994_v24 = vpack.c.bf16 %v986_v23, %v986_v23 }
0x129b   :  { %996 = vrot.lane.b32.xlu0 %v994_v24, %s1395_s5 }
0x130d   :  { %v997_v25 = vpop.permute.xlu0 %996 }
0x130e   :  { %1308 = vmatmul.mubr.msk.bf16.vlgmr.msra.gmra.mxu1 %vm65_vm2, %v997_v25 }
0x13ce   :  { %v1035_v27 = vpop.f32.mrf.mxu1 }
0x13cf   :  { %v1041_v28 = vadd.f32 %v1035_v27, %v993_v26 }
0x13d0   :  { %v1309_v29 = vpop.f32.mrf.mxu1 }
0x13d1   :  { %1364 = vtanh.f32 %v1041_v28  ;;  %v1042_v33 = vmul.f32 0.5, %v1041_v28 }
0x13d2   :  { %v1038_v30 = vpop.f32.mrf.mxu1 }
0x13d3   :  { %1366 = vtanh.f32 %v1042_v33 }
0x13d4   :  { %v1310_v31 = vpop.f32.mrf.mxu1 }
0x13de   :  { %v1365_v32 = vpop.eup %1364 }
0x13df   :  { %1049 = vrot.lane.b32.xlu1 %v1365_v32, %s1394_s3 }
0x13e0   :  { %v1367_v34 = vpop.eup %1366 }
0x13e1   :  { %v1044_v35 = vadd.f32 1.0, %v1367_v34 }
0x13e3   :  { %v1045_v36 = vmul.f32 0.5, %v1044_v35 }
0x13e5   :  { %v1047_v40 = vmul.f32 %v1045_v36, %v980_v20 }
0x1451   :  { %v1050_v37 = vpop.permute.xlu1 %1049 }
0x1452   :  { %v1052_v39 = vmul.f32 %v1050_v37, %v1045_v36 }
0x1454   :  { %1054 = vrot.lane.b32.xlu0 %v1052_v39, %s1395_s5 }
0x1458   :  { %526 = vrot.lane.b32.xlu0 %v1589_v58, %s1395_s5 }
0x145c   :  { %680 = vrot.lane.b32.xlu0 %v1624_v60, %s1395_s5 }
0x14c6   :  { %v1055_v41 = vpop.permute.xlu0 %1054 }
0x14c7   :  { %v1057_v43 = vadd.f32 %v1055_v41, %v1047_v40 }
0x14c9   :  { %1368 = vtanh.f32 %v1057_v43 }
0x14ca   :  { %v527_v44 = vpop.permute.xlu0 %526 }
0x14cb   :  { %530 = vst.msk [vmem:[#allocation5] sm:$0xf] %vm33_vm1, %v527_v44 }
0x14ce   :  { %v681_v45 = vpop.permute.xlu0 %680 }
0x14cf   :  { %684 = vst.msk [vmem:[#allocation5 + $0x8] sm:$0xf] %vm33_vm1, %v681_v45 }
0x14d6   :  { %v1369_v46 = vpop.eup %1368 }
0x14d7   :  { %1060 = vrot.lane.b32.xlu1 %v1369_v46, %s1394_s3 }
0x14db   :  { %1072 = vrot.lane.b32.xlu1 %v1057_v43, %s1396_s0 }
0x14df   :  { %603 = vrot.lane.b32.xlu1 %v1609_v38, %s1395_s5 }
0x14e3   :  { %757 = vrot.lane.b32.xlu1 %v1639_v21, %s1395_s5 }
0x14e7   :  { %911 = vrot.lane.b32.xlu1 %v1667_v62, %s1395_s5 }
0x1549   :  { %v1061_v58 = vpop.permute.xlu1 %1060 }
0x154a   :  { %v1063_v60 = vmul.f32 %v1061_v58, %v1045_v36 }
0x154c   :  { %1065 = vrot.lane.b32.xlu0 %v1063_v60, %s1395_s5 }
0x154d   :  { %v1073_v47 = vpop.permute.xlu1 %1072 }
0x154e   :  { %1075 = vst.msk [vmem:[#allocation4] sm:$0xf] %vm33_vm1, %v1073_v47 }
0x1550   :  { %834 = vrot.lane.b32.xlu0 %v1653_v42, %s1395_s5 }
0x1551   :  { %v604_v48 = vpop.permute.xlu1 %603 }
0x1552   :  { %607 = vst.msk [vmem:[#allocation5 + $0x4] sm:$0xf] %vm33_vm1, %v604_v48 }
0x1554   :  { %988 = vrot.lane.b32.xlu0 %v986_v23, %s1395_s5 }
0x1555   :  { %v1081_v38 = vld [vmem:[#allocation4] sm:$0xf]  ;;  %v758_v21 = vpop.permute.xlu1 %757 }
0x1556   :  { %1082 = vst.msk [vmem:[%s1726_s8] sm:$0xf] %vm33_vm1, %v1081_v38  ;;  %761 = vst.msk [vmem:[#allocation5 + $0xc] sm:$0xf] %vm33_vm1, %v758_v21 }
0x1559   :  { %v912_v49 = vpop.permute.xlu1 %911 }
0x155a   :  { %915 = vst.msk [vmem:[#allocation5 + $0x14] sm:$0xf] %vm33_vm1, %v912_v49 }
0x15be   :  { %v1066_v50 = vpop.permute.xlu0 %1065 }
0x15bf   :  { %1069 = vst.msk [vmem:[#allocation5 + $0x1c] sm:$0xf] %vm33_vm1, %v1066_v50  ;;  %1070 = vst.msk [vmem:[#allocation3] sm:$0xf] %vm33_vm1, %v1066_v50 }
0x15c2   :  { %v835_v42 = vpop.permute.xlu0 %834 }
0x15c3   :  { %838 = vst.msk [vmem:[#allocation5 + $0x10] sm:$0xf] %vm33_vm1, %v835_v42 }
0x15c6   :  { %v1079_v51 = vld [vmem:[#allocation3] sm:$0xf]  ;;  %v989_v52 = vpop.permute.xlu0 %988 }
0x15c7   :  { %1080 = vst.msk [vmem:[%s1725_s7] sm:$0xf] %vm33_vm1, %v1079_v51  ;;  %992 = vst.msk [vmem:[#allocation5 + $0x18] sm:$0xf] %vm33_vm1, %v989_v52 }
0x15c8   :  { %1381 = shalt.err (!%p1378_p4)
}
0x15c9   :  { %s1398_s14 = smov 4  }
0x15ca   :  { %1094 = dma.vmem_to_hbm [thread:$0]  %s1089_s4, 512, %s1724_s6, [#allocation6], %s1394_s3, %s1394_s3, %s1398_s14  }
0x15cb   :  { %1390 = dma.done.wait [#allocation6], 512  }
0x15cc   :  { %1391 = vsyncadd [#allocation6], 4294966784 }
0x15cd   :  { %1106 = vsyncpa [#allocation6], 1 }

</bundles_post_ra>
